<compile_context>
chip_gen: v7x
topology: tpu7x:2x2x1
jax: 0.10.0
libtpu: 0.0.40
codegen_flags: <defaults>
</compile_context>

<pallas_src>
import jax
import jax.numpy as jnp
from jax.experimental import pallas as pl
from jax.experimental.pallas import tpu as pltpu


# ----------------------------------------------------------------------------
# In-kernel helper: valid, stride-1, k x k conv + bias + ReLU computed as k
# row-strip GEMMs (K = k*cin each) accumulated in f32.  `src_ref` is a bf16
# VMEM ref (input block or scratch activations); `hin`/`win` give the valid
# spatial extent inside the (possibly larger, reused) scratch buffer.
# ----------------------------------------------------------------------------
def _conv_rowstrip_relu(src_ref, w_ref, b_ref, *, k, hin, win):
    bb = src_ref.shape[0]
    cin = src_ref.shape[3]
    cout = w_ref.shape[2]
    oh = hin - k + 1
    ow = win - k + 1
    m = bb * oh * ow

    acc = jnp.zeros((m, cout), jnp.float32)
    for kh in range(k):
        # (bb, oh, ow, k*cin) bf16 strip: kw-shifted windows of one kernel row
        strip = jnp.concatenate(
            [src_ref[:, kh:kh + oh, kw:kw + ow, :] for kw in range(k)],
            axis=-1)
        acc = acc + jnp.dot(strip.reshape(m, k * cin), w_ref[kh],
                            preferred_element_type=jnp.float32)
    acc = jnp.maximum(acc + b_ref[...], 0.0)              # bias + ReLU (f32)
    return acc.reshape(bb, oh, ow, cout)


def _encoder_kernel(x_ref, w1_ref, b1_ref, w2_ref, b2_ref, w3_ref, b3_ref,
                    w4_ref, b4_ref, o_ref, act1_ref, act2_ref):
    # x_ref : (bb, H/2, W/2, 4*Cin) bf16 space-to-depth raw pixels
    # w1_ref: (2, 8*Cin, 32) bf16 -- 3x3/stride-2 conv rewritten as 2x2/stride-1
    #         over the space-to-depth input, /255 - 0.5 folded in
    # w2..w4: (3, 96, 32) bf16 row-strip im2col weights;  b*: (1, 32) f32
    # o_ref : (bb, 32*OH4*OW4) NHWC-flattened features (f32)
    bb, hs, ws, _ = x_ref.shape
    oh1, ow1 = hs - 1, ws - 1
    oh2, ow2 = oh1 - 2, ow1 - 2
    oh3, ow3 = oh2 - 2, ow2 - 2
    oh4, ow4 = oh3 - 2, ow3 - 2

    # layer 1: 2x2 unit-stride conv over space-to-depth input (== 3x3 stride-2)
    a1 = _conv_rowstrip_relu(x_ref, w1_ref, b1_ref, k=2, hin=hs, win=ws)
    act1_ref[...] = a1.astype(jnp.bfloat16)                 # cast once, store bf16

    a2 = _conv_rowstrip_relu(act1_ref, w2_ref, b2_ref, k=3, hin=oh1, win=ow1)
    act2_ref[...] = a2.astype(jnp.bfloat16)

    a3 = _conv_rowstrip_relu(act2_ref, w3_ref, b3_ref, k=3, hin=oh2, win=ow2)
    # ping-pong: a1 is dead now, reuse its buffer for a3 (a3 is smaller)
    act1_ref[:, :oh3, :ow3, :] = a3.astype(jnp.bfloat16)

    a4 = _conv_rowstrip_relu(act1_ref, w4_ref, b4_ref, k=3, hin=oh3, win=ow3)
    # NHWC flatten (straight copy); NCHW permutation happens in the wrapper.
    o_ref[...] = a4.reshape(bb, oh4 * ow4 * 32)


# ----------------------------------------------------------------------------
# Wrapper-side parameter prep: fold preprocessing into layer 1, rewrite the
# stride-2 conv as a 2x2 stride-1 conv over the space-to-depth input, reshape
# all weights to (k, k*cin, 32) row-strip matrices and cast to bf16.
# ----------------------------------------------------------------------------
def _prepare_params(params, cin):
    w1, b1 = params["w1"], params["b1"]                   # (3,3,cin,32), (32,)
    w1s = w1 / 255.0                                      # fold obs/255
    b1e = b1 - 0.5 * jnp.sum(w1, axis=(0, 1, 2))          # fold the -0.5 shift
    # Tap (r, s) of the 3x3/stride-2 conv maps to (di, dj, dy, dx) of a
    # 2x2/stride-1 conv over space-to-depth(x) with r = 2*di + dy,
    # s = 2*dj + dx; the r == 3 / s == 3 slots are zero.
    w1p = jnp.pad(w1s, ((0, 1), (0, 1), (0, 0), (0, 0)))  # (4,4,cin,32)
    w1e = w1p.reshape(2, 2, 2, 2, cin, 32).transpose(0, 2, 1, 3, 4, 5)
    # row order within a strip: (dj, dy, dx, c) == space-to-depth im2col order
    mats = [w1e.reshape(2, 8 * cin, 32).astype(jnp.bfloat16)]
    biases = [b1e.reshape(1, 32).astype(jnp.float32)]
    for i in range(2, 5):
        w = params[f"w{i}"]                               # (3,3,32,32)
        mats.append(w.reshape(3, 3 * 32, 32).astype(jnp.bfloat16))
        biases.append(params[f"b{i}"].reshape(1, 32).astype(jnp.float32))
    return mats, biases


# ----------------------------------------------------------------------------
# Hardware-aware batch blocking.
# ----------------------------------------------------------------------------
def _tpu_topology():
    n_cores, vmem_cap = 1, 64 << 20        # conservative defaults (v7x per-TC)
    try:
        info = pltpu.get_tpu_info()
        vmem_cap = int(getattr(info, "vmem_capacity_bytes", vmem_cap))
        for name in ("num_cores", "core_count", "num_tensorcores",
                     "tensorcores_per_chip", "cores_per_chip"):
            v = getattr(info, name, None)
            if v:
                n_cores = int(v)
                break
    except Exception:
        pass
    return n_cores, vmem_cap


def _choose_batch_block(b, per_sample_bytes, n_cores, vmem_budget):
    divisors = [d for d in range(1, b + 1) if b % d == 0]
    fitting = [d for d in divisors if d * per_sample_bytes <= vmem_budget]
    if not fitting:
        fitting = [1]
    if n_cores > 1 and b >= n_cores:
        # keep block count a multiple of the core count so no TC idles
        pref = [d for d in fitting if (b // d) % n_cores == 0]
        if pref:
            return max(pref)
    # single-TC chips: largest block that fits (ideally 1 block, no grid overhead)
    return max(fitting)


def encoder_forward(obs_nchw, params):
    b, c, h, w = obs_nchw.shape
    assert h % 2 == 0 and w % 2 == 0, "space-to-depth needs even H, W"

    # NCHW -> NHWC, space-to-depth (factor 2) so layer 1 is unit-stride; bf16
    # input halves the only large HBM->VMEM DMA (preprocessing is in w1/b1).
    x = jnp.transpose(obs_nchw, (0, 2, 3, 1))
    hs, ws = h // 2, w // 2
    x = x.reshape(b, hs, 2, ws, 2, c).transpose(0, 1, 3, 2, 4, 5)
    x = x.reshape(b, hs, ws, 4 * c).astype(jnp.bfloat16)

    mats, biases = _prepare_params(params, c)

    oh1, ow1 = hs - 1, ws - 1              # == (h-3)//2 + 1 for even h
    oh2, ow2 = oh1 - 2, ow1 - 2
    oh3, ow3 = oh2 - 2, ow2 - 2
    oh4, ow4 = oh3 - 2, ow3 - 2
    feat = 32 * oh4 * ow4

    # --- VMEM-driven batch-block sizing ---
    n_cores, vmem_cap = _tpu_topology()
    bytes_in = hs * ws * 4 * c * 2 * 2                 # bf16 input, double-buffered
    bytes_act = (oh1 * ow1 + oh2 * ow2) * 32 * 2       # bf16 scratch (ping-pong)
    bytes_out = feat * 4 * 2                           # f32 output, double-buffered
    m1 = oh1 * ow1
    bytes_gemm = m1 * 96 * 2 + m1 * 32 * 4             # patch strip + f32 accumulator
    per_sample_bytes = bytes_in + bytes_act + bytes_out + bytes_gemm

    vmem_limit = int(min(vmem_cap, 128 << 20) * 3 // 4)
    bb = _choose_batch_block(b, per_sample_bytes, n_cores, vmem_limit // 2)
    n_blocks = b // bb

    in_specs = [pl.BlockSpec((bb, hs, ws, 4 * c), lambda i: (i, 0, 0, 0))]
    args = [x]
    for mat, bias in zip(mats, biases):
        in_specs.append(pl.BlockSpec(mat.shape, lambda i: (0, 0, 0)))   # resident
        in_specs.append(pl.BlockSpec(bias.shape, lambda i: (0, 0)))
        args.extend([mat, bias])

    # advisory cost estimate for XLA scheduling around the custom call
    flops = 0
    for m_l, k_l in ((b * oh1 * ow1, 16 * c), (b * oh2 * ow2, 9 * 32),
                     (b * oh3 * ow3, 9 * 32), (b * oh4 * ow4, 9 * 32)):
        flops += 2 * m_l * k_l * 32
    bytes_accessed = (x.size * 2 + sum(m.size * 2 for m in mats)
                      + sum(bi.size * 4 for bi in biases) + b * feat * 4)
    cost = pl.CostEstimate(flops=flops, transcendentals=0,
                           bytes_accessed=bytes_accessed)

    out = pl.pallas_call(
        _encoder_kernel,
        out_shape=jax.ShapeDtypeStruct((n_blocks, bb, feat), jnp.float32),
        grid=(n_blocks,),
        in_specs=in_specs,
        out_specs=pl.BlockSpec((None, bb, feat), lambda i: (i, 0, 0)),
        scratch_shapes=[
            pltpu.VMEM((bb, oh1, ow1, 32), jnp.bfloat16),   # a1, later reused for a3
            pltpu.VMEM((bb, oh2, ow2, 32), jnp.bfloat16),   # a2
        ],
        compiler_params=pltpu.CompilerParams(
            dimension_semantics=("parallel",),
            vmem_limit_bytes=vmem_limit),
        cost_estimate=cost,
    )(*args)

    # NHWC-flattened kernel output -> torch's NCHW h.view(B, -1) order (XLA side)
    out = out.reshape(b, oh4, ow4, 32)
    out = jnp.transpose(out, (0, 3, 1, 2))
    return out.reshape(b, feat)


# ----------------------------------------------------------------------------
# Parameter init and pure-JAX reference (f32 HIGHEST) for validation.
# ----------------------------------------------------------------------------
def init_params(key, in_channels):
    keys = jax.random.split(key, 8)
    params = {}
    cins = [in_channels, 32, 32, 32]
    for i in range(4):
        cin = cins[i]
        scale = 1.0 / jnp.sqrt(3.0 * 3.0 * cin)
        params[f"w{i + 1}"] = (
            jax.random.normal(keys[2 * i], (3, 3, cin, 32), jnp.float32) * scale
        )
        params[f"b{i + 1}"] = (
            jax.random.normal(keys[2 * i + 1], (32,), jnp.float32) * 0.01
        )
    return params


def encoder_reference(obs_nchw, params):
    x = obs_nchw.astype(jnp.float32) / 255.0 - 0.5
    x = jnp.transpose(x, (0, 2, 3, 1))
    for i, s in zip(range(1, 5), (2, 1, 1, 1)):
        x = jax.lax.conv_general_dilated(
            x,
            params[f"w{i}"],
            window_strides=(s, s),
            padding="VALID",
            dimension_numbers=("NHWC", "HWIO", "NHWC"),
            precision=jax.lax.Precision.HIGHEST,
        )
        x = jnp.maximum(x + params[f"b{i}"], 0.0)
    x = jnp.transpose(x, (0, 3, 1, 2))
    return x.reshape(x.shape[0], -1)


if __name__ == "__main__":
    key = jax.random.PRNGKey(0)
    k_obs, k_par = jax.random.split(key)

    # small shapes consistent with the module: obs_shape = (4, 16, 16), batch=2
    B, C, H, W = 2, 4, 16, 16
    obs = jax.random.uniform(k_obs, (B, C, H, W), jnp.float32, 0.0, 255.0)
    params = init_params(k_par, C)

    out = jax.jit(encoder_forward)(obs, params)
    out = jax.block_until_ready(out)

    ref = jax.block_until_ready(encoder_reference(obs, params))
    assert out.shape == (B, 32 * 1 * 1), out.shape  # 4x16x16 -> 32x1x1 flattened
    # kernel uses bf16 MXU operands / bf16 activations with f32 accumulation;
    # compare against the f32 HIGHEST reference at bf16-level tolerance
    assert jnp.allclose(out, ref, atol=2e-2, rtol=2e-2), (
        float(jnp.max(jnp.abs(out - ref)))
    )

    print("KERNEL_OK")
</pallas_src>

<mosaic_0001>
module attributes {stable_mosaic.version = 11 : i64} {
  func.func @_encoder_kernel(%arg0: i32, %arg1: memref<2x8x8x16xbf16, #tpu.memory_space<vmem>>, %arg2: memref<2x32x32xbf16, #tpu.memory_space<vmem>>, %arg3: memref<1x32xf32, #tpu.memory_space<vmem>>, %arg4: memref<3x96x32xbf16, #tpu.memory_space<vmem>>, %arg5: memref<1x32xf32, #tpu.memory_space<vmem>>, %arg6: memref<3x96x32xbf16, #tpu.memory_space<vmem>>, %arg7: memref<1x32xf32, #tpu.memory_space<vmem>>, %arg8: memref<3x96x32xbf16, #tpu.memory_space<vmem>>, %arg9: memref<1x32xf32, #tpu.memory_space<vmem>>, %arg10: memref<1x2x32xf32, #tpu.memory_space<vmem>>, %arg11: memref<2x7x7x32xbf16, #tpu.memory_space<vmem>>, %arg12: memref<2x5x5x32xbf16, #tpu.memory_space<vmem>>) attributes {dimension_semantics = [#tpu.dimension_semantics<parallel>], iteration_bounds = array<i64: 1>, scalar_prefetch = 0 : i64, scratch_operands = 2 : i64, tpu.core_type = #tpu.core_type<tc>, window_params = [{transform_indices = @transform_0, window_bounds = array<i64: 2, 8, 8, 16>}, {pipeline_mode = #tpu.pipeline_mode<synchronous>, transform_indices = @transform_1, window_bounds = array<i64: 2, 32, 32>}, {pipeline_mode = #tpu.pipeline_mode<synchronous>, transform_indices = @transform_2, window_bounds = array<i64: 1, 32>}, {pipeline_mode = #tpu.pipeline_mode<synchronous>, transform_indices = @transform_3, window_bounds = array<i64: 3, 96, 32>}, {pipeline_mode = #tpu.pipeline_mode<synchronous>, transform_indices = @transform_4, window_bounds = array<i64: 1, 32>}, {pipeline_mode = #tpu.pipeline_mode<synchronous>, transform_indices = @transform_5, window_bounds = array<i64: 3, 96, 32>}, {pipeline_mode = #tpu.pipeline_mode<synchronous>, transform_indices = @transform_6, window_bounds = array<i64: 1, 32>}, {pipeline_mode = #tpu.pipeline_mode<synchronous>, transform_indices = @transform_7, window_bounds = array<i64: 3, 96, 32>}, {pipeline_mode = #tpu.pipeline_mode<synchronous>, transform_indices = @transform_8, window_bounds = array<i64: 1, 32>}, {transform_indices = @transform_9, window_bounds = array<i64: 1, 2, 32>}]} {
    %cst = arith.constant 0.000000e+00 : f32
    %0 = vector.broadcast %cst : f32 to vector<98x32xf32>
    %c0 = arith.constant 0 : index
    %c0_0 = arith.constant 0 : index
    %c0_1 = arith.constant 0 : index
    %c0_2 = arith.constant 0 : index
    %1 = vector.load %arg1[%c0, %c0_0, %c0_1, %c0_2] : memref<2x8x8x16xbf16, #tpu.memory_space<vmem>>, vector<2x7x7x16xbf16>
    %c0_3 = arith.constant 0 : index
    %c0_4 = arith.constant 0 : index
    %c1 = arith.constant 1 : index
    %c0_5 = arith.constant 0 : index
    %2 = vector.load %arg1[%c0_3, %c0_4, %c1, %c0_5] : memref<2x8x8x16xbf16, #tpu.memory_space<vmem>>, vector<2x7x7x16xbf16>
    %3 = tpu.concatenate %1, %2 in 3 : vector<2x7x7x16xbf16>, vector<2x7x7x16xbf16> -> vector<2x7x7x32xbf16>
    %4 = vector.shape_cast %3 : vector<2x7x7x32xbf16> to vector<98x32xbf16>
    %c0_6 = arith.constant 0 : index
    %c0_7 = arith.constant 0 : index
    %c0_8 = arith.constant 0 : index
    %5 = vector.load %arg2[%c0_6, %c0_7, %c0_8] : memref<2x32x32xbf16, #tpu.memory_space<vmem>>, vector<1x32x32xbf16>
    %6 = vector.shape_cast %5 : vector<1x32x32xbf16> to vector<32x32xbf16>
    %cst_9 = arith.constant dense<0.000000e+00> : vector<98x32xf32>
    %7 = tpu.matmul %4, %6, %cst_9 {dimension_numbers = #tpu.dot_dimension_numbers<[1], [0], [0], [1], [0, 0, 1, 1], [], []>} : vector<98x32xbf16>, vector<32x32xbf16>, vector<98x32xf32> -> vector<98x32xf32>
    %8 = arith.addf %0, %7 : vector<98x32xf32>
    %c0_10 = arith.constant 0 : index
    %c1_11 = arith.constant 1 : index
    %c0_12 = arith.constant 0 : index
    %c0_13 = arith.constant 0 : index
    %9 = vector.load %arg1[%c0_10, %c1_11, %c0_12, %c0_13] : memref<2x8x8x16xbf16, #tpu.memory_space<vmem>>, vector<2x7x7x16xbf16>
    %c0_14 = arith.constant 0 : index
    %c1_15 = arith.constant 1 : index
    %c1_16 = arith.constant 1 : index
    %c0_17 = arith.constant 0 : index
    %10 = vector.load %arg1[%c0_14, %c1_15, %c1_16, %c0_17] : memref<2x8x8x16xbf16, #tpu.memory_space<vmem>>, vector<2x7x7x16xbf16>
    %11 = tpu.concatenate %9, %10 in 3 : vector<2x7x7x16xbf16>, vector<2x7x7x16xbf16> -> vector<2x7x7x32xbf16>
    %12 = vector.shape_cast %11 : vector<2x7x7x32xbf16> to vector<98x32xbf16>
    %c1_18 = arith.constant 1 : index
    %c0_19 = arith.constant 0 : index
    %c0_20 = arith.constant 0 : index
    %13 = vector.load %arg2[%c1_18, %c0_19, %c0_20] : memref<2x32x32xbf16, #tpu.memory_space<vmem>>, vector<1x32x32xbf16>
    %14 = vector.shape_cast %13 : vector<1x32x32xbf16> to vector<32x32xbf16>
    %cst_21 = arith.constant dense<0.000000e+00> : vector<98x32xf32>
    %15 = tpu.matmul %12, %14, %cst_21 {dimension_numbers = #tpu.dot_dimension_numbers<[1], [0], [0], [1], [0, 0, 1, 1], [], []>} : vector<98x32xbf16>, vector<32x32xbf16>, vector<98x32xf32> -> vector<98x32xf32>
    %16 = arith.addf %8, %15 : vector<98x32xf32>
    %c0_22 = arith.constant 0 : index
    %c0_23 = arith.constant 0 : index
    %17 = vector.load %arg3[%c0_22, %c0_23] : memref<1x32xf32, #tpu.memory_space<vmem>>, vector<1x32xf32>
    %18 = vector.broadcast %17 : vector<1x32xf32> to vector<98x32xf32>
    %19 = arith.addf %16, %18 : vector<98x32xf32>
    %cst_24 = arith.constant 0.000000e+00 : f32
    %20 = vector.broadcast %cst_24 : f32 to vector<98x32xf32>
    %21 = arith.maximumf %19, %20 : vector<98x32xf32>
    %22 = vector.shape_cast %21 : vector<98x32xf32> to vector<2x7x7x32xf32>
    %23 = arith.truncf %22 : vector<2x7x7x32xf32> to vector<2x7x7x32xbf16>
    %c0_25 = arith.constant 0 : index
    %c0_26 = arith.constant 0 : index
    %c0_27 = arith.constant 0 : index
    %c0_28 = arith.constant 0 : index
    %24 = vector.load %arg11[%c0_25, %c0_26, %c0_27, %c0_28] : memref<2x7x7x32xbf16, #tpu.memory_space<vmem>>, vector<2x7x7x32xbf16>
    tpu.vector_store %arg11[%c0_25, %c0_26, %c0_27, %c0_28], %23 {strides = array<i32>} : memref<2x7x7x32xbf16, #tpu.memory_space<vmem>>, vector<2x7x7x32xbf16>,
    %cst_29 = arith.constant 0.000000e+00 : f32
    %25 = vector.broadcast %cst_29 : f32 to vector<50x32xf32>
    %c0_30 = arith.constant 0 : index
    %c0_31 = arith.constant 0 : index
    %c0_32 = arith.constant 0 : index
    %c0_33 = arith.constant 0 : index
    %26 = vector.load %arg11[%c0_30, %c0_31, %c0_32, %c0_33] : memref<2x7x7x32xbf16, #tpu.memory_space<vmem>>, vector<2x5x5x32xbf16>
    %c0_34 = arith.constant 0 : index
    %c0_35 = arith.constant 0 : index
    %c1_36 = arith.constant 1 : index
    %c0_37 = arith.constant 0 : index
    %27 = vector.load %arg11[%c0_34, %c0_35, %c1_36, %c0_37] : memref<2x7x7x32xbf16, #tpu.memory_space<vmem>>, vector<2x5x5x32xbf16>
    %c0_38 = arith.constant 0 : index
    %c0_39 = arith.constant 0 : index
    %c2 = arith.constant 2 : index
    %c0_40 = arith.constant 0 : index
    %28 = vector.load %arg11[%c0_38, %c0_39, %c2, %c0_40] : memref<2x7x7x32xbf16, #tpu.memory_space<vmem>>, vector<2x5x5x32xbf16>
    %29 = tpu.concatenate %26, %27, %28 in 3 : vector<2x5x5x32xbf16>, vector<2x5x5x32xbf16>, vector<2x5x5x32xbf16> -> vector<2x5x5x96xbf16>
    %30 = vector.shape_cast %29 : vector<2x5x5x96xbf16> to vector<50x96xbf16>
    %c0_41 = arith.constant 0 : index
    %c0_42 = arith.constant 0 : index
    %c0_43 = arith.constant 0 : index
    %31 = vector.load %arg4[%c0_41, %c0_42, %c0_43] : memref<3x96x32xbf16, #tpu.memory_space<vmem>>, vector<1x96x32xbf16>
    %32 = vector.shape_cast %31 : vector<1x96x32xbf16> to vector<96x32xbf16>
    %cst_44 = arith.constant dense<0.000000e+00> : vector<50x32xf32>
    %33 = tpu.matmul %30, %32, %cst_44 {dimension_numbers = #tpu.dot_dimension_numbers<[1], [0], [0], [1], [0, 0, 1, 1], [], []>} : vector<50x96xbf16>, vector<96x32xbf16>, vector<50x32xf32> -> vector<50x32xf32>
    %34 = arith.addf %25, %33 : vector<50x32xf32>
    %c0_45 = arith.constant 0 : index
    %c1_46 = arith.constant 1 : index
    %c0_47 = arith.constant 0 : index
    %c0_48 = arith.constant 0 : index
    %35 = vector.load %arg11[%c0_45, %c1_46, %c0_47, %c0_48] : memref<2x7x7x32xbf16, #tpu.memory_space<vmem>>, vector<2x5x5x32xbf16>
    %c0_49 = arith.constant 0 : index
    %c1_50 = arith.constant 1 : index
    %c1_51 = arith.constant 1 : index
    %c0_52 = arith.constant 0 : index
    %36 = vector.load %arg11[%c0_49, %c1_50, %c1_51, %c0_52] : memref<2x7x7x32xbf16, #tpu.memory_space<vmem>>, vector<2x5x5x32xbf16>
    %c0_53 = arith.constant 0 : index
    %c1_54 = arith.constant 1 : index
    %c2_55 = arith.constant 2 : index
    %c0_56 = arith.constant 0 : index
    %37 = vector.load %arg11[%c0_53, %c1_54, %c2_55, %c0_56] : memref<2x7x7x32xbf16, #tpu.memory_space<vmem>>, vector<2x5x5x32xbf16>
    %38 = tpu.concatenate %35, %36, %37 in 3 : vector<2x5x5x32xbf16>, vector<2x5x5x32xbf16>, vector<2x5x5x32xbf16> -> vector<2x5x5x96xbf16>
    %39 = vector.shape_cast %38 : vector<2x5x5x96xbf16> to vector<50x96xbf16>
    %c1_57 = arith.constant 1 : index
    %c0_58 = arith.constant 0 : index
    %c0_59 = arith.constant 0 : index
    %40 = vector.load %arg4[%c1_57, %c0_58, %c0_59] : memref<3x96x32xbf16, #tpu.memory_space<vmem>>, vector<1x96x32xbf16>
    %41 = vector.shape_cast %40 : vector<1x96x32xbf16> to vector<96x32xbf16>
    %cst_60 = arith.constant dense<0.000000e+00> : vector<50x32xf32>
    %42 = tpu.matmul %39, %41, %cst_60 {dimension_numbers = #tpu.dot_dimension_numbers<[1], [0], [0], [1], [0, 0, 1, 1], [], []>} : vector<50x96xbf16>, vector<96x32xbf16>, vector<50x32xf32> -> vector<50x32xf32>
    %43 = arith.addf %34, %42 : vector<50x32xf32>
    %c0_61 = arith.constant 0 : index
    %c2_62 = arith.constant 2 : index
    %c0_63 = arith.constant 0 : index
    %c0_64 = arith.constant 0 : index
    %44 = vector.load %arg11[%c0_61, %c2_62, %c0_63, %c0_64] : memref<2x7x7x32xbf16, #tpu.memory_space<vmem>>, vector<2x5x5x32xbf16>
    %c0_65 = arith.constant 0 : index
    %c2_66 = arith.constant 2 : index
    %c1_67 = arith.constant 1 : index
    %c0_68 = arith.constant 0 : index
    %45 = vector.load %arg11[%c0_65, %c2_66, %c1_67, %c0_68] : memref<2x7x7x32xbf16, #tpu.memory_space<vmem>>, vector<2x5x5x32xbf16>
    %c0_69 = arith.constant 0 : index
    %c2_70 = arith.constant 2 : index
    %c2_71 = arith.constant 2 : index
    %c0_72 = arith.constant 0 : index
    %46 = vector.load %arg11[%c0_69, %c2_70, %c2_71, %c0_72] : memref<2x7x7x32xbf16, #tpu.memory_space<vmem>>, vector<2x5x5x32xbf16>
    %47 = tpu.concatenate %44, %45, %46 in 3 : vector<2x5x5x32xbf16>, vector<2x5x5x32xbf16>, vector<2x5x5x32xbf16> -> vector<2x5x5x96xbf16>
    %48 = vector.shape_cast %47 : vector<2x5x5x96xbf16> to vector<50x96xbf16>
    %c2_73 = arith.constant 2 : index
    %c0_74 = arith.constant 0 : index
    %c0_75 = arith.constant 0 : index
    %49 = vector.load %arg4[%c2_73, %c0_74, %c0_75] : memref<3x96x32xbf16, #tpu.memory_space<vmem>>, vector<1x96x32xbf16>
    %50 = vector.shape_cast %49 : vector<1x96x32xbf16> to vector<96x32xbf16>
    %cst_76 = arith.constant dense<0.000000e+00> : vector<50x32xf32>
    %51 = tpu.matmul %48, %50, %cst_76 {dimension_numbers = #tpu.dot_dimension_numbers<[1], [0], [0], [1], [0, 0, 1, 1], [], []>} : vector<50x96xbf16>, vector<96x32xbf16>, vector<50x32xf32> -> vector<50x32xf32>
    %52 = arith.addf %43, %51 : vector<50x32xf32>
    %c0_77 = arith.constant 0 : index
    %c0_78 = arith.constant 0 : index
    %53 = vector.load %arg5[%c0_77, %c0_78] : memref<1x32xf32, #tpu.memory_space<vmem>>, vector<1x32xf32>
    %54 = vector.broadcast %53 : vector<1x32xf32> to vector<50x32xf32>
    %55 = arith.addf %52, %54 : vector<50x32xf32>
    %cst_79 = arith.constant 0.000000e+00 : f32
    %56 = vector.broadcast %cst_79 : f32 to vector<50x32xf32>
    %57 = arith.maximumf %55, %56 : vector<50x32xf32>
    %58 = vector.shape_cast %57 : vector<50x32xf32> to vector<2x5x5x32xf32>
    %59 = arith.truncf %58 : vector<2x5x5x32xf32> to vector<2x5x5x32xbf16>
    %c0_80 = arith.constant 0 : index
    %c0_81 = arith.constant 0 : index
    %c0_82 = arith.constant 0 : index
    %c0_83 = arith.constant 0 : index
    %60 = vector.load %arg12[%c0_80, %c0_81, %c0_82, %c0_83] : memref<2x5x5x32xbf16, #tpu.memory_space<vmem>>, vector<2x5x5x32xbf16>
    tpu.vector_store %arg12[%c0_80, %c0_81, %c0_82, %c0_83], %59 {strides = array<i32>} : memref<2x5x5x32xbf16, #tpu.memory_space<vmem>>, vector<2x5x5x32xbf16>,
    %cst_84 = arith.constant 0.000000e+00 : f32
    %61 = vector.broadcast %cst_84 : f32 to vector<18x32xf32>
    %c0_85 = arith.constant 0 : index
    %c0_86 = arith.constant 0 : index
    %c0_87 = arith.constant 0 : index
    %c0_88 = arith.constant 0 : index
    %62 = vector.load %arg12[%c0_85, %c0_86, %c0_87, %c0_88] : memref<2x5x5x32xbf16, #tpu.memory_space<vmem>>, vector<2x3x3x32xbf16>
    %c0_89 = arith.constant 0 : index
    %c0_90 = arith.constant 0 : index
    %c1_91 = arith.constant 1 : index
    %c0_92 = arith.constant 0 : index
    %63 = vector.load %arg12[%c0_89, %c0_90, %c1_91, %c0_92] : memref<2x5x5x32xbf16, #tpu.memory_space<vmem>>, vector<2x3x3x32xbf16>
    %c0_93 = arith.constant 0 : index
    %c0_94 = arith.constant 0 : index
    %c2_95 = arith.constant 2 : index
    %c0_96 = arith.constant 0 : index
    %64 = vector.load %arg12[%c0_93, %c0_94, %c2_95, %c0_96] : memref<2x5x5x32xbf16, #tpu.memory_space<vmem>>, vector<2x3x3x32xbf16>
    %65 = tpu.concatenate %62, %63, %64 in 3 : vector<2x3x3x32xbf16>, vector<2x3x3x32xbf16>, vector<2x3x3x32xbf16> -> vector<2x3x3x96xbf16>
    %66 = vector.shape_cast %65 : vector<2x3x3x96xbf16> to vector<18x96xbf16>
    %c0_97 = arith.constant 0 : index
    %c0_98 = arith.constant 0 : index
    %c0_99 = arith.constant 0 : index
    %67 = vector.load %arg6[%c0_97, %c0_98, %c0_99] : memref<3x96x32xbf16, #tpu.memory_space<vmem>>, vector<1x96x32xbf16>
    %68 = vector.shape_cast %67 : vector<1x96x32xbf16> to vector<96x32xbf16>
    %cst_100 = arith.constant dense<0.000000e+00> : vector<18x32xf32>
    %69 = tpu.matmul %66, %68, %cst_100 {dimension_numbers = #tpu.dot_dimension_numbers<[1], [0], [0], [1], [0, 0, 1, 1], [], []>} : vector<18x96xbf16>, vector<96x32xbf16>, vector<18x32xf32> -> vector<18x32xf32>
    %70 = arith.addf %61, %69 : vector<18x32xf32>
    %c0_101 = arith.constant 0 : index
    %c1_102 = arith.constant 1 : index
    %c0_103 = arith.constant 0 : index
    %c0_104 = arith.constant 0 : index
    %71 = vector.load %arg12[%c0_101, %c1_102, %c0_103, %c0_104] : memref<2x5x5x32xbf16, #tpu.memory_space<vmem>>, vector<2x3x3x32xbf16>
    %c0_105 = arith.constant 0 : index
    %c1_106 = arith.constant 1 : index
    %c1_107 = arith.constant 1 : index
    %c0_108 = arith.constant 0 : index
    %72 = vector.load %arg12[%c0_105, %c1_106, %c1_107, %c0_108] : memref<2x5x5x32xbf16, #tpu.memory_space<vmem>>, vector<2x3x3x32xbf16>
    %c0_109 = arith.constant 0 : index
    %c1_110 = arith.constant 1 : index
    %c2_111 = arith.constant 2 : index
    %c0_112 = arith.constant 0 : index
    %73 = vector.load %arg12[%c0_109, %c1_110, %c2_111, %c0_112] : memref<2x5x5x32xbf16, #tpu.memory_space<vmem>>, vector<2x3x3x32xbf16>
    %74 = tpu.concatenate %71, %72, %73 in 3 : vector<2x3x3x32xbf16>, vector<2x3x3x32xbf16>, vector<2x3x3x32xbf16> -> vector<2x3x3x96xbf16>
    %75 = vector.shape_cast %74 : vector<2x3x3x96xbf16> to vector<18x96xbf16>
    %c1_113 = arith.constant 1 : index
    %c0_114 = arith.constant 0 : index
    %c0_115 = arith.constant 0 : index
    %76 = vector.load %arg6[%c1_113, %c0_114, %c0_115] : memref<3x96x32xbf16, #tpu.memory_space<vmem>>, vector<1x96x32xbf16>
    %77 = vector.shape_cast %76 : vector<1x96x32xbf16> to vector<96x32xbf16>
    %cst_116 = arith.constant dense<0.000000e+00> : vector<18x32xf32>
    %78 = tpu.matmul %75, %77, %cst_116 {dimension_numbers = #tpu.dot_dimension_numbers<[1], [0], [0], [1], [0, 0, 1, 1], [], []>} : vector<18x96xbf16>, vector<96x32xbf16>, vector<18x32xf32> -> vector<18x32xf32>
    %79 = arith.addf %70, %78 : vector<18x32xf32>
    %c0_117 = arith.constant 0 : index
    %c2_118 = arith.constant 2 : index
    %c0_119 = arith.constant 0 : index
    %c0_120 = arith.constant 0 : index
    %80 = vector.load %arg12[%c0_117, %c2_118, %c0_119, %c0_120] : memref<2x5x5x32xbf16, #tpu.memory_space<vmem>>, vector<2x3x3x32xbf16>
    %c0_121 = arith.constant 0 : index
    %c2_122 = arith.constant 2 : index
    %c1_123 = arith.constant 1 : index
    %c0_124 = arith.constant 0 : index
    %81 = vector.load %arg12[%c0_121, %c2_122, %c1_123, %c0_124] : memref<2x5x5x32xbf16, #tpu.memory_space<vmem>>, vector<2x3x3x32xbf16>
    %c0_125 = arith.constant 0 : index
    %c2_126 = arith.constant 2 : index
    %c2_127 = arith.constant 2 : index
    %c0_128 = arith.constant 0 : index
    %82 = vector.load %arg12[%c0_125, %c2_126, %c2_127, %c0_128] : memref<2x5x5x32xbf16, #tpu.memory_space<vmem>>, vector<2x3x3x32xbf16>
    %83 = tpu.concatenate %80, %81, %82 in 3 : vector<2x3x3x32xbf16>, vector<2x3x3x32xbf16>, vector<2x3x3x32xbf16> -> vector<2x3x3x96xbf16>
    %84 = vector.shape_cast %83 : vector<2x3x3x96xbf16> to vector<18x96xbf16>
    %c2_129 = arith.constant 2 : index
    %c0_130 = arith.constant 0 : index
    %c0_131 = arith.constant 0 : index
    %85 = vector.load %arg6[%c2_129, %c0_130, %c0_131] : memref<3x96x32xbf16, #tpu.memory_space<vmem>>, vector<1x96x32xbf16>
    %86 = vector.shape_cast %85 : vector<1x96x32xbf16> to vector<96x32xbf16>
    %cst_132 = arith.constant dense<0.000000e+00> : vector<18x32xf32>
    %87 = tpu.matmul %84, %86, %cst_132 {dimension_numbers = #tpu.dot_dimension_numbers<[1], [0], [0], [1], [0, 0, 1, 1], [], []>} : vector<18x96xbf16>, vector<96x32xbf16>, vector<18x32xf32> -> vector<18x32xf32>
    %88 = arith.addf %79, %87 : vector<18x32xf32>
    %c0_133 = arith.constant 0 : index
    %c0_134 = arith.constant 0 : index
    %89 = vector.load %arg7[%c0_133, %c0_134] : memref<1x32xf32, #tpu.memory_space<vmem>>, vector<1x32xf32>
    %90 = vector.broadcast %89 : vector<1x32xf32> to vector<18x32xf32>
    %91 = arith.addf %88, %90 : vector<18x32xf32>
    %cst_135 = arith.constant 0.000000e+00 : f32
    %92 = vector.broadcast %cst_135 : f32 to vector<18x32xf32>
    %93 = arith.maximumf %91, %92 : vector<18x32xf32>
    %94 = vector.shape_cast %93 : vector<18x32xf32> to vector<2x3x3x32xf32>
    %95 = arith.truncf %94 : vector<2x3x3x32xf32> to vector<2x3x3x32xbf16>
    %c0_136 = arith.constant 0 : index
    %c0_137 = arith.constant 0 : index
    %c0_138 = arith.constant 0 : index
    %c0_139 = arith.constant 0 : index
    %96 = vector.load %arg11[%c0_136, %c0_137, %c0_138, %c0_139] : memref<2x7x7x32xbf16, #tpu.memory_space<vmem>>, vector<2x3x3x32xbf16>
    tpu.vector_store %arg11[%c0_136, %c0_137, %c0_138, %c0_139], %95 {strides = array<i32>} : memref<2x7x7x32xbf16, #tpu.memory_space<vmem>>, vector<2x3x3x32xbf16>,
    %cst_140 = arith.constant 0.000000e+00 : f32
    %97 = vector.broadcast %cst_140 : f32 to vector<2x32xf32>
    %c0_141 = arith.constant 0 : index
    %c0_142 = arith.constant 0 : index
    %c0_143 = arith.constant 0 : index
    %c0_144 = arith.constant 0 : index
    %98 = vector.load %arg11[%c0_141, %c0_142, %c0_143, %c0_144] : memref<2x7x7x32xbf16, #tpu.memory_space<vmem>>, vector<2x1x1x32xbf16>
    %c0_145 = arith.constant 0 : index
    %c0_146 = arith.constant 0 : index
    %c1_147 = arith.constant 1 : index
    %c0_148 = arith.constant 0 : index
    %99 = vector.load %arg11[%c0_145, %c0_146, %c1_147, %c0_148] : memref<2x7x7x32xbf16, #tpu.memory_space<vmem>>, vector<2x1x1x32xbf16>
    %c0_149 = arith.constant 0 : index
    %c0_150 = arith.constant 0 : index
    %c2_151 = arith.constant 2 : index
    %c0_152 = arith.constant 0 : index
    %100 = vector.load %arg11[%c0_149, %c0_150, %c2_151, %c0_152] : memref<2x7x7x32xbf16, #tpu.memory_space<vmem>>, vector<2x1x1x32xbf16>
    %101 = tpu.concatenate %98, %99, %100 in 3 : vector<2x1x1x32xbf16>, vector<2x1x1x32xbf16>, vector<2x1x1x32xbf16> -> vector<2x1x1x96xbf16>
    %102 = vector.shape_cast %101 : vector<2x1x1x96xbf16> to vector<2x96xbf16>
    %c0_153 = arith.constant 0 : index
    %c0_154 = arith.constant 0 : index
    %c0_155 = arith.constant 0 : index
    %103 = vector.load %arg8[%c0_153, %c0_154, %c0_155] : memref<3x96x32xbf16, #tpu.memory_space<vmem>>, vector<1x96x32xbf16>
    %104 = vector.shape_cast %103 : vector<1x96x32xbf16> to vector<96x32xbf16>
    %cst_156 = arith.constant dense<0.000000e+00> : vector<2x32xf32>
    %105 = tpu.matmul %102, %104, %cst_156 {dimension_numbers = #tpu.dot_dimension_numbers<[1], [0], [0], [1], [0, 0, 1, 1], [], []>} : vector<2x96xbf16>, vector<96x32xbf16>, vector<2x32xf32> -> vector<2x32xf32>
    %106 = arith.addf %97, %105 : vector<2x32xf32>
    %c0_157 = arith.constant 0 : index
    %c1_158 = arith.constant 1 : index
    %c0_159 = arith.constant 0 : index
    %c0_160 = arith.constant 0 : index
    %107 = vector.load %arg11[%c0_157, %c1_158, %c0_159, %c0_160] : memref<2x7x7x32xbf16, #tpu.memory_space<vmem>>, vector<2x1x1x32xbf16>
    %c0_161 = arith.constant 0 : index
    %c1_162 = arith.constant 1 : index
    %c1_163 = arith.constant 1 : index
    %c0_164 = arith.constant 0 : index
    %108 = vector.load %arg11[%c0_161, %c1_162, %c1_163, %c0_164] : memref<2x7x7x32xbf16, #tpu.memory_space<vmem>>, vector<2x1x1x32xbf16>
    %c0_165 = arith.constant 0 : index
    %c1_166 = arith.constant 1 : index
    %c2_167 = arith.constant 2 : index
    %c0_168 = arith.constant 0 : index
    %109 = vector.load %arg11[%c0_165, %c1_166, %c2_167, %c0_168] : memref<2x7x7x32xbf16, #tpu.memory_space<vmem>>, vector<2x1x1x32xbf16>
    %110 = tpu.concatenate %107, %108, %109 in 3 : vector<2x1x1x32xbf16>, vector<2x1x1x32xbf16>, vector<2x1x1x32xbf16> -> vector<2x1x1x96xbf16>
    %111 = vector.shape_cast %110 : vector<2x1x1x96xbf16> to vector<2x96xbf16>
    %c1_169 = arith.constant 1 : index
    %c0_170 = arith.constant 0 : index
    %c0_171 = arith.constant 0 : index
    %112 = vector.load %arg8[%c1_169, %c0_170, %c0_171] : memref<3x96x32xbf16, #tpu.memory_space<vmem>>, vector<1x96x32xbf16>
    %113 = vector.shape_cast %112 : vector<1x96x32xbf16> to vector<96x32xbf16>
    %cst_172 = arith.constant dense<0.000000e+00> : vector<2x32xf32>
    %114 = tpu.matmul %111, %113, %cst_172 {dimension_numbers = #tpu.dot_dimension_numbers<[1], [0], [0], [1], [0, 0, 1, 1], [], []>} : vector<2x96xbf16>, vector<96x32xbf16>, vector<2x32xf32> -> vector<2x32xf32>
    %115 = arith.addf %106, %114 : vector<2x32xf32>
    %c0_173 = arith.constant 0 : index
    %c2_174 = arith.constant 2 : index
    %c0_175 = arith.constant 0 : index
    %c0_176 = arith.constant 0 : index
    %116 = vector.load %arg11[%c0_173, %c2_174, %c0_175, %c0_176] : memref<2x7x7x32xbf16, #tpu.memory_space<vmem>>, vector<2x1x1x32xbf16>
    %c0_177 = arith.constant 0 : index
    %c2_178 = arith.constant 2 : index
    %c1_179 = arith.constant 1 : index
    %c0_180 = arith.constant 0 : index
    %117 = vector.load %arg11[%c0_177, %c2_178, %c1_179, %c0_180] : memref<2x7x7x32xbf16, #tpu.memory_space<vmem>>, vector<2x1x1x32xbf16>
    %c0_181 = arith.constant 0 : index
    %c2_182 = arith.constant 2 : index
    %c2_183 = arith.constant 2 : index
    %c0_184 = arith.constant 0 : index
    %118 = vector.load %arg11[%c0_181, %c2_182, %c2_183, %c0_184] : memref<2x7x7x32xbf16, #tpu.memory_space<vmem>>, vector<2x1x1x32xbf16>
    %119 = tpu.concatenate %116, %117, %118 in 3 : vector<2x1x1x32xbf16>, vector<2x1x1x32xbf16>, vector<2x1x1x32xbf16> -> vector<2x1x1x96xbf16>
    %120 = vector.shape_cast %119 : vector<2x1x1x96xbf16> to vector<2x96xbf16>
    %c2_185 = arith.constant 2 : index
    %c0_186 = arith.constant 0 : index
    %c0_187 = arith.constant 0 : index
    %121 = vector.load %arg8[%c2_185, %c0_186, %c0_187] : memref<3x96x32xbf16, #tpu.memory_space<vmem>>, vector<1x96x32xbf16>
    %122 = vector.shape_cast %121 : vector<1x96x32xbf16> to vector<96x32xbf16>
    %cst_188 = arith.constant dense<0.000000e+00> : vector<2x32xf32>
    %123 = tpu.matmul %120, %122, %cst_188 {dimension_numbers = #tpu.dot_dimension_numbers<[1], [0], [0], [1], [0, 0, 1, 1], [], []>} : vector<2x96xbf16>, vector<96x32xbf16>, vector<2x32xf32> -> vector<2x32xf32>
    %124 = arith.addf %115, %123 : vector<2x32xf32>
    %c0_189 = arith.constant 0 : index
    %c0_190 = arith.constant 0 : index
    %125 = vector.load %arg9[%c0_189, %c0_190] : memref<1x32xf32, #tpu.memory_space<vmem>>, vector<1x32xf32>
    %126 = vector.broadcast %125 : vector<1x32xf32> to vector<2x32xf32>
    %127 = arith.addf %124, %126 : vector<2x32xf32>
    %cst_191 = arith.constant 0.000000e+00 : f32
    %128 = vector.broadcast %cst_191 : f32 to vector<2x32xf32>
    %129 = arith.maximumf %127, %128 : vector<2x32xf32>
    %130 = vector.shape_cast %129 : vector<2x32xf32> to vector<2x1x1x32xf32>
    %131 = vector.shape_cast %130 : vector<2x1x1x32xf32> to vector<2x32xf32>
    %c0_192 = arith.constant 0 : index
    %c0_193 = arith.constant 0 : index
    %c0_194 = arith.constant 0 : index
    %132 = vector.load %arg10[%c0_192, %c0_193, %c0_194] : memref<1x2x32xf32, #tpu.memory_space<vmem>>, vector<1x2x32xf32>
    %133 = vector.shape_cast %132 : vector<1x2x32xf32> to vector<2x32xf32>
    %134 = vector.shape_cast %131 : vector<2x32xf32> to vector<1x2x32xf32>
    tpu.vector_store %arg10[%c0_192, %c0_193, %c0_194], %134 {strides = array<i32>} : memref<1x2x32xf32, #tpu.memory_space<vmem>>, vector<1x2x32xf32>,
    return
  }
  func.func @transform_0(%arg0: i32) -> (i32, i32, i32, i32) {
    %c0_i32 = arith.constant 0 : i32
    %c0_i32_0 = arith.constant 0 : i32
    %c0_i32_1 = arith.constant 0 : i32
    %c0_i32_2 = arith.constant 0 : i32
    return %arg0, %c0_i32, %c0_i32_0, %c0_i32_1 : i32, i32, i32, i32
  }
  func.func @transform_1(%arg0: i32) -> (i32, i32, i32) {
    %c0_i32 = arith.constant 0 : i32
    %c0_i32_0 = arith.constant 0 : i32
    %c0_i32_1 = arith.constant 0 : i32
    %c0_i32_2 = arith.constant 0 : i32
    return %c0_i32, %c0_i32_0, %c0_i32_1 : i32, i32, i32
  }
  func.func @transform_2(%arg0: i32) -> (i32, i32) {
    %c0_i32 = arith.constant 0 : i32
    %c0_i32_0 = arith.constant 0 : i32
    %c0_i32_1 = arith.constant 0 : i32
    return %c0_i32, %c0_i32_0 : i32, i32
  }
  func.func @transform_3(%arg0: i32) -> (i32, i32, i32) {
    %c0_i32 = arith.constant 0 : i32
    %c0_i32_0 = arith.constant 0 : i32
    %c0_i32_1 = arith.constant 0 : i32
    %c0_i32_2 = arith.constant 0 : i32
    return %c0_i32, %c0_i32_0, %c0_i32_1 : i32, i32, i32
  }
  func.func @transform_4(%arg0: i32) -> (i32, i32) {
    %c0_i32 = arith.constant 0 : i32
    %c0_i32_0 = arith.constant 0 : i32
    %c0_i32_1 = arith.constant 0 : i32
    return %c0_i32, %c0_i32_0 : i32, i32
  }
  func.func @transform_5(%arg0: i32) -> (i32, i32, i32) {
    %c0_i32 = arith.constant 0 : i32
    %c0_i32_0 = arith.constant 0 : i32
    %c0_i32_1 = arith.constant 0 : i32
    %c0_i32_2 = arith.constant 0 : i32
    return %c0_i32, %c0_i32_0, %c0_i32_1 : i32, i32, i32
  }
  func.func @transform_6(%arg0: i32) -> (i32, i32) {
    %c0_i32 = arith.constant 0 : i32
    %c0_i32_0 = arith.constant 0 : i32
    %c0_i32_1 = arith.constant 0 : i32
    return %c0_i32, %c0_i32_0 : i32, i32
  }
  func.func @transform_7(%arg0: i32) -> (i32, i32, i32) {
    %c0_i32 = arith.constant 0 : i32
    %c0_i32_0 = arith.constant 0 : i32
    %c0_i32_1 = arith.constant 0 : i32
    %c0_i32_2 = arith.constant 0 : i32
    return %c0_i32, %c0_i32_0, %c0_i32_1 : i32, i32, i32
  }
  func.func @transform_8(%arg0: i32) -> (i32, i32) {
    %c0_i32 = arith.constant 0 : i32
    %c0_i32_0 = arith.constant 0 : i32
    %c0_i32_1 = arith.constant 0 : i32
    return %c0_i32, %c0_i32_0 : i32, i32
  }
  func.func @transform_9(%arg0: i32) -> (i32, i32, i32) {
    %c0_i32 = arith.constant 0 : i32
    %c0_i32_0 = arith.constant 0 : i32
    %c0_i32_1 = arith.constant 0 : i32
    return %arg0, %c0_i32, %c0_i32_0 : i32, i32, i32
  }
}

</mosaic_0001>

<bundles_post_ra>
// kernel: encoder_forward.1
= control target key start
LH: loop header
LB: loop body
LE: loop exit
PB: predicated region body
PF: predicated region fallthrough
CT: control target
= control target key end

     0   :  { %s10321_s10 = smov 16   ;;  %vm10323_vm0 = vmmov 0   ;;  %s12604_s0 = inlined_call_operand.vmem [shape: bf16[2,8,8,16], index: 0, kind: input, shape index: {}]   ;;  %s12605_s1 = inlined_call_operand.vmem [shape: bf16[2,32,32], index: 1, kind: input, shape index: {}]   ;;  %s12606_s2 = inlined_call_operand.vmem [shape: f32[1,32], index: 2, kind: input, shape index: {}]   ;;  %s12607_s3 = inlined_call_operand.vmem [shape: bf16[3,96,32], index: 3, kind: input, shape index: {}]   ;;  %s12608_s4 = inlined_call_operand.vmem [shape: f32[1,32], index: 4, kind: input, shape index: {}]   ;;  %s12609_s5 = inlined_call_operand.vmem [shape: bf16[3,96,32], index: 5, kind: input, shape index: {}]   ;;  %s12610_s6 = inlined_call_operand.vmem [shape: f32[1,32], index: 6, kind: input, shape index: {}]   ;;  %s12611_s7 = inlined_call_operand.vmem [shape: bf16[3,96,32], index: 7, kind: input, shape index: {}]   ;;  %s12612_s8 = inlined_call_operand.vmem [shape: f32[1,32], index: 8, kind: input, shape index: {}]   ;;  %s12613_s9 = inlined_call_operand.hbm [shape: f32[1,2,32], index: 9, kind: output, shape index: {}]  }
   0x1   :  { %v10381_v0 = vld [vmem:[%s12604_s0 + $0x3c] sm:$0xf]  ;;  %v10386_v1 = vld [vmem:[%s12604_s0 + $0x4] sm:$0xf]  ;;  %v10400_v5 = vld [vmem:[%s12604_s0] sm:$0xf] }
   0x2   :  { %v9341_v2 = vcombine.low %v10381_v0, %v10381_v0  ;;  %v9301_v3 = vcombine.low %v10386_v1, %v10386_v1  ;;  %v10395_v4 = vld [vmem:[%s12604_s0 + $0x4] sm:$0xf]  ;;  %v10405_v6 = vld [vmem:[%s12604_s0 + $0x8] sm:$0xf]  ;;  %v9300_v8 = vcombine.low %v10400_v5, %v10400_v5  ;;  %v10421_v15 = vld [vmem:[%s12604_s0 + $0xc] sm:$0xf] }
   0x3   :  { %v9328_v7 = vcombine.low %v10395_v4, %v10395_v4  ;;  %v9302_v9 = vcombine.low %v10405_v6, %v10405_v6  ;;  %v10416_v10 = vld [vmem:[%s12604_s0 + $0x8] sm:$0xf]  ;;  %v10426_v20 = vld [vmem:[%s12604_s0 + $0xc] sm:$0xf]  ;;  %v9303_v28 = vcombine.low %v10421_v15, %v10421_v15  ;;  %v10437_v33 = vld [vmem:[%s12604_s0 + $0x10] sm:$0xf] }
   0x4   :  { %v860_v11 = vshrl.u32 %v9341_v2, 16  ;;  %v862_v12 = vshll.u32 %v9341_v2, 16  ;;  %v98_v13 = vshrl.u32 %v9301_v3, 16  ;;  %v100_v14 = vshll.u32 %v9301_v3, 16  ;;  %v10442_v34 = vld [vmem:[%s12604_s0 + $0x10] sm:$0xf] }
   0x5   :  { %v769_v16 = vshrl.u32 %v9328_v7, 16  ;;  %v771_v17 = vshll.u32 %v9328_v7, 16  ;;  %v91_v18 = vshrl.u32 %v9300_v8, 16  ;;  %v93_v19 = vshll.u32 %v9300_v8, 16  ;;  %v10447_v36 = vld [vmem:[%s12604_s0 + $0x14] sm:$0xf] }
   0x6   :  { %v864_v21 = vrot.slane %v862_v12, 1  ;;  %v102_v22 = vrot.slane %v100_v14, 1  ;;  %v105_v23 = vshrl.u32 %v9302_v9, 16  ;;  %v107_v24 = vshll.u32 %v9302_v9, 16  ;;  %v10458_v45 = vld [vmem:[%s12604_s0 + $0x14] sm:$0xf] }
   0x7   :  { %v773_v25 = vrot.slane %v771_v17, 1  ;;  %v95_v26 = vrot.slane %v93_v19, 1  ;;  %v9329_v27 = vcombine.low %v10416_v10, %v10416_v10  ;;  %v9330_v32 = vcombine.low %v10426_v20, %v10426_v20  ;;  %v10465_v52 = vld [vmem:[%s12604_s0 + $0x18] sm:$0xf]  ;;  %v10481_v60 = vld [vmem:[%s12604_s0 + $0x20] sm:$0xf] }
   0x8   :  { %v865_v29 = vor.u32 %v864_v21, %v860_v11  ;;  %v103_v30 = vor.u32 %v102_v22, %v98_v13  ;;  %v109_v31 = vrot.slane %v107_v24, 1  ;;  %v114_v40 = vshll.u32 %v9303_v28, 16  ;;  %v10474_v57 = vld [vmem:[%s12604_s0 + $0x18] sm:$0xf]  ;;  %v10488_v3 = vld [vmem:[%s12604_s0 + $0x1c] sm:$0xf] }
   0x9   :  { %v778_v35 = vshll.u32 %v9329_v27, 16  ;;  %v774_v37 = vor.u32 %v773_v25, %v769_v16  ;;  %v96_v38 = vor.u32 %v95_v26, %v91_v18  ;;  %v776_v39 = vshrl.u32 %v9329_v27, 16  ;;  %v10497_v17 = vld [vmem:[%s12604_s0 + $0x24] sm:$0xf]  ;;  %v10509_v22 = vld [vmem:[%s12604_s0 + $0x28] sm:$0xf] }
   0xa   :  { %892 = vrot.lane.b32.xlu0 %v865_v29, %s10321_s10  ;;  %190 = vrot.lane.b32.xlu1 %v103_v30, %s10321_s10  ;;  %v785_v42 = vshll.u32 %v9330_v32, 16  ;;  %v9304_v43 = vcombine.low %v10437_v33, %v10437_v33  ;;  %v9331_v44 = vcombine.low %v10442_v34, %v10442_v34  ;;  %v110_v46 = vor.u32 %v109_v31, %v105_v23  ;;  %v10504_v21 = vld [vmem:[%s12604_s0 + $0x24] sm:$0xf]  ;;  %v10516_v27 = vld [vmem:[%s12604_s0 + $0x28] sm:$0xf] }
   0xb   :  { %v780_v41 = vrot.slane %v778_v35, 1  ;;  %v9305_v47 = vcombine.low %v10447_v36, %v10447_v36  ;;  %v112_v48 = vshrl.u32 %v9303_v28, 16  ;;  %v116_v49 = vrot.slane %v114_v40, 1  ;;  %v44_v28 = vld [vmem:[%s12604_s0 + $0x2c] sm:$0xf] }
   0xc   :  { %v783_v50 = vshrl.u32 %v9330_v32, 16  ;;  %v121_v51 = vshll.u32 %v9304_v43, 16  ;;  %v787_v54 = vrot.slane %v785_v42, 1  ;;  %v792_v55 = vshll.u32 %v9331_v44, 16  ;;  %v9323_v30 = vld [vmem:[%s12604_s0 + $0x2c] sm:$0xf] }
   0xd   :  { %v781_v53 = vor.u32 %v780_v41, %v776_v39  ;;  %v9332_v56 = vcombine.low %v10458_v45, %v10458_v45  ;;  %v128_v58 = vshll.u32 %v9305_v47, 16  ;;  %v9306_v59 = vcombine.low %v10465_v52, %v10465_v52  ;;  %v45_v31 = vld [vmem:[%s12604_s0 + $0x30] sm:$0xf] }
   0xe   :  { %866 = vrot.lane.b32.xlu1 %v774_v37, %s10321_s10  ;;  %188 = vrot.lane.b32.xlu0 %v96_v38, %s10321_s10  ;;  %v119_v61 = vshrl.u32 %v9304_v43, 16  ;;  %v123_v62 = vrot.slane %v121_v51, 1  ;;  %v790_v63 = vshrl.u32 %v9331_v44, 16  ;;  %v9333_v2 = vcombine.low %v10474_v57, %v10474_v57  ;;  %v9324_v38 = vld [vmem:[%s12604_s0 + $0x30] sm:$0xf] }
   0xf   :  { %v117_v7 = vor.u32 %v116_v49, %v112_v48  ;;  %v788_v8 = vor.u32 %v787_v54, %v783_v50  ;;  %v794_v9 = vrot.slane %v792_v55, 1  ;;  %v799_v11 = vshll.u32 %v9332_v56, 16 }
  0x10   :  { %v126_v12 = vshrl.u32 %v9305_v47, 16  ;;  %v9307_v13 = vcombine.low %v10481_v60, %v10481_v60  ;;  %v130_v14 = vrot.slane %v128_v58, 1  ;;  %v135_v16 = vshll.u32 %v9306_v59, 16 }
  0x11   :  { %v806_v18 = vshll.u32 %v9333_v2, 16  ;;  %v9334_v19 = vcombine.low %v10488_v3, %v10488_v3  ;;  %v124_v23 = vor.u32 %v123_v62, %v119_v61  ;;  %v795_v24 = vor.u32 %v794_v9, %v790_v63  ;;  %v9325_v63 = vld [vmem:[%s12604_s0 + $0x34] sm:$0xf] }
  0x12   :  { %192 = vrot.lane.b32.xlu1 %v110_v46, %s10321_s10  ;;  %868 = vrot.lane.b32.xlu0 %v781_v53, %s10321_s10  ;;  %v797_v25 = vshrl.u32 %v9332_v56, 16  ;;  %v801_v26 = vrot.slane %v799_v11, 1  ;;  %v142_v29 = vshll.u32 %v9307_v13, 16  ;;  %v131_v32 = vor.u32 %v130_v14, %v126_v12  ;;  %v46_v56 = vld [vmem:[%s12604_s0 + $0x34] sm:$0xf] }
  0x13   :  { %v133_v35 = vshrl.u32 %v9306_v59, 16  ;;  %v137_v37 = vrot.slane %v135_v16, 1  ;;  %v804_v39 = vshrl.u32 %v9333_v2, 16  ;;  %v808_v40 = vrot.slane %v806_v18, 1 }
  0x14   :  { %v813_v41 = vshll.u32 %v9334_v19, 16  ;;  %v9335_v42 = vcombine.low %v10497_v17, %v10497_v17  ;;  %v802_v43 = vor.u32 %v801_v26, %v797_v25  ;;  %v9308_v44 = vcombine.low %v10504_v21, %v10504_v21 }
  0x15   :  { %v10538_v46 = vcombine.low %v10509_v22, %v10509_v22  ;;  %v140_v47 = vshrl.u32 %v9307_v13, 16  ;;  %v144_v48 = vrot.slane %v142_v29, 1  ;;  %v10542_v49 = vcombine.low %v10516_v27, %v10516_v27 }
  0x16   :  { %194 = vrot.lane.b32.xlu1 %v117_v7, %s10321_s10  ;;  %870 = vrot.lane.b32.xlu0 %v788_v8, %s10321_s10  ;;  %v10544_v50 = vcombine.low %v44_v28, %v44_v28  ;;  %v138_v51 = vor.u32 %v137_v37, %v133_v35  ;;  %v10546_v53 = vcombine.low %v9323_v30, %v9323_v30  ;;  %v811_v59 = vshrl.u32 %v9334_v19, 16 }
  0x17   :  { %v10548_v54 = vcombine.low %v45_v31, %v45_v31  ;;  %v10550_v55 = vcombine.low %v9324_v38, %v9324_v38  ;;  %v809_v58 = vor.u32 %v808_v40, %v804_v39  ;;  %v815_v61 = vrot.slane %v813_v41, 1  ;;  %v9326_v40 = vld [vmem:[%s12604_s0 + $0x38] sm:$0xf] }
  0x18   :  { %v820_v62 = vshll.u32 %v9335_v42, 16  ;;  %v818_v2 = vshrl.u32 %v9335_v42, 16  ;;  %v147_v7 = vshrl.u32 %v9308_v44, 16  ;;  %v149_v8 = vshll.u32 %v9308_v44, 16 }
  0x19   :  { %v156_v9 = vshll.u32 %v10538_v46, 16  ;;  %v145_v11 = vor.u32 %v144_v48, %v140_v47  ;;  %v827_v12 = vshll.u32 %v10542_v49, 16  ;;  %v163_v13 = vshll.u32 %v10544_v50, 16 }
  0x1a   :  { %196 = vrot.lane.b32.xlu1 %v124_v23, %s10321_s10  ;;  %872 = vrot.lane.b32.xlu0 %v795_v24, %s10321_s10  ;;  %v154_v14 = vshrl.u32 %v10538_v46, 16  ;;  %v834_v16 = vshll.u32 %v10546_v53, 16  ;;  %v170_v18 = vshll.u32 %v10548_v54, 16  ;;  %v841_v19 = vshll.u32 %v10550_v55, 16 }
  0x1b   :  { %v816_v23 = vor.u32 %v815_v61, %v811_v59  ;;  %v822_v24 = vrot.slane %v820_v62, 1  ;;  %v825_v25 = vshrl.u32 %v10542_v49, 16  ;;  %v10568_v26 = vcombine.low %v46_v56, %v46_v56 }
  0x1c   :  { %v151_v28 = vrot.slane %v149_v8, 1  ;;  %v158_v29 = vrot.slane %v156_v9, 1  ;;  %v161_v30 = vshrl.u32 %v10544_v50, 16  ;;  %v9339_v31 = vcombine.low %v9325_v63, %v9325_v63 }
  0x1d   :  { %v829_v35 = vrot.slane %v827_v12, 1  ;;  %v165_v37 = vrot.slane %v163_v13, 1  ;;  %v832_v38 = vshrl.u32 %v10546_v53, 16  ;;  %v168_v39 = vshrl.u32 %v10548_v54, 16  ;;  %v10119_v53 = vld [vmem:[%s12605_s1 + $0x18] sm:$0xff]  }
  0x1e   :  { %198 = vrot.lane.b32.xlu1 %v131_v32, %s10321_s10  ;;  %874 = vrot.lane.b32.xlu0 %v802_v43, %s10321_s10  ;;  %v10118_v32 = vld [vmem:[%s12605_s1 + $0x10] sm:$0xff]   ;;  %v836_v41 = vrot.slane %v834_v16, 1  ;;  %v172_v42 = vrot.slane %v170_v18, 1  ;;  %v839_v43 = vshrl.u32 %v10550_v55, 16  ;;  %v843_v44 = vrot.slane %v841_v19, 1 }
  0x1f   :  { %v175_v46 = vshrl.u32 %v10568_v26, 16  ;;  %v177_v47 = vshll.u32 %v10568_v26, 16  ;;  %v823_v48 = vor.u32 %v822_v24, %v818_v2  ;;  %v152_v49 = vor.u32 %v151_v28, %v147_v7  ;;  %v47_v54 = vld [vmem:[%s12604_s0 + $0x38] sm:$0xf] }
  0x20   :  { %v846_v50 = vshrl.u32 %v9339_v31, 16  ;;  %v10322_v55 = vmov 0.0   ;;  %v9340_v56 = vcombine.low %v9326_v40, %v9326_v40  ;;  %v830_v59 = vor.u32 %v829_v35, %v825_v25 }
  0x21   :  { %10071 = vmatprep.subr.bf16.mxu1 %v10322_v55  ;;  %9879 = vmatprep.mubr.msk.bf16.mxu1 %vm10323_vm0, %v10322_v55  ;;  %v179_v61 = vrot.slane %v177_v47, 1  ;;  %v9313_v63 = vcombine.low %v47_v54, %v47_v54  ;;  %v166_v2 = vor.u32 %v165_v37, %v161_v30  ;;  %v837_v7 = vor.u32 %v836_v41, %v832_v38 }
  0x22   :  { %200 = vrot.lane.b32.xlu1 %v138_v51, %s10321_s10  ;;  %876 = vrot.lane.b32.xlu0 %v809_v58, %s10321_s10  ;;  %v848_v51 = vshll.u32 %v9339_v31, 16  ;;  %v159_v58 = vor.u32 %v158_v29, %v154_v14  ;;  %v853_v62 = vshrl.u32 %v9340_v56, 16  ;;  %v855_v8 = vshll.u32 %v9340_v56, 16 }
  0x23   :  { %10073 = vmatpush3.bf16.msra.mxu1 %v10118_v32  ;;  %9851 = vmatprep.subr.bf16.mxu0 %v10322_v55  ;;  %v182_v9 = vshrl.u32 %v9313_v63, 16  ;;  %v844_v12 = vor.u32 %v843_v44, %v839_v43  ;;  %v184_v14 = vshll.u32 %v9313_v63, 16  ;;  %v180_v16 = vor.u32 %v179_v61, %v175_v46 }
  0x24   :  { %10072 = vmatprep.subr.bf16.mxu1 %v10322_v55  ;;  %9852 = vmatpush3.bf16.msra.mxu0 %v10118_v32  ;;  %v850_v13 = vrot.slane %v848_v51, 1  ;;  %v857_v19 = vrot.slane %v855_v8, 1 }
  0x25   :  { %9853 = vmatprep.subr.bf16.mxu0 %v10322_v55  ;;  %9855 = vmatprep.mubr.msk.bf16.mxu0 %vm10323_vm0, %v10322_v55 }
  0x26   :  { %202 = vrot.lane.b32.xlu1 %v145_v11, %s10321_s10  ;;  %878 = vrot.lane.b32.xlu0 %v816_v23, %s10321_s10  ;;  %v173_v11 = vor.u32 %v172_v42, %v168_v39  ;;  %v851_v18 = vor.u32 %v850_v13, %v846_v50  ;;  %v186_v23 = vrot.slane %v184_v14, 1  ;;  %v858_v24 = vor.u32 %v857_v19, %v853_v62 }
  0x27   :  { %10074 = vmatpush3.bf16.msra.mxu1 %v10119_v53 }
  0x28   :  { %9883 = vmatprep.subr.bf16.mxu1 %v10322_v55  ;;  %9854 = vmatpush3.bf16.msra.mxu0 %v10119_v53  ;;  %v187_v25 = vor.u32 %v186_v23, %v182_v9 }
  0x2a   :  { %880 = vrot.lane.b32.xlu1 %v823_v48, %s10321_s10  ;;  %204 = vrot.lane.b32.xlu0 %v152_v49, %s10321_s10 }
  0x2e   :  { %206 = vrot.lane.b32.xlu1 %v159_v58, %s10321_s10  ;;  %882 = vrot.lane.b32.xlu0 %v830_v59, %s10321_s10 }
  0x32   :  { %208 = vrot.lane.b32.xlu1 %v166_v2, %s10321_s10  ;;  %884 = vrot.lane.b32.xlu0 %v837_v7, %s10321_s10 }
  0x36   :  { %210 = vrot.lane.b32.xlu1 %v173_v11, %s10321_s10  ;;  %886 = vrot.lane.b32.xlu0 %v844_v12, %s10321_s10 }
  0x3a   :  { %212 = vrot.lane.b32.xlu1 %v180_v16, %s10321_s10  ;;  %888 = vrot.lane.b32.xlu0 %v851_v18, %s10321_s10 }
  0x3e   :  { %890 = vrot.lane.b32.xlu1 %v858_v24, %s10321_s10  ;;  %214 = vrot.lane.b32.xlu0 %v187_v25, %s10321_s10 }
  0x3f   :  { %14 = vsyncpa [#allocation5], 0  ;;  %v10324_v26 = vmov 1966171168   ;;  %v276_v29 = vlaneseq  ;;  %vm216_vm1 = vcmask 130048   ;;  %vm1758_vm2 = vcmask 261120  }
  0x40   :  { %v274_v28 = vunpack.c.l.s4 %v10324_v26  ;;  %vm3702_vm3 = vcmask 257024   ;;  %vm3703_vm4 = vsmask.f32 3328  ;;  %s10326_s28 = smov 32   ;;  %vm3977_vm6 = vcmask 523264  }
  0x41   :  { %v277_v31 = vshrl.u32 %v276_v29, 7  ;;  %vm11134_vm5 = vmand %vm3702_vm3, %vm3703_vm4  ;;  %vm5076_vm7 = vcmask 785408   ;;  %vm7064_vm8 = vcmask 256000   ;;  %vm7065_vm9 = vsmask.f32 2304 }
  0x42   :  { %v275_v30 = vunpack.c.0.s8 %v274_v28  ;;  %vm12015_vm10 = vmand %vm7064_vm8, %vm7065_vm9  ;;  %vm8830_vm11 = vcmask 254976   ;;  %vm8831_vm12 = vsmask.f32 1280  ;;  %vm8965_vm14 = vcmask 1041409  }
  0x43   :  { %vm12471_vm13 = vmand %vm8830_vm11, %vm8831_vm12 }
  0x44   :  { %v10613_v32 = vsub.s32 %v275_v30, %v277_v31 }
  0x7c   :  { %v893_v35 = vpop.permute.xlu0 %892  ;;  %v191_v37 = vpop.permute.xlu1 %190 }
  0x7d   :  { %v935_v38 = vsel %vm216_vm1, %v10381_v0, %v893_v35  ;;  %v222_v39 = vsel %vm216_vm1, %v10386_v1, %v191_v37 }
  0x7e   :  { %v1268_v40 = vrot.slane %v935_v38, %v10613_v32  ;;  %v303_v41 = vrot.slane %v222_v39, %v10613_v32 }
  0x80   :  { %v1269_v42 = vcombine.high %v1268_v40, %v1268_v40  ;;  %v10622_v43 = vrot.slane %v1268_v40, %v10613_v32  ;;  %v304_v44 = vcombine.high %v303_v41, %v303_v41  ;;  %v311_v46 = vrot.slane %v303_v41, %v10613_v32  ;;  %v867_v47 = vpop.permute.xlu1 %866  ;;  %v189_v48 = vpop.permute.xlu0 %188 }
  0x81   :  { %v896_v49 = vsel %vm216_vm1, %v10395_v4, %v867_v47  ;;  %v219_v0 = vsel %vm216_vm1, %v10400_v5, %v189_v48 }
  0x82   :  { %v10630_v1 = vrot.slane %v1269_v42, %v10613_v32  ;;  %v1378_v50 = vunpack.i.h.s16 %v10622_v43  ;;  %v318_v51 = vrot.slane %v304_v44, %v10613_v32  ;;  %v956_v53 = vrot.slane %v896_v49, %v10613_v32 }
  0x83   :  { %v279_v54 = vrot.slane %v219_v0, %v10613_v32  ;;  %v10638_v56 = vcombine.high %v10622_v43, %v10622_v43  ;;  %v319_v58 = vcombine.high %v311_v46, %v311_v46  ;;  %v617_v5 = vunpack.i.h.s16 %v311_v46 }
  0x84   :  { %v1380_v4 = vunpack.i.h.s16 %v10630_v1  ;;  %v193_v59 = vpop.permute.xlu1 %192  ;;  %v619_v61 = vunpack.i.h.s16 %v318_v51  ;;  %v957_v62 = vcombine.high %v956_v53, %v956_v53  ;;  %v10642_v63 = vpack.i.b16 %v10630_v1, %v1378_v50  ;;  %v869_v12 = vpop.permute.xlu0 %868 }
  0x85   :  { %v280_v7 = vcombine.high %v279_v54, %v279_v54  ;;  %v964_v8 = vrot.slane %v956_v53, %v10613_v32  ;;  %v287_v9 = vrot.slane %v279_v54, %v10613_v32  ;;  %v320_v11 = vcombine.high %v318_v51, %v318_v51 }
  0x86   :  { %v10645_v2 = vpack.i.b16 %v10638_v56, %v1380_v4  ;;  %v621_v16 = vunpack.i.h.s16 %v319_v58  ;;  %v225_v18 = vsel %vm216_vm1, %v10405_v6, %v193_v59  ;;  %v9384_v23 = vpack.i.b16 %v318_v51, %v617_v5 }
  0x87   :  { %v294_v14 = vrot.slane %v280_v7, %v10613_v32  ;;  %v9385_v24 = vpack.i.b16 %v319_v58, %v619_v61  ;;  %v971_v25 = vrot.slane %v957_v62, %v10613_v32  ;;  %v327_v28 = vrot.slane %v225_v18, %v10613_v32 }
  0x88   :  { %v1686_v13 = vcombine.low %v10642_v63, %v10645_v2  ;;  %v195_v19 = vpop.permute.xlu1 %194  ;;  %v899_v29 = vsel %vm216_vm1, %v10416_v10, %v869_v12  ;;  %v295_v31 = vcombine.high %v287_v9, %v287_v9  ;;  %v9386_v6 = vpack.i.b16 %v320_v11, %v621_v16 }
  0x89   :  { %v296_v26 = vcombine.high %v294_v14, %v294_v14  ;;  %v1438_v30 = vcombine.low %v964_v8, %v971_v25  ;;  %v980_v35 = vrot.slane %v899_v29, %v10613_v32  ;;  %v228_v37 = vsel %vm216_vm1, %v10421_v15, %v195_v19 }
  0x8a   :  { %v328_v39 = vcombine.high %v327_v28, %v327_v28  ;;  %v335_v40 = vrot.slane %v327_v28, %v10613_v32  ;;  %v1919_v41 = vcombine.low %v9384_v23, %v9385_v24  ;;  %v351_v47 = vrot.slane %v228_v37, %v10613_v32 }
  0x8b   :  { %v9383_v38 = vpack.i.b16 %v311_v46, %v296_v26  ;;  %v981_v42 = vcombine.high %v980_v35, %v980_v35  ;;  %v988_v44 = vrot.slane %v980_v35, %v10613_v32  ;;  %v973_v48 = vcombine.high %v971_v25, %v971_v25  ;;  %v871_v46 = vpop.permute.xlu0 %870 }
  0x8c   :  { %v1917_v10 = vcombine.low %v287_v9, %v294_v14  ;;  %v1285_v49 = vcombine.high %v10630_v1, %v10630_v1  ;;  %v1382_v0 = vunpack.i.h.s16 %v10638_v56  ;;  %v972_v51 = vcombine.high %v964_v8, %v964_v8  ;;  %v197_v23 = vpop.permute.xlu1 %196 }
  0x8d   :  { %v1918_v50 = vcombine.low %v295_v31, %v9383_v38  ;;  %v995_v15 = vrot.slane %v981_v42, %v10613_v32  ;;  %v10669_v53 = vrot.slane %v1438_v30, %v10613_v32  ;;  %v342_v54 = vrot.slane %v328_v39, %v10613_v32 }
  0x8e   :  { %v1920_v4 = vcombine.low %v9386_v6, %v335_v40  ;;  %v10673_v58 = vrot.slane %v1919_v41, %v10613_v32  ;;  %v343_v59 = vcombine.high %v335_v40, %v335_v40  ;;  %v1294_v5 = vunpack.i.h.s16 %v988_v44 }
  0x8f   :  { %v352_v61 = vcombine.high %v351_v47, %v351_v47  ;;  %v1927_v1 = vrot.slane %v1917_v10, %v10613_v32  ;;  %v996_v56 = vcombine.high %v988_v44, %v988_v44  ;;  %v9346_v62 = vpack.i.b16 %v988_v44, %v973_v48  ;;  %v873_v29 = vpop.permute.xlu0 %872 }
  0x90   :  { %v359_v7 = vrot.slane %v351_v47, %v10613_v32  ;;  %v1934_v8 = vrot.slane %v1918_v50, %v10613_v32  ;;  %v1296_v9 = vunpack.i.h.s16 %v995_v15  ;;  %v902_v12 = vsel %vm216_vm1, %v10426_v20, %v871_v46  ;;  %v10120_v46 = vld [vmem:[%s12605_s1] sm:$0xff]  }
  0x91   :  { %v366_v11 = vrot.slane %v352_v61, %v10613_v32  ;;  %v344_v14 = vcombine.high %v342_v54, %v342_v54  ;;  %v10682_v16 = vrot.slane %v1920_v4, %v10613_v32  ;;  %v997_v19 = vcombine.high %v995_v15, %v995_v15 }
  0x92   :  { %v367_v18 = vcombine.high %v359_v7, %v359_v7  ;;  %v10684_v24 = vcombine.low %v342_v54, %v343_v59  ;;  %v9347_v25 = vpack.i.b16 %v995_v15, %v1294_v5  ;;  %v10686_v30 = vcombine.low %v972_v51, %v9346_v62 }
  0x93   :  { %v368_v26 = vcombine.high %v366_v11, %v366_v11  ;;  %v633_v28 = vunpack.i.h.s16 %v366_v11  ;;  %v1298_v35 = vunpack.i.h.s16 %v996_v56  ;;  %v1004_v37 = vrot.slane %v902_v12, %v10613_v32  ;;  %v875_v5 = vpop.permute.xlu0 %874 }
  0x94   :  { %v635_v31 = vunpack.i.h.s16 %v367_v18  ;;  %v9348_v20 = vpack.i.b16 %v996_v56, %v1296_v9  ;;  %v631_v38 = vunpack.i.h.s16 %v359_v7  ;;  %v9373_v6 = vpack.i.b16 %v1285_v49, %v1382_v0 }
  0x95   :  { %v231_v39 = vsel %vm216_vm1, %v10437_v33, %v197_v23  ;;  %v9389_v40 = vpack.i.b16 %v367_v18, %v633_v28  ;;  %v9349_v42 = vpack.i.b16 %v997_v19, %v1298_v35  ;;  %v1005_v44 = vcombine.high %v1004_v37, %v1004_v37  ;;  %v10121_v18 = vld [vmem:[%s12605_s1 + $0x8] sm:$0xff]  }
  0x96   :  { %v9390_v41 = vpack.i.b16 %v368_v26, %v635_v31  ;;  %v1012_v47 = vrot.slane %v1004_v37, %v10613_v32  ;;  %v1738_v48 = vrot.slane %v9373_v6, %v10613_v32  ;;  %v375_v10 = vrot.slane %v231_v39, %v10613_v32 }
  0x97   :  { %v905_v50 = vsel %vm216_vm1, %v10442_v34, %v873_v29  ;;  %v10696_v15 = vcombine.low %v1927_v1, %v1934_v8  ;;  %v1950_v49 = vcombine.low %v10673_v58, %v10682_v16  ;;  %v1976_v33 = vrot.slane %v10684_v24, %v10613_v32  ;;  %v199_v34 = vpop.permute.xlu1 %198 }
  0x98   :  { %v1028_v0 = vrot.slane %v905_v50, %v10613_v32  ;;  %v1440_v51 = vcombine.low %v9347_v25, %v9348_v20  ;;  %v9387_v54 = vpack.i.b16 %v359_v7, %v344_v14  ;;  %v1745_v4 = vrot.slane %v1738_v48, %v10613_v32 }
  0x99   :  { %v376_v59 = vcombine.high %v375_v10, %v375_v10  ;;  %v9388_v61 = vpack.i.b16 %v366_v11, %v631_v38  ;;  %v1019_v1 = vrot.slane %v1005_v44, %v10613_v32  ;;  %v10709_v58 = vrot.slane %v375_v10, %v10613_v32 }
  0x9a   :  { %v1029_v56 = vcombine.high %v1028_v0, %v1028_v0  ;;  %v1968_v62 = vcombine.low %v9389_v40, %v9390_v41  ;;  %v1441_v8 = vcombine.low %v9349_v42, %v1012_v47  ;;  %9880 = vmatmul.mubr.msk.bf16.vlgmr.msra.gmra.mrb[0].mxu1 %vm1758_vm2, %v1745_v4  ;;  %v1036_v7 = vrot.slane %v1028_v0, %v10613_v32 }
  0x9b   :  { %v390_v9 = vrot.slane %v376_v59, %v10613_v32  ;;  %v1455_v12 = vrot.slane %v10686_v30, %v10613_v32  ;;  %9884 = vmatpush3.bf16.msra.mxu1 %v10120_v46  ;;  %v234_v11 = vsel %vm216_vm1, %v10447_v36, %v199_v34  ;;  %v908_v16 = vsel %vm216_vm1, %v10458_v45, %v875_v5  ;;  %v201_v38 = vpop.permute.xlu1 %200  ;;  %v877_v46 = vpop.permute.xlu0 %876 }
  0x9c   :  { %v1043_v14 = vrot.slane %v1029_v56, %v10613_v32  ;;  %v1957_v19 = vrot.slane %v10696_v15, %v10613_v32  ;;  %v10727_v23 = vrot.slane %v1440_v51, %v10613_v32  ;;  %v1020_v25 = vcombine.high %v1012_v47, %v1012_v47  ;;  %9885 = vmatprep.subr.bf16.mxu1 %v10322_v55 }
  0x9d   :  { %v1969_v26 = vcombine.low %v10709_v58, %v390_v9  ;;  %v1967_v28 = vcombine.low %v9387_v54, %v9388_v61  ;;  %v1021_v36 = vcombine.high %v1019_v1, %v1019_v1  ;;  %v1044_v29 = vcombine.high %v1036_v7, %v1036_v7  ;;  %9887 = vmatprep.mubr.msk.bf16.mxu1 %vm10323_vm0, %v10322_v55 }
  0x9e   :  { %v1308_v31 = vunpack.i.h.s16 %v1036_v7  ;;  %v10734_v45 = vrot.slane %v1441_v8, %v10613_v32  ;;  %v10737_v35 = vrot.slane %v1968_v62, %v10613_v32  ;;  %v399_v37 = vrot.slane %v234_v11, %v10613_v32 }
  0x9f   :  { %v1052_v20 = vrot.slane %v908_v16, %v10613_v32  ;;  %v1045_v6 = vcombine.high %v1043_v14, %v1043_v14  ;;  %v1310_v39 = vunpack.i.h.s16 %v1043_v14  ;;  %v1312_v40 = vunpack.i.h.s16 %v1044_v29  ;;  %9886 = vmatpush3.bf16.msra.mxu1 %v10121_v18 }
  0xa0   :  { %v237_v41 = vsel %vm216_vm1, %v10465_v52, %v201_v38  ;;  %v10743_v42 = vcombine.low %v1019_v1, %v1020_v25  ;;  %v10746_v44 = vrot.slane %v1969_v26, %v10613_v32  ;;  %v400_v47 = vcombine.high %v399_v37, %v399_v37 }
  0xa1   :  { %v407_v48 = vrot.slane %v399_v37, %v10613_v32  ;;  %v1964_v10 = vrot.slane %v1950_v49, %v10613_v32  ;;  %v9350_v50 = vpack.i.b16 %v1036_v7, %v1021_v36  ;;  %v9351_v15 = vpack.i.b16 %v1043_v14, %v1308_v31 }
  0xa2   :  { %v1053_v0 = vcombine.high %v1052_v20, %v1052_v20  ;;  %v392_v51 = vcombine.high %v390_v9, %v390_v9  ;;  %v414_v54 = vrot.slane %v400_v47, %v10613_v32  ;;  %v423_v52 = vrot.slane %v237_v41, %v10613_v32 }
  0xa3   :  { %v415_v4 = vcombine.high %v407_v48, %v407_v48  ;;  %v10753_v59 = vrot.slane %v1967_v28, %v10613_v32  ;;  %v391_v34 = vcombine.high %v10709_v58, %v10709_v58  ;;  %v9352_v5 = vpack.i.b16 %v1044_v29, %v1310_v39  ;;  %v879_v29 = vpop.permute.xlu0 %878 }
  0xa4   :  { %v9353_v61 = vpack.i.b16 %v1045_v6, %v1312_v40  ;;  %v1471_v49 = vcombine.low %v10727_v23, %v10734_v45  ;;  %v1497_v1 = vrot.slane %v10743_v42, %v10613_v32  ;;  %v1999_v56 = vcombine.low %v10737_v35, %v10746_v44  ;;  %v203_v6 = vpop.permute.xlu1 %202 }
  0xa5   :  { %v416_v62 = vcombine.high %v414_v54, %v414_v54  ;;  %v1488_v8 = vcombine.low %v9350_v50, %v9351_v15  ;;  %v10764_v9 = vrot.slane %v1052_v20, %v10613_v32  ;;  %v1067_v7 = vrot.slane %v1053_v0, %v10613_v32 }
  0xa6   :  { %v649_v14 = vunpack.i.h.s16 %v415_v4  ;;  %v645_v58 = vunpack.i.h.s16 %v407_v48  ;;  %v9391_v11 = vpack.i.b16 %v407_v48, %v392_v51  ;;  %v424_v16 = vcombine.high %v423_v52, %v423_v52 }
  0xa7   :  { %v431_v18 = vrot.slane %v423_v52, %v10613_v32  ;;  %v1489_v25 = vcombine.low %v9352_v5, %v9353_v61  ;;  %v911_v28 = vsel %vm216_vm1, %v10474_v57, %v877_v46  ;;  %v1965_v36 = vcombine.low %v1957_v19, %v1964_v10 }
  0xa8   :  { %v9394_v26 = vpack.i.b16 %v416_v62, %v649_v14  ;;  %v647_v31 = vunpack.i.h.s16 %v414_v54  ;;  %v438_v37 = vrot.slane %v424_v16, %v10613_v32  ;;  %v1076_v38 = vrot.slane %v911_v28, %v10613_v32 }
  0xa9   :  { %v439_v20 = vcombine.high %v431_v18, %v431_v18  ;;  %v10773_v39 = vrot.slane %v1488_v8, %v10613_v32  ;;  %v1490_v40 = vcombine.low %v10764_v9, %v1067_v7  ;;  %9888 = vmatmul.mubr.msk.bf16.vlgmr.msra.gmra.mrb[4].mxu1 %vm1758_vm2, %v1965_v36  ;;  %v240_v57 = vsel %vm216_vm1, %v10481_v60, %v203_v6 }
  0xaa   :  { %v2017_v41 = vcombine.low %v9394_v26, %v431_v18  ;;  %v1077_v47 = vcombine.high %v1076_v38, %v1076_v38  ;;  %v1084_v48 = vrot.slane %v1076_v38, %v10613_v32  ;;  %v914_v10 = vsel %vm216_vm1, %v10488_v3, %v879_v29  ;;  %9891 = vmatprep.mubr.msk.bf16.mxu1 %vm10323_vm0, %v10322_v55 }
  0xab   :  { %v2018_v19 = vcombine.low %v438_v37, %v439_v20  ;;  %v10784_v50 = vpack.i.b16 %v414_v54, %v645_v58  ;;  %v10786_v15 = vcombine.low %v391_v34, %v9391_v11  ;;  %v1069_v0 = vcombine.high %v1067_v7, %v1067_v7  ;;  %v881_v20 = vpop.permute.xlu1 %880 }
  0xac   :  { %v447_v46 = vrot.slane %v240_v57, %v10613_v32  ;;  %v10789_v51 = vpack.i.b16 %v415_v4, %v647_v31  ;;  %v10792_v60 = vrot.slane %v1489_v25, %v10613_v32  ;;  %v1091_v52 = vrot.slane %v1077_v47, %v10613_v32  ;;  %v205_v57 = vpop.permute.xlu0 %204 }
  0xad   :  { %v1092_v5 = vcombine.high %v1084_v48, %v1084_v48  ;;  %v10796_v3 = vrot.slane %v1490_v40, %v10613_v32  ;;  %v1100_v34 = vrot.slane %v914_v10, %v10613_v32  ;;  %v1068_v62 = vcombine.high %v10764_v9, %v10764_v9 }
  0xae   :  { %v448_v61 = vcombine.high %v447_v46, %v447_v46  ;;  %v455_v54 = vrot.slane %v447_v46, %v10613_v32  ;;  %v2039_v4 = vrot.slane %v2017_v41, %v10613_v32  ;;  %v2046_v8 = vrot.slane %v2018_v19, %v10613_v32 }
  0xaf   :  { %v1322_v7 = vunpack.i.h.s16 %v1084_v48  ;;  %v2025_v14 = vrot.slane %v10786_v15, %v10613_v32  ;;  %v1324_v58 = vunpack.i.h.s16 %v1091_v52  ;;  %v9354_v11 = vpack.i.b16 %v1084_v48, %v1069_v0 }
  0xb0   :  { %v462_v16 = vrot.slane %v448_v61, %v10613_v32  ;;  %v463_v18 = vcombine.high %v455_v54, %v455_v54  ;;  %v1093_v25 = vcombine.high %v1091_v52, %v1091_v52  ;;  %v1326_v26 = vunpack.i.h.s16 %v1092_v5 }
  0xb1   :  { %v1470_v9 = vcombine.low %v10669_v53, %v1455_v12  ;;  %v2016_v28 = vcombine.low %v10784_v50, %v10789_v51  ;;  %v1520_v36 = vcombine.low %v10792_v60, %v10796_v3  ;;  %v1101_v29 = vcombine.high %v1100_v34, %v1100_v34 }
  0xb2   :  { %v1108_v31 = vrot.slane %v1100_v34, %v10613_v32  ;;  %v440_v38 = vcombine.high %v438_v37, %v438_v37  ;;  %v10816_v6 = vcombine.low %v2039_v4, %v2046_v8  ;;  %v10818_v40 = vpack.i.b16 %v1091_v52, %v1322_v7 }
  0xb3   :  { %v659_v41 = vunpack.i.h.s16 %v455_v54  ;;  %v10820_v30 = vpack.i.b16 %v1092_v5, %v1324_v58  ;;  %v10822_v53 = vcombine.low %v1068_v62, %v9354_v11  ;;  %v464_v12 = vcombine.high %v462_v16, %v462_v16  ;;  %v883_v11 = vpop.permute.xlu0 %882 }
  0xb4   :  { %v661_v19 = vunpack.i.h.s16 %v462_v16  ;;  %v663_v47 = vunpack.i.h.s16 %v463_v18  ;;  %v9357_v48 = vpack.i.b16 %v1093_v25, %v1326_v26  ;;  %v1478_v10 = vrot.slane %v1470_v9, %v10613_v32 }
  0xb5   :  { %v1485_v37 = vrot.slane %v1471_v49, %v10613_v32  ;;  %v1115_v0 = vrot.slane %v1101_v29, %v10613_v32  ;;  %v1116_v46 = vcombine.high %v1108_v31, %v1108_v31  ;;  %v917_v52 = vsel %vm216_vm1, %v10497_v17, %v881_v20 }
  0xb6   :  { %v243_v5 = vsel %vm216_vm1, %v10504_v21, %v205_v57  ;;  %v9395_v61 = vpack.i.b16 %v455_v54, %v440_v38  ;;  %v9396_v34 = vpack.i.b16 %v462_v16, %v659_v41  ;;  %v1124_v4 = vrot.slane %v917_v52, %v10613_v32  ;;  %v207_v21 = vpop.permute.xlu1 %206 }
  0xb7   :  { %v1486_v62 = vcombine.low %v1478_v10, %v1485_v37  ;;  %v10835_v8 = vpack.i.b16 %v463_v18, %v661_v19  ;;  %v471_v7 = vrot.slane %v243_v5, %v10613_v32  ;;  %v1998_v23 = vcombine.low %v1976_v33, %v10753_v59 }
  0xb8   :  { %v2013_v17 = vrot.slane %v1999_v56, %v10613_v32  ;;  %v10846_v45 = vpack.i.b16 %v464_v12, %v663_v47  ;;  %v1125_v49 = vcombine.high %v1124_v4, %v1124_v4  ;;  %v1132_v54 = vrot.slane %v1124_v4, %v10613_v32 }
  0xb9   :  { %9856 = vmatmul.mubr.msk.bf16.vlgmr.msra.gmra.mrb[0].mxu0 %vm1758_vm2, %v1486_v62  ;;  %v246_v58 = vsel %vm216_vm1, %v10509_v22, %v207_v21  ;;  %v1538_v16 = vcombine.low %v9357_v48, %v1108_v31  ;;  %v1539_v24 = vcombine.low %v1115_v0, %v1116_v46  ;;  %v472_v33 = vcombine.high %v471_v7, %v471_v7 }
  0xba   :  { %v2006_v59 = vrot.slane %v1998_v23, %v10613_v32  ;;  %9859 = vmatprep.mubr.msk.bf16.mxu0 %vm10323_vm0, %v10322_v55  ;;  %v1537_v35 = vcombine.low %v10818_v40, %v10820_v30  ;;  %v1546_v44 = vrot.slane %v10822_v53, %v10613_v32  ;;  %v2064_v56 = vcombine.low %v9395_v61, %v9396_v34  ;;  %v209_v5 = vpop.permute.xlu1 %208 }
  0xbb   :  { %v1139_v18 = vrot.slane %v1125_v49, %v10613_v32  ;;  %v1140_v25 = vcombine.high %v1132_v54, %v1132_v54  ;;  %v495_v26 = vrot.slane %v246_v58, %v10613_v32  ;;  %v920_v9 = vsel %vm216_vm1, %v10516_v27, %v883_v11 }
  0xbc   :  { %v2014_v22 = vcombine.low %v2006_v59, %v2013_v17  ;;  %v2065_v29 = vcombine.low %v10835_v8, %v10846_v45  ;;  %v1117_v31 = vcombine.high %v1115_v0, %v1115_v0  ;;  %v1336_v20 = vunpack.i.h.s16 %v1132_v54 }
  0xbd   :  { %v486_v38 = vrot.slane %v472_v33, %v10613_v32  ;;  %v1560_v41 = vrot.slane %v1538_v16, %v10613_v32  ;;  %v1567_v57 = vrot.slane %v1539_v24, %v10613_v32  ;;  %v496_v12 = vcombine.high %v495_v26, %v495_v26  ;;  %v885_v16 = vpop.permute.xlu0 %884 }
  0xbe   :  { %9892 = vmatmul.mubr.msk.bf16.gmra.mrb[8].mxu1 %vm1758_vm2, %v2014_v22  ;;  %v503_v19 = vrot.slane %v495_v26, %v10613_v32  ;;  %v10871_v47 = vrot.slane %v2064_v56, %v10613_v32  ;;  %v1141_v27 = vcombine.high %v1139_v18, %v1139_v18  ;;  %v479_v48 = vrot.slane %v471_v7, %v10613_v32  ;;  %v211_v26 = vpop.permute.xlu1 %210 }
  0xbf   :  { %v1148_v10 = vrot.slane %v920_v9, %v10613_v32  ;;  %9895 = vmatprep.mubr.msk.bf16.mxu1 %vm10323_vm0, %v10322_v55  ;;  %v1338_v37 = vunpack.i.h.s16 %v1139_v18  ;;  %v1340_v0 = vunpack.i.h.s16 %v1140_v25  ;;  %v510_v46 = vrot.slane %v496_v12, %v10613_v32 }
  0xc0   :  { %v511_v52 = vcombine.high %v503_v19, %v503_v19  ;;  %v9358_v61 = vpack.i.b16 %v1132_v54, %v1117_v31  ;;  %v9359_v34 = vpack.i.b16 %v1139_v18, %v1336_v20  ;;  %v488_v62 = vcombine.high %v486_v38, %v486_v38  ;;  %v10285_v20 = vld [vmem:[%s12604_s0 + $0x2c] sm:$0xf] }
  0xc1   :  { %v2066_v4 = vcombine.low %v479_v48, %v486_v38  ;;  %v10878_v23 = vcombine.low %v1560_v41, %v1567_v57  ;;  %v673_v17 = vunpack.i.h.s16 %v503_v19  ;;  %v1149_v21 = vcombine.high %v1148_v10, %v1148_v10  ;;  %v10286_v41 = vld [vmem:[%s12604_s0 + $0x30] sm:$0xf] }
  0xc2   :  { %v1519_v7 = vcombine.low %v1497_v1, %v10773_v39  ;;  %v487_v49 = vcombine.high %v479_v48, %v479_v48  ;;  %v675_v58 = vunpack.i.h.s16 %v510_v46  ;;  %v1534_v11 = vrot.slane %v1520_v36, %v10613_v32  ;;  %v10284_v39 = vld [vmem:[%s12604_s0 + $0x2c] sm:$0xf] }
  0xc3   :  { %v512_v54 = vcombine.high %v510_v46, %v510_v46  ;;  %v10888_v24 = vpack.i.b16 %v1140_v25, %v1338_v37  ;;  %v10890_v33 = vpack.i.b16 %v1141_v27, %v1340_v0  ;;  %v677_v56 = vunpack.i.h.s16 %v511_v52 }
  0xc4   :  { %v1527_v59 = vrot.slane %v1519_v7, %v10613_v32  ;;  %v1585_v18 = vcombine.low %v9358_v61, %v9359_v34  ;;  %v10894_v42 = vrot.slane %v2066_v4, %v10613_v32  ;;  %v9399_v1 = vpack.i.b16 %v503_v19, %v488_v62  ;;  %v10287_v62 = vld [vmem:[%s12604_s0 + $0x30] sm:$0xf] }
  0xc5   :  { %v249_v60 = vsel %vm216_vm1, %v10284_v39, %v209_v5  ;;  %v9400_v3 = vpack.i.b16 %v510_v46, %v673_v17  ;;  %v1163_v36 = vrot.slane %v1149_v21, %v10613_v32  ;;  %v9401_v9 = vpack.i.b16 %v511_v52, %v675_v58  ;;  %v887_v5 = vpop.permute.xlu0 %886 }
  0xc6   :  { %v1535_v25 = vcombine.low %v1527_v59, %v1534_v11  ;;  %v519_v22 = vrot.slane %v249_v60, %v10613_v32  ;;  %v9402_v31 = vpack.i.b16 %v512_v54, %v677_v56  ;;  %v923_v38 = vsel %vm216_vm1, %v10285_v20, %v885_v16 }
  0xc7   :  { %v252_v57 = vsel %vm216_vm1, %v10286_v41, %v211_v26  ;;  %v1156_v12 = vrot.slane %v1148_v10, %v10613_v32  ;;  %v1172_v48 = vrot.slane %v923_v38, %v10613_v32  ;;  %v1586_v37 = vcombine.low %v10888_v24, %v10890_v33 }
  0xc8   :  { %9860 = vmatmul.mubr.msk.bf16.gmra.mrb[4].mxu0 %vm1758_vm2, %v1535_v25  ;;  %v520_v19 = vcombine.high %v519_v22, %v519_v22  ;;  %v527_v27 = vrot.slane %v519_v22, %v10613_v32  ;;  %v10917_v0 = vrot.slane %v1585_v18, %v10613_v32  ;;  %v10919_v46 = vcombine.low %v487_v49, %v9399_v1 }
  0xc9   :  { %v543_v52 = vrot.slane %v252_v57, %v10613_v32  ;;  %9863 = vmatprep.mubr.msk.bf16.mxu0 %vm10323_vm0, %v10322_v55  ;;  %v1587_v10 = vcombine.low %v1156_v12, %v1163_v36  ;;  %v1173_v34 = vcombine.high %v1172_v48, %v1172_v48  ;;  %v926_v4 = vsel %vm216_vm1, %v10287_v62, %v887_v5  ;;  %v213_v57 = vpop.permute.xlu1 %212 }
  0xca   :  { %v535_v61 = vcombine.high %v527_v27, %v527_v27  ;;  %v2113_v17 = vcombine.low %v9400_v3, %v9401_v9  ;;  %v1165_v21 = vcombine.high %v1163_v36, %v1163_v36  ;;  %v2114_v7 = vcombine.low %v9402_v31, %v527_v27 }
  0xcb   :  { %v1180_v49 = vrot.slane %v1172_v48, %v10613_v32  ;;  %v534_v58 = vrot.slane %v520_v19, %v10613_v32  ;;  %v1187_v11 = vrot.slane %v1173_v34, %v10613_v32  ;;  %v544_v54 = vcombine.high %v543_v52, %v543_v52 }
  0xcc   :  { %v551_v16 = vrot.slane %v543_v52, %v10613_v32  ;;  %v2095_v59 = vrot.slane %v10919_v46, %v10613_v32  ;;  %v1164_v56 = vcombine.high %v1156_v12, %v1156_v12  ;;  %v1196_v1 = vrot.slane %v926_v4, %v10613_v32  ;;  %v889_v12 = vpop.permute.xlu0 %888 }
  0xcd   :  { %v1350_v18 = vunpack.i.h.s16 %v1180_v49  ;;  %v10936_v39 = vrot.slane %v1587_v10, %v10613_v32  ;;  %v10938_v60 = vcombine.low %v534_v58, %v535_v61  ;;  %v1352_v3 = vunpack.i.h.s16 %v1187_v11 }
  0xce   :  { %v559_v36 = vcombine.high %v551_v16, %v551_v16  ;;  %v10941_v25 = vrot.slane %v2113_v17, %v10613_v32  ;;  %v10944_v22 = vrot.slane %v2114_v7, %v10613_v32  ;;  %v1188_v26 = vcombine.high %v1180_v49, %v1180_v49 }
  0xcf   :  { %v2032_v9 = vrot.slane %v2016_v28, %v10613_v32  ;;  %v536_v31 = vcombine.high %v534_v58, %v534_v58  ;;  %v9362_v20 = vpack.i.b16 %v1180_v49, %v1165_v21  ;;  %v558_v38 = vrot.slane %v544_v54, %v10613_v32 }
  0xd0   :  { %v2062_v41 = vrot.slane %v10816_v6, %v10613_v32  ;;  %v10953_v19 = vpack.i.b16 %v1187_v11, %v1350_v18  ;;  %v10955_v27 = vpack.i.b16 %v1188_v26, %v1352_v3  ;;  %v687_v48 = vunpack.i.h.s16 %v551_v16  ;;  %v215_v40 = vpop.permute.xlu0 %214  ;;  %v10288_v18 = vld [vmem:[%s12604_s0 + $0x34] sm:$0xf] }
  0xd1   :  { %v1197_v52 = vcombine.high %v1196_v1, %v1196_v1  ;;  %v2137_v5 = vrot.slane %v10938_v60, %v10613_v32  ;;  %v560_v50 = vcombine.high %v558_v38, %v558_v38  ;;  %v689_v51 = vunpack.i.h.s16 %v558_v38  ;;  %v10289_v3 = vld [vmem:[%s12604_s0 + $0x34] sm:$0xf] }
  0xd2   :  { %v691_v28 = vunpack.i.h.s16 %v559_v36  ;;  %v2145_v10 = vcombine.low %v10941_v25, %v10944_v22  ;;  %v1189_v61 = vcombine.high %v1187_v11, %v1187_v11  ;;  %v1354_v34 = vunpack.i.h.s16 %v1188_v26 }
  0xd3   :  { %v2047_v6 = vcombine.low %v2025_v14, %v2032_v9  ;;  %v10964_v62 = vcombine.low %v1164_v56, %v9362_v20  ;;  %v9403_v4 = vpack.i.b16 %v551_v16, %v536_v31  ;;  %v1204_v17 = vrot.slane %v1196_v1, %v10613_v32  ;;  %v891_v56 = vpop.permute.xlu1 %890  ;;  %v10290_v20 = vld [vmem:[%s12604_s0 + $0x38] sm:$0xf] }
  0xd4   :  { %v1553_v21 = vrot.slane %v1537_v35, %v10613_v32  ;;  %v1634_v7 = vcombine.low %v10953_v19, %v10955_v27  ;;  %v9404_v49 = vpack.i.b16 %v558_v38, %v687_v48  ;;  %v1211_v58 = vrot.slane %v1197_v52, %v10613_v32 }
  0xd5   :  { %v2055_v11 = vrot.slane %v2047_v6, %v10613_v32  ;;  %v9405_v15 = vpack.i.b16 %v559_v36, %v689_v51  ;;  %v9406_v14 = vpack.i.b16 %v560_v50, %v691_v28  ;;  %v1583_v16 = vrot.slane %v10878_v23, %v10613_v32 }
  0xd6   :  { %v1568_v54 = vcombine.low %v1546_v44, %v1553_v21  ;;  %v9365_v30 = vpack.i.b16 %v1189_v61, %v1354_v34  ;;  %v255_v1 = vsel %vm216_vm1, %v10288_v18, %v213_v57  ;;  %v929_v53 = vsel %vm216_vm1, %v10289_v3, %v889_v12 }
  0xd7   :  { %v2063_v35 = vcombine.low %v2055_v11, %v2062_v41  ;;  %v1212_v44 = vcombine.high %v1204_v17, %v1204_v17  ;;  %v567_v23 = vrot.slane %v255_v1, %v10613_v32  ;;  %v1220_v26 = vrot.slane %v929_v53, %v10613_v32  ;;  %v10291_v41 = vld [vmem:[%s12604_s0 + $0x38] sm:$0xf] }
  0xd8   :  { %v1576_v36 = vrot.slane %v1568_v54, %v10613_v32  ;;  %v2116_v9 = vcombine.low %v9403_v4, %v9404_v49  ;;  %v1213_v31 = vcombine.high %v1211_v58, %v1211_v58  ;;  %v932_v38 = vsel %vm216_vm1, %v10290_v20, %v891_v56 }
  0xd9   :  { %9896 = vmatmul.mubr.msk.bf16.gmra.mrb[12].mxu1 %vm1758_vm2, %v2063_v35  ;;  %v258_v57 = vsel %vm216_vm1, %v10291_v41, %v215_v40  ;;  %v2162_v12 = vcombine.low %v9405_v15, %v9406_v14  ;;  %v568_v27 = vcombine.high %v567_v23, %v567_v23  ;;  %v1221_v48 = vcombine.high %v1220_v26, %v1220_v26 }
  0xda   :  { %v1584_v19 = vcombine.low %v1576_v36, %v1583_v16  ;;  %9899 = vmatprep.mubr.msk.bf16.mxu1 %vm10323_vm0, %v10322_v55  ;;  %v1616_v52 = vrot.slane %v10964_v62, %v10613_v32  ;;  %v1635_v50 = vcombine.low %v9365_v30, %v1204_v17  ;;  %v1228_v51 = vrot.slane %v1220_v26, %v10613_v32 }
  0xdb   :  { %v1244_v28 = vrot.slane %v932_v38, %v10613_v32  ;;  %v1636_v61 = vcombine.low %v1211_v58, %v1212_v44  ;;  %v582_v34 = vrot.slane %v568_v27, %v10613_v32  ;;  %v1235_v6 = vrot.slane %v1221_v48, %v10613_v32 }
  0xdc   :  { %9864 = vmatmul.mubr.msk.bf16.gmra.mrb[8].mxu0 %vm1758_vm2, %v1584_v19  ;;  %v591_v4 = vrot.slane %v258_v57, %v10613_v32  ;;  %v1236_v21 = vcombine.high %v1228_v51, %v1228_v51  ;;  %v1364_v49 = vunpack.i.h.s16 %v1228_v51  ;;  %v9366_v11 = vpack.i.b16 %v1228_v51, %v1213_v31 }
  0xdd   :  { %v1245_v15 = vcombine.high %v1244_v28, %v1244_v28  ;;  %9867 = vmatprep.mubr.msk.bf16.mxu0 %vm10323_vm0, %v10322_v55  ;;  %v2144_v62 = vrot.slane %v2116_v9, %v10613_v32  ;;  %v1644_v17 = vrot.slane %v1634_v7, %v10613_v32  ;;  %v11015_v58 = vrot.slane %v2162_v12, %v10613_v32 }
  0xde   :  { %v2081_v14 = vrot.slane %v2065_v29, %v10613_v32  ;;  %v1651_v54 = vrot.slane %v1635_v50, %v10613_v32  ;;  %v575_v16 = vrot.slane %v567_v23, %v10613_v32  ;;  %v9367_v56 = vpack.i.b16 %v1235_v6, %v1364_v49 }
  0xdf   :  { %v1259_v40 = vrot.slane %v1245_v15, %v10613_v32  ;;  %v1658_v30 = vrot.slane %v1636_v61, %v10613_v32  ;;  %v1366_v35 = vunpack.i.h.s16 %v1235_v6  ;;  %v592_v18 = vcombine.high %v591_v4, %v591_v4 }
  0xe0   :  { %v599_v7 = vrot.slane %v591_v4, %v10613_v32  ;;  %v584_v1 = vcombine.high %v582_v34, %v582_v34  ;;  %v1237_v3 = vcombine.high %v1235_v6, %v1235_v6  ;;  %v1368_v53 = vunpack.i.h.s16 %v1236_v21 }
  0xe1   :  { %v1637_v44 = vcombine.low %v9366_v11, %v9367_v56  ;;  %v11027_v8 = vrot.slane %v592_v18, %v10613_v32  ;;  %v2096_v29 = vcombine.low %v10871_v47, %v2081_v14  ;;  %v2097_v36 = vcombine.low %v10894_v42, %v2095_v59 }
  0xe2   :  { %v11029_v45 = vcombine.high %v599_v7, %v599_v7  ;;  %v583_v23 = vcombine.high %v575_v16, %v575_v16  ;;  %v1252_v26 = vrot.slane %v1244_v28, %v10613_v32  ;;  %v1261_v9 = vcombine.high %v1259_v40, %v1259_v40 }
  0xe3   :  { %v701_v31 = vunpack.i.h.s16 %v599_v7  ;;  %v1666_v20 = vcombine.low %v1644_v17, %v1651_v54  ;;  %v2163_v38 = vcombine.low %v575_v16, %v582_v34  ;;  %v9368_v41 = vpack.i.b16 %v1236_v21, %v1366_v35 }
  0xe4   :  { %v703_v57 = vunpack.i.h.s16 %v11027_v8  ;;  %v9369_v12 = vpack.i.b16 %v1237_v3, %v1368_v53  ;;  %v1665_v19 = vrot.slane %v1637_v44, %v10613_v32  ;;  %v9407_v27 = vpack.i.b16 %v599_v7, %v584_v1 }
  0xe5   :  { %v9408_v47 = vpack.i.b16 %v11027_v8, %v701_v31  ;;  %v2104_v42 = vrot.slane %v2096_v29, %v10613_v32  ;;  %v2111_v59 = vrot.slane %v2097_v36, %v10613_v32  ;;  %v1602_v48 = vrot.slane %v1586_v37, %v10613_v32 }
  0xe6   :  { %v9409_v46 = vpack.i.b16 %v11029_v45, %v703_v57  ;;  %v1260_v50 = vcombine.high %v1252_v26, %v1252_v26  ;;  %v9370_v51 = vpack.i.b16 %v10622_v43, %v1261_v9  ;;  %v2164_v28 = vcombine.low %v583_v23, %v9407_v27 }
  0xe7   :  { %v1618_v61 = vcombine.low %v10936_v39, %v1616_v52  ;;  %v2112_v6 = vcombine.low %v2104_v42, %v2111_v59  ;;  %v1617_v4 = vcombine.low %v10917_v0, %v1602_v48  ;;  %v2146_v21 = vcombine.low %v2137_v5, %v2144_v62 }
  0xe8   :  { %v2165_v34 = vcombine.low %v9408_v47, %v9409_v46  ;;  %v2179_v49 = vrot.slane %v2163_v38, %v10613_v32  ;;  %v2186_v11 = vrot.slane %v2164_v28, %v10613_v32  ;;  %v2153_v43 = vrot.slane %v2145_v10, %v10613_v32 }
  0xe9   :  { %v1632_v24 = vrot.slane %v1618_v61, %v10613_v32  ;;  %9900 = vmatmul.mubr.msk.bf16.gmra.mrb[16].mxu1 %vm1758_vm2, %v2112_v6  ;;  %v1625_v33 = vrot.slane %v1617_v4, %v10613_v32  ;;  %v2160_v37 = vrot.slane %v2146_v21, %v10613_v32  ;;  %v1667_v0 = vcombine.low %v1658_v30, %v1665_v19 }
  0xea   :  { %v2193_v39 = vrot.slane %v2165_v34, %v10613_v32  ;;  %9903 = vmatprep.mubr.msk.bf16.mxu1 %vm10323_vm0, %v10322_v55  ;;  %v1683_v60 = vcombine.low %v9368_v41, %v9369_v12  ;;  %v1684_v5 = vcombine.low %v1252_v26, %v1259_v40  ;;  %v1685_v52 = vcombine.low %v1260_v50, %v9370_v51  ;;  %v11104_v41 = vld [vmem:[%s12606_s2] ss:$0 sm:$0xff]  ;;  %s10325_s2 = smov 64  }
  0xeb   :  { %v1633_v15 = vcombine.low %v1625_v33, %v1632_v24  ;;  %v2194_v62 = vcombine.low %v11015_v58, %v2179_v49  ;;  %v2161_v25 = vcombine.low %v2153_v43, %v2160_v37  ;;  %v1674_v22 = vrot.slane %v1666_v20, %v10613_v32 }
  0xec   :  { %v1681_v10 = vrot.slane %v1667_v0, %v10613_v32  ;;  %v2195_v17 = vcombine.low %v2186_v11, %v2193_v39  ;;  %v1693_v14 = vrot.slane %v1683_v60, %v10613_v32  ;;  %v1700_v54 = vrot.slane %v1684_v5, %v10613_v32 }
  0xed   :  { %9868 = vmatmul.mubr.msk.bf16.gmra.mrb[12].mxu0 %vm1758_vm2, %v1633_v15  ;;  %v1707_v16 = vrot.slane %v1685_v52, %v10613_v32  ;;  %v608_v58 = vcombine.high %v11027_v8, %v11027_v8  ;;  %v705_v56 = vunpack.i.h.s16 %v11029_v45  ;;  %v2202_v30 = vrot.slane %v2194_v62, %v10613_v32 }
  0xee   :  { %9871 = vmatprep.mubr.msk.bf16.mxu0 %vm10323_vm0, %v10322_v55  ;;  %v1682_v40 = vcombine.low %v1674_v22, %v1681_v10  ;;  %v2209_v35 = vrot.slane %v2195_v17, %v10613_v32  ;;  %v1714_v18 = vrot.slane %v1686_v13, %v10613_v32  ;;  %v1715_v7 = vcombine.low %v1693_v14, %v1700_v54 }
  0xef   :  { %v9410_v53 = vpack.i.b16 %v608_v58, %v705_v56 }
  0xf0   :  { %v1716_v1 = vcombine.low %v1707_v16, %v1714_v18  ;;  %v2210_v3 = vcombine.low %v2202_v30, %v2209_v35  ;;  %v1723_v44 = vrot.slane %v1715_v7, %v10613_v32 }
  0xf1   :  { %9904 = vmatmul.mubr.msk.bf16.gmra.mrb[20].mxu1 %vm1758_vm2, %v2161_v25  ;;  %v2217_v63 = vrot.slane %v9410_v53, %v10613_v32 }
  0xf2   :  { %9907 = vmatprep.mubr.msk.bf16.mxu1 %vm10323_vm0, %v10322_v55  ;;  %v1730_v8 = vrot.slane %v1716_v1, %v10613_v32 }
  0xf3   :  { %v2224_v13 = vrot.slane %v2217_v63, %v10613_v32 }
  0xf4   :  { %v1731_v2 = vcombine.low %v1723_v44, %v1730_v8 }
  0xf5   :  { %9872 = vmatmul.mubr.msk.bf16.gmra.mrb[16].mxu0 %vm1758_vm2, %v1682_v40 }
  0xf6   :  { %9875 = vmatprep.mubr.msk.bf16.mxu0 %vm10323_vm0, %v10322_v55 }
  0xf9   :  { %9908 = vmatmul.mubr.msk.bf16.gmra.mrb[24].mxu1 %vm1758_vm2, %v2210_v3 }
  0xfa   :  { %9911 = vmatprep.mubr.msk.bf16.mxu1 %vm10323_vm0, %v10322_v55 }
  0xfd   :  { %9876 = vmatmul.mubr.msk.bf16.gmra.mrb[20].mxu0 %vm1758_vm2, %v1731_v2 }
 0x101   :  { %9912 = vmatmul.mubr.msk.bf16.gmra.mrb[28].mxu1 %vm1758_vm2, %v2224_v13 }
 0x16d   :  { %v11099_v45 = vpop.f32.mrb[0].mxu1 }
 0x16e   :  { %v9881_v29 = vpop.f32.mrb[1].mxu1 }
 0x16f   :  { %v1865_v36 = vpop.f32.mrb[2].mxu1 }
 0x170   :  { %v9882_v23 = vpop.f32.mrb[3].mxu1 }
 0x17c   :  { %v2292_v26 = vpop.f32.mrb[4].mxu1 }
 0x17d   :  { %v9889_v9 = vpop.f32.mrb[5].mxu1 }
 0x17e   :  { %v2295_v31 = vpop.f32.mrb[6].mxu1 }
 0x17f   :  { %v9890_v20 = vpop.f32.mrb[7].mxu1 }
 0x18c   :  { %v1814_v38 = vpop.f32.mrb[0].mxu0 }
 0x18d   :  { %v2293_v57 = vadd.f32 %v2292_v26, %v1814_v38  ;;  %v9857_v12 = vpop.f32.mrb[1].mxu0 }
 0x18e   :  { %v1817_v19 = vpop.f32.mrb[2].mxu0 }
 0x18f   :  { %v2353_v27 = vadd.f32 %v11104_v41, %v2293_v57  ;;  %v2296_v47 = vadd.f32 %v2295_v31, %v1817_v19  ;;  %v9858_v46 = vpop.f32.mrb[3].mxu0 }
 0x191   :  { %v2366_v42 = vmax.f32 %v2353_v27, 0.0  ;;  %v2354_v59 = vadd.f32 %v11104_v41, %v2296_v47  ;;  %v2300_v48 = vpop.f32.mrb[8].mxu1 }
 0x192   :  { %v9893_v50 = vpop.f32.mrb[9].mxu1 }
 0x193   :  { %v2392_v51 = vcombine.high %v2366_v42, %v2366_v42  ;;  %v2399_v28 = vrot.slane %v2366_v42, %v10613_v32  ;;  %v2367_v61 = vmax.f32 %v2354_v59, 0.0  ;;  %v2303_v34 = vpop.f32.mrb[10].mxu1  ;;  %v10182_v59 = vld [vmem:[%s12607_s3 + $0x30] sm:$0xff]  }
 0x194   :  { %v9894_v6 = vpop.f32.mrb[11].mxu1  ;;  %9915 = vmatprep.subr.bf16.mxu0 %v10182_v59 }
 0x195   :  { %v2406_v4 = vrot.slane %v2392_v51, %v10613_v32  ;;  %v2407_v21 = vcombine.high %v2399_v28, %v2399_v28  ;;  %v2441_v49 = vcombine.high %v2367_v61, %v2367_v61  ;;  %v2415_v11 = vrot.slane %v2399_v28, %v10613_v32  ;;  %9916 = vmatpush3.bf16.msra.mxu0 %v10182_v59 }
 0x196   :  { %v2448_v24 = vrot.slane %v2367_v61, %v10613_v32 }
 0x197   :  { %v2408_v43 = vcombine.high %v2406_v4, %v2406_v4  ;;  %v2422_v33 = vrot.slane %v2406_v4, %v10613_v32  ;;  %v2429_v37 = vrot.slane %v2407_v21, %v10613_v32  ;;  %v2455_v0 = vrot.slane %v2441_v49, %v10613_v32 }
 0x198   :  { %v2456_v39 = vcombine.high %v2448_v24, %v2448_v24  ;;  %v2464_v60 = vrot.slane %v2448_v24, %v10613_v32 }
 0x199   :  { %v2436_v5 = vrot.slane %v2408_v43, %v10613_v32  ;;  %v2438_v52 = vcombine.high %v2422_v33, %v2422_v33  ;;  %v3002_v15 = vcombine.low %v2415_v11, %v2429_v37  ;;  %v9421_v62 = vcombine.high %v2415_v11, %v2429_v37 }
 0x19a   :  { %v2457_v25 = vcombine.high %v2455_v0, %v2455_v0  ;;  %v2478_v22 = vrot.slane %v2456_v39, %v10613_v32  ;;  %v2486_v10 = vcombine.high %v2464_v60, %v2464_v60  ;;  %v2471_v16 = vrot.slane %v2455_v0, %v10613_v32 }
 0x19b   :  { %v3004_v17 = vcombine.low %v2422_v33, %v2436_v5  ;;  %v3011_v14 = vrot.slane %v3002_v15, %v10613_v32  ;;  %v3018_v54 = vrot.slane %v9421_v62, %v10613_v32  ;;  %v1822_v58 = vpop.f32.mrb[4].mxu0  ;;  %v2440_v56 = vcombine.high %v2436_v5, %v2436_v5  ;;  %v3708_v33 = vld [vmem:[#allocation2 + $0x4] sm:$0xf] }
 0x19c   :  { %v2485_v40 = vrot.slane %v2457_v25, %v10613_v32  ;;  %v2488_v30 = vcombine.high %v2478_v22, %v2478_v22  ;;  %v3051_v35 = vcombine.low %v2478_v22, %v2486_v10  ;;  %v9861_v18 = vpop.f32.mrb[5].mxu0  ;;  %v3032_v1 = vrot.slane %v2438_v52, %v10613_v32 }
 0x19d   :  { %v3025_v7 = vrot.slane %v3004_v17, %v10613_v32  ;;  %v3033_v3 = vcombine.low %v3011_v14, %v3018_v54  ;;  %v2301_v53 = vadd.f32 %v2300_v48, %v1822_v58  ;;  %v1825_v44 = vpop.f32.mrb[6].mxu0  ;;  %v3050_v8 = vcombine.low %v2440_v56, %v2464_v60  ;;  %v3705_v48 = vld [vmem:[#allocation2] sm:$0xf] }
 0x19e   :  { %v3052_v63 = vcombine.low %v2488_v30, %v2471_v16  ;;  %v9862_v2 = vpop.f32.mrb[7].mxu0  ;;  %v3066_v29 = vrot.slane %v3051_v35, %v10613_v32  ;;  %v3080_v9 = vrot.slane %v2485_v40, %v10613_v32  ;;  %v2304_v31 = vadd.f32 %v2303_v34, %v1825_v44 }
 0x19f   :  { %v3034_v13 = vcombine.low %v3025_v7, %v3032_v1  ;;  %v2355_v36 = vadd.f32 %v11104_v41, %v2301_v53  ;;  %v3059_v23 = vrot.slane %v3050_v8, %v10613_v32  ;;  %v3041_v20 = vrot.slane %v3033_v3, %v10613_v32 }
 0x1a0   :  { %v3073_v26 = vrot.slane %v3052_v63, %v10613_v32  ;;  %v2356_v27 = vadd.f32 %v11104_v41, %v2304_v31  ;;  %v9422_v34 = vcombine.high %v2471_v16, %v2485_v40 }
 0x1a1   :  { %v3048_v38 = vrot.slane %v3034_v13, %v10613_v32  ;;  %v2368_v57 = vmax.f32 %v2355_v36, 0.0  ;;  %v3081_v12 = vcombine.low %v3059_v23, %v3066_v29 }
 0x1a2   :  { %v3082_v19 = vcombine.low %v3073_v26, %v3080_v9  ;;  %v2369_v28 = vmax.f32 %v2356_v27, 0.0  ;;  %v3107_v17 = vrot.slane %v9422_v34, %v10613_v32 }
 0x1a3   :  { %v3049_v47 = vcombine.low %v3041_v20, %v3048_v38  ;;  %v2490_v46 = vcombine.high %v2368_v57, %v2368_v57  ;;  %v2497_v42 = vrot.slane %v2368_v57, %v10613_v32  ;;  %v3089_v50 = vrot.slane %v3081_v12, %v10613_v32 }
 0x1a4   :  { %v3096_v51 = vrot.slane %v3082_v19, %v10613_v32  ;;  %v2539_v11 = vcombine.high %v2369_v28, %v2369_v28  ;;  %v2546_v24 = vrot.slane %v2369_v28, %v10613_v32 }
 0x1a5   :  { %v3688_v61 = vpack.c.bf16 %v3049_v47, %v3049_v47  ;;  %v2504_v6 = vrot.slane %v2490_v46, %v10613_v32  ;;  %v2505_v4 = vcombine.high %v2497_v42, %v2497_v42  ;;  %v2513_v49 = vrot.slane %v2497_v42, %v10613_v32 }
 0x1a6   :  { %v3097_v21 = vcombine.low %v3089_v50, %v3096_v51  ;;  %v2553_v5 = vrot.slane %v2539_v11, %v10613_v32  ;;  %v2554_v52 = vcombine.high %v2546_v24, %v2546_v24  ;;  %v2562_v15 = vrot.slane %v2546_v24, %v10613_v32  ;;  %v3711_v51 = vld [vmem:[#allocation2 + $0x8] sm:$0xf] }
 0x1a7   :  { %v3706_v43 = vsel %vm11134_vm5, %v3688_v61, %v3705_v48  ;;  %v2506_v37 = vcombine.high %v2504_v6, %v2504_v6  ;;  %v2520_v0 = vrot.slane %v2504_v6, %v10613_v32  ;;  %v2527_v39 = vrot.slane %v2505_v4, %v10613_v32 }
 0x1a8   :  { %3707 = vst [vmem:[#allocation2] sm:$0xf] %v3706_v43  ;;  %v3689_v60 = vpack.c.bf16 %v3097_v21, %v3097_v21  ;;  %v2555_v16 = vcombine.high %v2553_v5, %v2553_v5  ;;  %v2569_v35 = vrot.slane %v2553_v5, %v10613_v32  ;;  %v2576_v18 = vrot.slane %v2554_v52, %v10613_v32 }
 0x1a9   :  { %v2534_v62 = vrot.slane %v2506_v37, %v10613_v32  ;;  %v2536_v25 = vcombine.high %v2520_v0, %v2520_v0  ;;  %v3099_v22 = vcombine.low %v2513_v49, %v2527_v39  ;;  %v9423_v10 = vcombine.high %v2513_v49, %v2527_v39 }
 0x1aa   :  { %v3709_v14 = vsel %vm11134_vm5, %v3689_v60, %v3708_v33  ;;  %v3128_v54 = vrot.slane %v2520_v0, %v10613_v32  ;;  %v2583_v7 = vrot.slane %v2555_v16, %v10613_v32  ;;  %v2584_v1 = vcombine.high %v2562_v15, %v2562_v15 }
 0x1ab   :  { %3710 = vst [vmem:[#allocation2 + $0x4] sm:$0xf] %v3709_v14  ;;  %v3114_v58 = vrot.slane %v3099_v22, %v10613_v32  ;;  %v3121_v56 = vrot.slane %v9423_v10, %v10613_v32  ;;  %v3146_v40 = vcombine.low %v2534_v62, %v2536_v25  ;;  %v2538_v30 = vcombine.high %v2534_v62, %v2534_v62 }
 0x1ac   :  { %v2308_v3 = vpop.f32.mrb[12].mxu1  ;;  %v2586_v2 = vcombine.high %v2576_v18, %v2576_v18  ;;  %v3148_v13 = vcombine.low %v2576_v18, %v2584_v1  ;;  %v3194_v29 = vcombine.low %v2569_v35, %v2583_v7  ;;  %v9424_v36 = vcombine.high %v2569_v35, %v2583_v7 }
 0x1ad   :  { %v3129_v53 = vcombine.low %v3107_v17, %v3114_v58  ;;  %v3130_v44 = vcombine.low %v3121_v56, %v3128_v54  ;;  %v3147_v8 = vcombine.low %v2538_v30, %v2562_v15  ;;  %v9897_v63 = vpop.f32.mrb[13].mxu1  ;;  %v3155_v31 = vrot.slane %v3146_v40, %v10613_v32  ;;  %v3714_v56 = vld [vmem:[#allocation2 + $0xc] sm:$0xf] }
 0x1ae   :  { %v2311_v23 = vpop.f32.mrb[14].mxu1  ;;  %v3169_v19 = vrot.slane %v3148_v13, %v10613_v32  ;;  %v3176_v27 = vrot.slane %v2586_v2, %v10613_v32  ;;  %v3203_v47 = vrot.slane %v3194_v29, %v10613_v32  ;;  %v3210_v46 = vrot.slane %v9424_v36, %v10613_v32 }
 0x1af   :  { %v3137_v26 = vrot.slane %v3129_v53, %v10613_v32  ;;  %v3144_v9 = vrot.slane %v3130_v44, %v10613_v32  ;;  %v3162_v20 = vrot.slane %v3147_v8, %v10613_v32  ;;  %v1830_v38 = vpop.f32.mrb[8].mxu0  ;;  %v9898_v57 = vpop.f32.mrb[15].mxu1  ;;  %v3747_v12 = vld [vmem:[#allocation2] sm:$0x7] }
 0x1b0   :  { %v9865_v42 = vpop.f32.mrb[9].mxu0  ;;  %v10122_v48 = vld [vmem:[#allocation2] ss:$0 sps:$4 sm:$0xee]   ;;  %v2309_v61 = vadd.f32 %v2308_v3, %v1830_v38  ;;  %v9431_v6 = vcombine.low %v3747_v12, %v3747_v12  ;;  %v3178_v4 = vcombine.low %v3169_v19, %v3176_v27  ;;  %v3225_v21 = vcombine.low %v3203_v47, %v3210_v46 }
 0x1b1   :  { %v3145_v50 = vcombine.low %v3137_v26, %v3144_v9  ;;  %v3177_v28 = vcombine.low %v3155_v31, %v3162_v20  ;;  %v1833_v34 = vpop.f32.mrb[10].mxu0  ;;  %v3917_v24 = vrot.slane %v10122_v48, 1 }
 0x1b2   :  { %v2312_v49 = vadd.f32 %v2311_v23, %v1833_v34  ;;  %v9866_v11 = vpop.f32.mrb[11].mxu0  ;;  %v4301_v43 = vld [vmem:[#allocation2 + $0x4] sm:$0x7]  ;;  %v2357_v0 = vadd.f32 %v11104_v41, %v2309_v61  ;;  %v3192_v60 = vrot.slane %v3178_v4, %v10613_v32  ;;  %v3798_v52 = vshrl.u32 %v9431_v6, 16 }
 0x1b3   :  { %v3690_v33 = vpack.c.bf16 %v3145_v50, %v3145_v50  ;;  %v3185_v37 = vrot.slane %v3177_v28, %v10613_v32  ;;  %v10124_v39 = vld [vmem:[#allocation2 + $0x4] ss:$0 sps:$4 sm:$0xee]   ;;  %3927 = vrot.lane.b32.xlu1 %v3917_v24, %s10325_s2  ;;  %v3800_v15 = vshll.u32 %v9431_v6, 16  ;;  %v11175_v22 = vrot.slane %v3225_v21, %v10613_v32 }
 0x1b4   :  { %v2358_v5 = vadd.f32 %v11104_v41, %v2312_v49  ;;  %v10126_v62 = vld [vmem:[#allocation2 + $0x4] ss:$0 sps:$4 sm:$0xee]   ;;  %v2370_v10 = vmax.f32 %v2357_v0, 0.0  ;;  %v9451_v17 = vcombine.low %v4301_v43, %v4301_v43  ;;  %v4471_v58 = vrot.slane %v10124_v39, 1 }
 0x1b5   :  { %v3712_v25 = vsel %vm11134_vm5, %v3690_v33, %v3711_v51  ;;  %v3193_v14 = vcombine.low %v3185_v37, %v3192_v60  ;;  %v3802_v16 = vrot.slane %v3800_v15, 1  ;;  %v3918_v18 = vrot.slane %v10126_v62, 1  ;;  %v3748_v50 = vld [vmem:[#allocation2 + $0x4] sm:$0x7] }
 0x1b6   :  { %3713 = vst [vmem:[#allocation2 + $0x8] sm:$0xf] %v3712_v25  ;;  %v2371_v54 = vmax.f32 %v2358_v5, 0.0  ;;  %v2588_v40 = vcombine.high %v2370_v10, %v2370_v10  ;;  %v2595_v30 = vrot.slane %v2370_v10, %v10613_v32  ;;  %v4354_v35 = vshll.u32 %v9451_v17, 16 }
 0x1b7   :  { %v3691_v7 = vpack.c.bf16 %v3193_v14, %v3193_v14  ;;  %v3803_v53 = vor.u32 %v3802_v16, %v3798_v52  ;;  %4481 = vrot.lane.b32.xlu1 %v4471_v58, %s10325_s2  ;;  %v4352_v23 = vshrl.u32 %v9451_v17, 16  ;;  %v9432_v39 = vcombine.low %v3748_v50, %v3748_v50 }
 0x1b8   :  { %v2637_v1 = vcombine.high %v2371_v54, %v2371_v54  ;;  %v2644_v3 = vrot.slane %v2371_v54, %v10613_v32  ;;  %v2602_v44 = vrot.slane %v2588_v40, %v10613_v32  ;;  %v2603_v8 = vcombine.high %v2595_v30, %v2595_v30 }
 0x1b9   :  { %v2611_v63 = vrot.slane %v2595_v30, %v10613_v32  ;;  %v4356_v2 = vrot.slane %v4354_v35, 1  ;;  %v3715_v13 = vsel %vm11134_vm5, %v3691_v7, %v3714_v56  ;;  %3867 = vrot.lane.b32.xlu0 %v3803_v53, %s10326_s28  ;;  %v3807_v35 = vshll.u32 %v9432_v39, 16 }
 0x1ba   :  { %v2651_v29 = vrot.slane %v2637_v1, %v10613_v32  ;;  %v2652_v36 = vcombine.high %v2644_v3, %v2644_v3  ;;  %3716 = vst [vmem:[#allocation2 + $0xc] sm:$0xf] %v3715_v13  ;;  %v2604_v26 = vcombine.high %v2602_v44, %v2602_v44  ;;  %v2618_v9 = vrot.slane %v2602_v44, %v10613_v32 }
 0x1bb   :  { %v2625_v31 = vrot.slane %v2603_v8, %v10613_v32  ;;  %v2633_v20 = vcombine.high %v2611_v63, %v2611_v63  ;;  %v2660_v57 = vrot.slane %v2644_v3, %v10613_v32  ;;  %v4357_v19 = vor.u32 %v4356_v2, %v4352_v23  ;;  %3929 = vrot.lane.b32.xlu1 %v3918_v18, %s10325_s2 }
 0x1bc   :  { %v2653_v38 = vcombine.high %v2651_v29, %v2651_v29  ;;  %v2674_v12 = vrot.slane %v2652_v36, %v10613_v32  ;;  %v2632_v27 = vrot.slane %v2604_v26, %v10613_v32  ;;  %v2634_v47 = vcombine.high %v2618_v9, %v2618_v9  ;;  %v2316_v48 = vpop.f32.mrb[16].mxu1  ;;  %v3717_v26 = vld [vmem:[#allocation2 + $0x10] sm:$0xf] }
 0x1bd   :  { %v2635_v46 = vcombine.high %v2625_v31, %v2625_v31  ;;  %v3196_v42 = vcombine.low %v2611_v63, %v2625_v31  ;;  %v3224_v51 = vrot.slane %v2633_v20, %v10613_v32  ;;  %v2667_v28 = vrot.slane %v2651_v29, %v10613_v32  ;;  %v9901_v6 = vpop.f32.mrb[17].mxu1  ;;  %4421 = vrot.lane.b32.xlu0 %v4357_v19, %s10326_s28  ;;  %v10128_v60 = vld [vmem:[#allocation2 + $0x8] ss:$0 sps:$4 sm:$0xee]  }
 0x1be   :  { %v2681_v61 = vrot.slane %v2653_v38, %v10613_v32  ;;  %v9425_v34 = vcombine.high %v2660_v57, %v2674_v12  ;;  %v3243_v49 = vcombine.low %v2632_v27, %v2634_v47  ;;  %v2636_v11 = vcombine.high %v2632_v27, %v2632_v27  ;;  %v2319_v24 = vpop.f32.mrb[18].mxu1  ;;  %v10129_v18 = vld [vmem:[#allocation2 + $0x8] ss:$0 sps:$4 sm:$0xee]  }
 0x1bf   :  { %v3217_v4 = vrot.slane %v3196_v42, %v10613_v32  ;;  %v3242_v21 = vcombine.low %v2635_v46, %v2618_v9  ;;  %v3272_v43 = vrot.slane %v2674_v12, %v10613_v32  ;;  %v9902_v0 = vpop.f32.mrb[19].mxu1  ;;  %v4472_v44 = vrot.slane %v10128_v60, 1  ;;  %v3749_v8 = vld [vmem:[#allocation2 + $0x8] sm:$0x7] }
 0x1c0   :  { %v3291_v33 = vcombine.low %v2667_v28, %v2681_v61  ;;  %v9426_v37 = vcombine.high %v2667_v28, %v2681_v61  ;;  %v3258_v15 = vrot.slane %v3243_v49, %v10613_v32  ;;  %v3244_v62 = vcombine.low %v2636_v11, %v2660_v57  ;;  %v1838_v25 = vpop.f32.mrb[12].mxu0  ;;  %v4302_v57 = vld [vmem:[#allocation2 + $0x8] sm:$0x7] }
 0x1c1   :  { %v3226_v5 = vcombine.low %v3217_v4, %v3224_v51  ;;  %v3251_v52 = vrot.slane %v3242_v21, %v10613_v32  ;;  %v3299_v10 = vrot.slane %v9425_v34, %v10613_v32  ;;  %v2317_v14 = vadd.f32 %v2316_v48, %v1838_v25  ;;  %v9869_v16 = vpop.f32.mrb[13].mxu0  ;;  %4483 = vrot.lane.b32.xlu1 %v4472_v44, %s10325_s2  ;;  %v3720_v21 = vld [vmem:[#allocation2 + $0x14] sm:$0xf]  ;;  %v11448_v59 = vld [vmem:[#allocation2 + $0xc] sm:$0x7] }
 0x1c2   :  { %v3306_v17 = vrot.slane %v3291_v33, %v10613_v32  ;;  %v11203_v54 = vrot.slane %v9426_v37, %v10613_v32  ;;  %v3265_v40 = vrot.slane %v3244_v62, %v10613_v32  ;;  %v1841_v30 = vpop.f32.mrb[14].mxu0  ;;  %v3805_v29 = vshrl.u32 %v9432_v39, 16 }
 0x1c3   :  { %v3240_v58 = vrot.slane %v3226_v5, %v10613_v32  ;;  %v3273_v56 = vcombine.low %v3251_v52, %v3258_v15  ;;  %v2359_v1 = vadd.f32 %v11104_v41, %v2317_v14  ;;  %v2320_v3 = vadd.f32 %v2319_v24, %v1841_v30  ;;  %v9870_v53 = vpop.f32.mrb[15].mxu0 }
 0x1c4   :  { %v3321_v7 = vcombine.low %v3299_v10, %v3306_v17  ;;  %v3274_v2 = vcombine.low %v3265_v40, %v3272_v43  ;;  %v2324_v13 = vpop.f32.mrb[20].mxu1  ;;  %v3809_v36 = vrot.slane %v3807_v35, 1  ;;  %v11218_v47 = vcombine.low %v3749_v8, %v3749_v8 }
 0x1c5   :  { %v3241_v63 = vcombine.low %v11175_v22, %v3240_v58  ;;  %v3281_v23 = vrot.slane %v3273_v56, %v10613_v32  ;;  %v2372_v31 = vmax.f32 %v2359_v1, 0.0  ;;  %v2360_v20 = vadd.f32 %v11104_v41, %v2320_v3  ;;  %v9905_v38 = vpop.f32.mrb[21].mxu1 }
 0x1c6   :  { %v11211_v9 = vrot.slane %v3321_v7, %v10613_v32  ;;  %v3288_v22 = vrot.slane %v3274_v2, %v10613_v32  ;;  %v11216_v19 = vpop.f32.mrb[22].mxu1  ;;  %v3810_v27 = vor.u32 %v3809_v36, %v3805_v29  ;;  %v3919_v51 = vrot.slane %v10129_v18, 1 }
 0x1c7   :  { %v3692_v12 = vpack.c.bf16 %v3241_v63, %v3241_v63  ;;  %v2686_v46 = vcombine.high %v2372_v31, %v2372_v31  ;;  %v2693_v42 = vrot.slane %v2372_v31, %v10613_v32  ;;  %v2373_v48 = vmax.f32 %v2360_v20, 0.0  ;;  %v9906_v50 = vpop.f32.mrb[23].mxu1 }
 0x1c8   :  { %v3289_v61 = vcombine.low %v3281_v23, %v3288_v22  ;;  %v1846_v34 = vpop.f32.mrb[16].mxu0  ;;  %3869 = vrot.lane.b32.xlu0 %v3810_v27, %s10326_s28  ;;  %v3814_v6 = vshll.u32 %v11218_v47, 16  ;;  %v11225_v4 = vcombine.low %v4302_v57, %v4302_v57 }
 0x1c9   :  { %v3718_v28 = vsel %vm11134_vm5, %v3692_v12, %v3717_v26  ;;  %v2700_v49 = vrot.slane %v2686_v46, %v10613_v32  ;;  %v2701_v11 = vcombine.high %v2693_v42, %v2693_v42  ;;  %v2709_v24 = vrot.slane %v2693_v42, %v10613_v32  ;;  %v9873_v33 = vpop.f32.mrb[17].mxu0 }
 0x1ca   :  { %3719 = vst [vmem:[#allocation2 + $0x10] sm:$0xf] %v3718_v28  ;;  %v2735_v43 = vcombine.high %v2373_v48, %v2373_v48  ;;  %v3693_v37 = vpack.c.bf16 %v3289_v61, %v3289_v61  ;;  %v2742_v0 = vrot.slane %v2373_v48, %v10613_v32  ;;  %v2325_v39 = vadd.f32 %v2324_v13, %v1846_v34  ;;  %v11230_v60 = vpop.f32.mrb[18].mxu0  ;;  %v3723_v34 = vld [vmem:[#allocation2 + $0x18] sm:$0xf] }
 0x1cb   :  { %v11232_v5 = vrot.slane %v3814_v6, 1  ;;  %v2702_v52 = vcombine.high %v2700_v49, %v2700_v49  ;;  %v2716_v15 = vrot.slane %v2700_v49, %v10613_v32  ;;  %v2723_v62 = vrot.slane %v2701_v11, %v10613_v32  ;;  %v9874_v10 = vpop.f32.mrb[19].mxu0 }
 0x1cc   :  { %v2731_v25 = vcombine.high %v2709_v24, %v2709_v24  ;;  %v3721_v17 = vsel %vm11134_vm5, %v3693_v37, %v3720_v21  ;;  %v3320_v14 = vrot.slane %v2709_v24, %v10613_v32  ;;  %v2749_v16 = vrot.slane %v2735_v43, %v10613_v32  ;;  %v2332_v56 = vpop.f32.mrb[24].mxu1  ;;  %3931 = vrot.lane.b32.xlu0 %v3919_v51, %s10325_s2 }
 0x1cd   :  { %v2750_v58 = vcombine.high %v2742_v0, %v2742_v0  ;;  %3722 = vst [vmem:[#allocation2 + $0x14] sm:$0xf] %v3721_v17  ;;  %v2730_v40 = vrot.slane %v2702_v52, %v10613_v32  ;;  %v2732_v30 = vcombine.high %v2716_v15, %v2716_v15  ;;  %v2733_v35 = vcombine.high %v2723_v62, %v2723_v62  ;;  %v9909_v7 = vpop.f32.mrb[25].mxu1 }
 0x1ce   :  { %v3338_v18 = vcombine.low %v2723_v62, %v2731_v25  ;;  %v3322_v1 = vcombine.low %v11203_v54, %v3320_v14  ;;  %v2751_v3 = vcombine.high %v2749_v16, %v2749_v16  ;;  %v2758_v53 = vrot.slane %v2742_v0, %v10613_v32  ;;  %v11245_v8 = vpop.f32.mrb[26].mxu1 }
 0x1cf   :  { %v2765_v44 = vrot.slane %v2749_v16, %v10613_v32  ;;  %v2734_v63 = vcombine.high %v2730_v40, %v2730_v40  ;;  %v3339_v2 = vcombine.low %v2733_v35, %v2716_v15  ;;  %v3340_v13 = vcombine.low %v2730_v40, %v2732_v30  ;;  %v9910_v36 = vpop.f32.mrb[27].mxu1 }
 0x1d0   :  { %v3347_v29 = vrot.slane %v3338_v18, %v10613_v32  ;;  %v3336_v23 = vrot.slane %v3322_v1, %v10613_v32  ;;  %v2772_v26 = vrot.slane %v2750_v58, %v10613_v32  ;;  %v2779_v31 = vrot.slane %v2751_v3, %v10613_v32  ;;  %v1854_v20 = vpop.f32.mrb[20].mxu0  ;;  %v3726_v18 = vld [vmem:[#allocation2 + $0x1c] sm:$0xf] }
 0x1d1   :  { %v2781_v54 = vcombine.high %v2765_v44, %v2765_v44  ;;  %v3354_v38 = vrot.slane %v3339_v2, %v10613_v32  ;;  %v3361_v57 = vrot.slane %v3340_v13, %v10613_v32  ;;  %v3368_v12 = vrot.slane %v2734_v63, %v10613_v32  ;;  %v9877_v27 = vpop.f32.mrb[21].mxu0 }
 0x1d2   :  { %v2361_v22 = vadd.f32 %v11104_v41, %v2325_v39  ;;  %v3337_v46 = vcombine.low %v11211_v9, %v3336_v23  ;;  %v3386_v42 = vcombine.low %v2758_v53, %v2772_v26  ;;  %v9427_v48 = vcombine.high %v2758_v53, %v2772_v26  ;;  %v11256_v51 = vpop.f32.mrb[22].mxu0  ;;  %v3729_v23 = vld [vmem:[#allocation2 + $0x20] sm:$0xf] }
 0x1d3   :  { %v3388_v50 = vcombine.low %v2765_v44, %v2779_v31  ;;  %v3369_v28 = vcombine.low %v3347_v29, %v3354_v38  ;;  %v3370_v61 = vcombine.low %v3361_v57, %v3368_v12  ;;  %v3416_v6 = vrot.slane %v2781_v54, %v10613_v32  ;;  %v9878_v49 = vpop.f32.mrb[23].mxu0 }
 0x1d4   :  { %v2374_v21 = vmax.f32 %v2361_v22, 0.0  ;;  %v3694_v11 = vpack.c.bf16 %v3337_v46, %v3337_v46  ;;  %v3395_v24 = vrot.slane %v3386_v42, %v10613_v32  ;;  %v3402_v43 = vrot.slane %v9427_v48, %v10613_v32  ;;  %v11262_v9 = vpop.f32.mrb[28].mxu1 }
 0x1d5   :  { %v3409_v33 = vrot.slane %v3388_v50, %v10613_v32  ;;  %v3377_v37 = vrot.slane %v3369_v28, %v10613_v32  ;;  %v3384_v0 = vrot.slane %v3370_v61, %v10613_v32  ;;  %v2783_v39 = vcombine.high %v2779_v31, %v2779_v31  ;;  %v9913_v15 = vpop.f32.mrb[29].mxu1 }
 0x1d6   :  { %v2784_v52 = vcombine.high %v2374_v21, %v2374_v21  ;;  %v3724_v62 = vsel %vm11134_vm5, %v3694_v11, %v3723_v34  ;;  %v3417_v25 = vcombine.low %v3395_v24, %v3402_v43  ;;  %v2791_v17 = vrot.slane %v2374_v21, %v10613_v32  ;;  %v2343_v14 = vpop.f32.mrb[30].mxu1 }
 0x1d7   :  { %v3418_v10 = vcombine.low %v3409_v33, %v3416_v6  ;;  %v3385_v16 = vcombine.low %v3377_v37, %v3384_v0  ;;  %3725 = vst [vmem:[#allocation2 + $0x18] sm:$0xf] %v3724_v62  ;;  %v2328_v40 = vadd.f32 %v11216_v19, %v11230_v60  ;;  %v2333_v30 = vadd.f32 %v2332_v56, %v1854_v20  ;;  %v9914_v35 = vpop.f32.mrb[31].mxu1 }
 0x1d8   :  { %v2798_v58 = vrot.slane %v2784_v52, %v10613_v32  ;;  %v3425_v7 = vrot.slane %v3417_v25, %v10613_v32  ;;  %v2799_v3 = vcombine.high %v2791_v17, %v2791_v17  ;;  %v2807_v53 = vrot.slane %v2791_v17, %v10613_v32 }
 0x1d9   :  { %v3432_v1 = vrot.slane %v3418_v10, %v10613_v32  ;;  %v3695_v44 = vpack.c.bf16 %v3385_v16, %v3385_v16  ;;  %v2362_v13 = vadd.f32 %v11104_v41, %v2328_v40  ;;  %v2363_v54 = vadd.f32 %v11104_v41, %v2333_v30 }
 0x1da   :  { %v2800_v63 = vcombine.high %v2798_v58, %v2798_v58  ;;  %v2814_v2 = vrot.slane %v2798_v58, %v10613_v32  ;;  %v2821_v36 = vrot.slane %v2799_v3, %v10613_v32  ;;  %v2829_v19 = vcombine.high %v2807_v53, %v2807_v53 }
 0x1db   :  { %v3433_v29 = vcombine.low %v3425_v7, %v3432_v1  ;;  %v3434_v60 = vcombine.low %v2783_v39, %v2807_v53  ;;  %v3727_v56 = vsel %vm11134_vm5, %v3695_v44, %v3726_v18  ;;  %v2375_v31 = vmax.f32 %v2362_v13, 0.0 }
 0x1dc   :  { %v2828_v26 = vrot.slane %v2800_v63, %v10613_v32  ;;  %3728 = vst [vmem:[#allocation2 + $0x1c] sm:$0xf] %v3727_v56  ;;  %v2831_v38 = vcombine.high %v2821_v36, %v2821_v36  ;;  %v3435_v57 = vcombine.low %v2821_v36, %v2829_v19  ;;  %v2376_v61 = vmax.f32 %v2363_v54, 0.0 }
 0x1dd   :  { %v3696_v20 = vpack.c.bf16 %v3433_v29, %v3433_v29  ;;  %v3443_v12 = vrot.slane %v3434_v60, %v10613_v32  ;;  %v2833_v46 = vcombine.high %v2375_v31, %v2375_v31  ;;  %v2840_v42 = vrot.slane %v2375_v31, %v10613_v32 }
 0x1de   :  { %v3464_v22 = vrot.slane %v2828_v26, %v10613_v32  ;;  %v9428_v27 = vcombine.high %v2814_v2, %v2828_v26  ;;  %v3436_v50 = vcombine.low %v2831_v38, %v2814_v2  ;;  %v3450_v28 = vrot.slane %v3435_v57, %v10613_v32  ;;  %v3732_v2 = vld [vmem:[#allocation2 + $0x24] sm:$0xf] }
 0x1df   :  { %v3730_v48 = vsel %vm11134_vm5, %v3696_v20, %v3729_v23  ;;  %v2847_v6 = vrot.slane %v2833_v46, %v10613_v32  ;;  %v2848_v21 = vcombine.high %v2840_v42, %v2840_v42  ;;  %v2856_v49 = vrot.slane %v2840_v42, %v10613_v32 }
 0x1e0   :  { %3731 = vst [vmem:[#allocation2 + $0x20] sm:$0xf] %v3730_v48  ;;  %v3491_v34 = vrot.slane %v9428_v27, %v10613_v32  ;;  %v3457_v11 = vrot.slane %v3436_v50, %v10613_v32  ;;  %v3465_v24 = vcombine.low %v3443_v12, %v3450_v28  ;;  %v2882_v43 = vcombine.high %v2376_v61, %v2376_v61  ;;  %v11318_v28 = vld [vmem:[#allocation2 + $0xc] sm:$0x7] }
 0x1e1   :  { %v2889_v33 = vrot.slane %v2376_v61, %v10613_v32  ;;  %v2849_v37 = vcombine.high %v2847_v6, %v2847_v6  ;;  %v2863_v0 = vrot.slane %v2847_v6, %v10613_v32  ;;  %v2870_v39 = vrot.slane %v2848_v21, %v10613_v32  ;;  %v3735_v61 = vld [vmem:[#allocation2 + $0x28] sm:$0xf] }
 0x1e2   :  { %v2336_v52 = vadd.f32 %v11245_v8, %v11256_v51  ;;  %v3466_v15 = vcombine.low %v3457_v11, %v3464_v22  ;;  %v3473_v62 = vrot.slane %v3465_v24, %v10613_v32  ;;  %v2896_v25 = vrot.slane %v2882_v43, %v10613_v32 }
 0x1e3   :  { %v2897_v10 = vcombine.high %v2889_v33, %v2889_v33  ;;  %v2877_v17 = vrot.slane %v2849_v37, %v10613_v32  ;;  %v2879_v14 = vcombine.high %v2863_v0, %v2863_v0  ;;  %v3483_v16 = vcombine.low %v2856_v49, %v2870_v39 }
 0x1e4   :  { %v9429_v58 = vcombine.high %v2856_v49, %v2870_v39  ;;  %v3480_v40 = vrot.slane %v3466_v15, %v10613_v32  ;;  %v3512_v30 = vrot.slane %v2863_v0, %v10613_v32  ;;  %v2898_v35 = vcombine.high %v2896_v25, %v2896_v25 }
 0x1e5   :  { %v2905_v18 = vrot.slane %v2889_v33, %v10613_v32  ;;  %v3498_v8 = vrot.slane %v3483_v16, %v10613_v32  ;;  %v3530_v7 = vcombine.low %v2877_v17, %v2879_v14  ;;  %v2881_v1 = vcombine.high %v2877_v17, %v2877_v17  ;;  %v3738_v17 = vld [vmem:[#allocation2 + $0x2c] sm:$0xf] }
 0x1e6   :  { %v3505_v51 = vrot.slane %v9429_v58, %v10613_v32  ;;  %v3481_v3 = vcombine.low %v3473_v62, %v3480_v40  ;;  %v2912_v53 = vrot.slane %v2896_v25, %v10613_v32  ;;  %v2919_v44 = vrot.slane %v2897_v10, %v10613_v32  ;;  %v10133_v25 = vld [vmem:[#allocation2 + $0xc] ss:$0 sps:$4 sm:$0xee]  }
 0x1e7   :  { %v2926_v63 = vrot.slane %v2898_v35, %v10613_v32  ;;  %v3513_v13 = vcombine.low %v3491_v34, %v3498_v8  ;;  %v2927_v36 = vcombine.high %v2905_v18, %v2905_v18  ;;  %v3531_v19 = vcombine.low %v2881_v1, %v2905_v18 }
 0x1e8   :  { %v3514_v29 = vcombine.low %v3505_v51, %v3512_v30  ;;  %v3697_v60 = vpack.c.bf16 %v3481_v3, %v3481_v3  ;;  %v2929_v56 = vcombine.high %v2919_v44, %v2919_v44  ;;  %v3539_v23 = vrot.slane %v3530_v7, %v10613_v32 }
 0x1e9   :  { %v3578_v26 = vcombine.low %v2912_v53, %v2926_v63  ;;  %v3521_v31 = vrot.slane %v3513_v13, %v10613_v32  ;;  %v3532_v20 = vcombine.low %v2919_v44, %v2927_v36  ;;  %v3546_v38 = vrot.slane %v3531_v19, %v10613_v32 }
 0x1ea   :  { %v3528_v54 = vrot.slane %v3514_v29, %v10613_v32  ;;  %v3733_v57 = vsel %vm11134_vm5, %v3697_v60, %v3732_v2  ;;  %v3560_v12 = vrot.slane %v2929_v56, %v10613_v32  ;;  %v9430_v22 = vcombine.high %v2912_v53, %v2926_v63  ;;  %v11342_v63 = vld [vmem:[#allocation2 + $0xc] sm:$0x7] }
 0x1eb   :  { %v3812_v27 = vshrl.u32 %v11218_v47, 16  ;;  %3734 = vst [vmem:[#allocation2 + $0x24] sm:$0xf] %v3733_v57  ;;  %v3553_v42 = vrot.slane %v3532_v20, %v10613_v32  ;;  %v3561_v48 = vcombine.low %v3539_v23, %v3546_v38  ;;  %v2364_v50 = vadd.f32 %v11104_v41, %v2336_v52  ;;  %v11351_v57 = vld [vmem:[#allocation2 + $0x10] sm:$0x7] }
 0x1ec   :  { %v3529_v46 = vcombine.low %v3521_v31, %v3528_v54  ;;  %v3587_v34 = vrot.slane %v3578_v26, %v10613_v32  ;;  %v3594_v6 = vrot.slane %v9430_v22, %v10613_v32  ;;  %v2341_v21 = vadd.f32 %v11262_v9, %v11099_v45  ;;  %v10135_v26 = vld [vmem:[#allocation2 + $0xc] ss:$0 sps:$4 sm:$0xee]  }
 0x1ed   :  { %v3817_v49 = vor.u32 %v11232_v5, %v3812_v27  ;;  %v3562_v11 = vcombine.low %v3553_v42, %v3560_v12  ;;  %v2377_v24 = vmax.f32 %v2364_v50, 0.0  ;;  %v3569_v43 = vrot.slane %v3561_v48, %v10613_v32  ;;  %v11357_v27 = vld [vmem:[#allocation2 + $0x10] sm:$0x7] }
 0x1ee   :  { %v3698_v47 = vpack.c.bf16 %v3529_v46, %v3529_v46  ;;  %v2365_v33 = vadd.f32 %v11104_v41, %v2341_v21  ;;  %v4361_v37 = vshll.u32 %v11225_v4, 16  ;;  %v9453_v0 = vcombine.low %v11318_v28, %v11318_v28 }
 0x1ef   :  { %3871 = vrot.lane.b32.xlu1 %v3817_v49, %s10326_s28  ;;  %v3576_v45 = vrot.slane %v3562_v11, %v10613_v32  ;;  %v2931_v5 = vcombine.high %v2377_v24, %v2377_v24  ;;  %v2938_v9 = vrot.slane %v2377_v24, %v10613_v32  ;;  %v3609_v52 = vcombine.low %v3587_v34, %v3594_v6 }
 0x1f0   :  { %v3736_v39 = vsel %vm11134_vm5, %v3698_v47, %v3735_v61  ;;  %v2378_v15 = vmax.f32 %v2365_v33, 0.0  ;;  %v4359_v41 = vshrl.u32 %v11225_v4, 16  ;;  %v4363_v62 = vrot.slane %v4361_v37, 1  ;;  %v10137_v61 = vld [vmem:[#allocation2 + $0x10] ss:$0 sps:$4 sm:$0xee]  }
 0x1f1   :  { %3737 = vst [vmem:[#allocation2 + $0x28] sm:$0xf] %v3736_v39  ;;  %v3577_v10 = vcombine.low %v3569_v43, %v3576_v45  ;;  %v2945_v14 = vrot.slane %v2931_v5, %v10613_v32  ;;  %v2946_v16 = vcombine.high %v2938_v9, %v2938_v9  ;;  %v2954_v58 = vrot.slane %v2938_v9, %v10613_v32  ;;  %v10136_v43 = vld [vmem:[#allocation2 + $0x10] ss:$0 sps:$4 sm:$0xee]  }
 0x1f2   :  { %v2986_v40 = vrot.slane %v2378_v15, %v10613_v32  ;;  %v4364_v30 = vor.u32 %v4363_v62, %v4359_v41  ;;  %v4366_v35 = vshrl.u32 %v9453_v0, 16  ;;  %v4368_v18 = vshll.u32 %v9453_v0, 16  ;;  %v11368_v37 = vld [vmem:[#allocation2 + $0x14] sm:$0x7]  ;;  %v11372_v5 = vld [vmem:[#allocation2 + $0x1c] sm:$0x7] }
 0x1f3   :  { %v3699_v8 = vpack.c.bf16 %v3577_v10, %v3577_v10  ;;  %v2947_v51 = vcombine.high %v2945_v14, %v2945_v14  ;;  %v2961_v7 = vrot.slane %v2945_v14, %v10613_v32  ;;  %v2968_v4 = vrot.slane %v2946_v16, %v10613_v32  ;;  %v3741_v14 = vld [vmem:[#allocation2 + $0x30] sm:$0xf] }
 0x1f4   :  { %v2976_v1 = vcombine.high %v2954_v58, %v2954_v58  ;;  %v2987_v3 = vcombine.high %v2986_v40, %v2986_v40  ;;  %4423 = vrot.lane.b32.xlu0 %v4364_v30, %s10326_s28  ;;  %v4370_v53 = vrot.slane %v4368_v18, 1  ;;  %v4473_v44 = vrot.slane %v10133_v25, 1 }
 0x1f5   :  { %v3739_v2 = vsel %vm11134_vm5, %v3699_v8, %v3738_v17  ;;  %v2975_v13 = vrot.slane %v2947_v51, %v10613_v32  ;;  %v2977_v29 = vcombine.high %v2961_v7, %v2961_v7  ;;  %v2978_v36 = vcombine.high %v2968_v4, %v2968_v4 }
 0x1f6   :  { %3740 = vst [vmem:[#allocation2 + $0x2c] sm:$0xf] %v3739_v2  ;;  %v3580_v19 = vcombine.low %v2954_v58, %v2968_v4  ;;  %v2994_v60 = vrot.slane %v2986_v40, %v10613_v32  ;;  %v3001_v56 = vrot.slane %v2987_v3, %v10613_v32  ;;  %v4371_v23 = vor.u32 %v4370_v53, %v4366_v35  ;;  %v11380_v35 = vld [vmem:[#allocation2 + $0x20] sm:$0x7]  ;;  %v3744_v53 = vld [vmem:[#allocation2 + $0x34] sm:$0xf] }
 0x1f7   :  { %v3626_v31 = vcombine.low %v2978_v36, %v2961_v7  ;;  %v3627_v54 = vcombine.low %v2975_v13, %v2977_v29  ;;  %v2979_v20 = vcombine.high %v2975_v13, %v2975_v13  ;;  %v9434_v38 = vcombine.low %v11342_v63, %v11342_v63 }
 0x1f8   :  { %v3601_v12 = vrot.slane %v3580_v19, %v10613_v32  ;;  %v3608_v22 = vrot.slane %v2976_v1, %v10613_v32  ;;  %4425 = vrot.lane.b32.xlu1 %v4371_v23, %s10326_s28  ;;  %4485 = vrot.lane.b32.xlu0 %v4473_v44, %s10325_s2  ;;  %v3617_v46 = vrot.slane %v3609_v52, %v10613_v32  ;;  %v3920_v21 = vrot.slane %v10135_v26, 1  ;;  %v11388_v19 = vld [vmem:[#allocation2 + $0x20] sm:$0x7]  ;;  %v10140_v26 = vld [vmem:[#allocation2 + $0x14] ss:$0 sps:$4 sm:$0xee]  }
 0x1f9   :  { %v3635_v42 = vrot.slane %v3626_v31, %v10613_v32  ;;  %v3642_v48 = vrot.slane %v3627_v54, %v10613_v32  ;;  %v3628_v50 = vcombine.low %v2979_v20, %v2994_v60  ;;  %v3821_v6 = vshll.u32 %v9434_v38, 16 }
 0x1fa   :  { %v3610_v34 = vcombine.low %v3601_v12, %v3608_v22  ;;  %v9454_v49 = vcombine.low %v11351_v57, %v11351_v57  ;;  %v3656_v24 = vrot.slane %v3001_v56, %v10613_v32  ;;  %v9435_v33 = vcombine.low %v11357_v27, %v11357_v27  ;;  %v10142_v22 = vld [vmem:[#allocation2 + $0x1c] ss:$0 sps:$4 sm:$0xee]  }
 0x1fb   :  { %v3657_v47 = vcombine.low %v3635_v42, %v3642_v48  ;;  %v3649_v11 = vrot.slane %v3628_v50, %v10613_v32  ;;  %v3819_v39 = vshrl.u32 %v9434_v38, 16  ;;  %v3823_v45 = vrot.slane %v3821_v6, 1  ;;  %v10144_v6 = vld [vmem:[#allocation2 + $0x20] ss:$0 sps:$4 sm:$0xee]  }
 0x1fc   :  { %v3624_v0 = vrot.slane %v3610_v34, %v10613_v32  ;;  %3933 = vrot.lane.b32.xlu0 %v3920_v21, %s10325_s2  ;;  %v4474_v52 = vrot.slane %v10137_v61, 1  ;;  %v4375_v15 = vshll.u32 %v9454_v49, 16  ;;  %v3828_v41 = vshll.u32 %v9435_v33, 16  ;;  %v11401_v61 = vld [vmem:[#allocation2 + $0x24] sm:$0x7]  ;;  %v10183_v21 = vld [vmem:[%s12607_s3 + $0x38] sm:$0xff]  }
 0x1fd   :  { %v3658_v9 = vcombine.low %v3649_v11, %v3656_v24  ;;  %v3665_v25 = vrot.slane %v3657_v47, %v10613_v32  ;;  %v3824_v10 = vor.u32 %v3823_v45, %v3819_v39  ;;  %v9455_v17 = vcombine.low %v11368_v37, %v11368_v37  ;;  %9917 = vmatprep.subr.bf16.mxu0 %v10183_v21 }
 0x1fe   :  { %v3625_v62 = vcombine.low %v3617_v46, %v3624_v0  ;;  %v3826_v58 = vshrl.u32 %v9435_v33, 16  ;;  %v3830_v40 = vrot.slane %v3828_v41, 1  ;;  %v9436_v30 = vcombine.low %v11372_v5, %v11372_v5  ;;  %v10146_v0 = vld [vmem:[#allocation2 + $0x20] ss:$0 sps:$4 sm:$0xee]   ;;  %9918 = vmatpush3.bf16.msra.mxu0 %v10183_v21 }
 0x1ff   :  { %v3672_v16 = vrot.slane %v3658_v9, %v10613_v32  ;;  %3873 = vrot.lane.b32.xlu1 %v3824_v10, %s10326_s28  ;;  %v4382_v8 = vshll.u32 %v9455_v17, 16  ;;  %v3921_v7 = vrot.slane %v10136_v43, 1  ;;  %v4377_v4 = vrot.slane %v4375_v15, 1  ;;  %v11410_v43 = vld [vmem:[#allocation2 + $0x28] sm:$0x7] }
 0x200   :  { %v3700_v18 = vpack.c.bf16 %v3625_v62, %v3625_v62  ;;  %4487 = vrot.lane.b32.xlu0 %v4474_v52, %s10325_s2  ;;  %v3831_v1 = vor.u32 %v3830_v40, %v3826_v58  ;;  %v3835_v2 = vshll.u32 %v9436_v30, 16  ;;  %v9456_v13 = vcombine.low %v11380_v35, %v11380_v35  ;;  %v10150_v9 = vld [vmem:[#allocation2 + $0x28] ss:$0 sps:$4 sm:$0xee]   ;;  %v11416_v41 = vld [vmem:[#allocation2 + $0x24] sm:$0x7] }
 0x201   :  { %v3673_v51 = vcombine.low %v3665_v25, %v3672_v16  ;;  %v4384_v44 = vrot.slane %v4382_v8, 1  ;;  %v4373_v36 = vshrl.u32 %v9454_v49, 16  ;;  %v4380_v60 = vshrl.u32 %v9455_v17, 16  ;;  %v10148_v25 = vld [vmem:[#allocation2 + $0x24] ss:$0 sps:$4 sm:$0xee]  }
 0x202   :  { %v3742_v3 = vsel %vm11134_vm5, %v3700_v18, %v3741_v14  ;;  %v3837_v54 = vrot.slane %v3835_v2, 1  ;;  %v4389_v20 = vshll.u32 %v9456_v13, 16  ;;  %v9437_v38 = vcombine.low %v11388_v19, %v11388_v19  ;;  %v11422_v58 = vld [vmem:[#allocation2 + $0x28] sm:$0x7] }
 0x203   :  { %3743 = vst [vmem:[#allocation2 + $0x30] sm:$0xf] %v3742_v3  ;;  %v3701_v29 = vpack.c.bf16 %v3673_v51, %v3673_v51  ;;  %3935 = vrot.lane.b32.xlu1 %v3921_v7, %s10325_s2  ;;  %v4378_v23 = vor.u32 %v4377_v4, %v4373_v36  ;;  %v4385_v31 = vor.u32 %v4384_v44, %v4380_v60  ;;  %v3833_v12 = vshrl.u32 %v9436_v30, 16  ;;  %v10149_v18 = vld [vmem:[#allocation2 + $0x28] ss:$0 sps:$4 sm:$0xee]  }
 0x204   :  { %3875 = vrot.lane.b32.xlu0 %v3831_v1, %s10326_s28  ;;  %v4475_v46 = vrot.slane %v10140_v26, 1  ;;  %v4391_v48 = vrot.slane %v4389_v20, 1  ;;  %v3842_v50 = vshll.u32 %v9437_v38, 16  ;;  %v4387_v34 = vshrl.u32 %v9456_v13, 16  ;;  %v10184_v1 = vld [vmem:[%s12607_s3 + $0x40] sm:$0xff]  }
 0x205   :  { %v3745_v56 = vsel %vm11134_vm5, %v3701_v29, %v3744_v53  ;;  %v3838_v42 = vor.u32 %v3837_v54, %v3833_v12  ;;  %v3922_v49 = vrot.slane %v10142_v22, 1  ;;  %v9457_v24 = vcombine.low %v11401_v61, %v11401_v61  ;;  %v10151_v53 = vld [vmem:[#allocation2 + $0x24] ss:$0 sps:$4 sm:$0xee]   ;;  %9919 = vmatprep.subr.bf16.mxu0 %v10184_v1  ;;  %v11433_v36 = vld [vmem:[#allocation2 + $0x2c] sm:$0x7] }
 0x206   :  { %3746 = vst [vmem:[#allocation2 + $0x34] sm:$0xf] %v3745_v56  ;;  %v4392_v47 = vor.u32 %v4391_v48, %v4387_v34  ;;  %v3844_v11 = vrot.slane %v3842_v50, 1  ;;  %v3840_v33 = vshrl.u32 %v9437_v38, 16  ;;  %v4476_v39 = vrot.slane %v10144_v6, 1  ;;  %9920 = vmatpush3.bf16.msra.mxu0 %v10184_v1  ;;  %v10185_v56 = vld [vmem:[%s12607_s3 + $0x48] sm:$0xff]  }
 0x207   :  { %4427 = vrot.lane.b32.xlu1 %v4378_v23, %s10326_s28  ;;  %v4396_v52 = vshll.u32 %v9457_v24, 16  ;;  %v9458_v15 = vcombine.low %v11410_v43, %v11410_v43  ;;  %v3923_v62 = vrot.slane %v10146_v0, 1  ;;  %v3925_v10 = vrot.slane %v10150_v9, 1  ;;  %v11435_v60 = vld [vmem:[#allocation2 + $0x2c] sm:$0x7]  ;;  %9921 = vmatprep.subr.bf16.mxu0 %v10185_v56  ;;  %v10186_v6 = vld [vmem:[%s12607_s3 + $0x50] sm:$0xff]  }
 0x208   :  { %4429 = vrot.lane.b32.xlu0 %v4385_v31, %s10326_s28  ;;  %v3845_v45 = vor.u32 %v3844_v11, %v3840_v33  ;;  %v9438_v16 = vcombine.low %v11416_v41, %v11416_v41  ;;  %v4394_v40 = vshrl.u32 %v9457_v24, 16  ;;  %v4477_v30 = vrot.slane %v10148_v25, 1  ;;  %v10154_v26 = vld [vmem:[#allocation2 + $0x2c] ss:$0 sps:$4 sm:$0xee]  }
 0x209   :  { %v4398_v17 = vrot.slane %v4396_v52, 1  ;;  %v4403_v14 = vshll.u32 %v9458_v15, 16  ;;  %v9439_v4 = vcombine.low %v11422_v58, %v11422_v58  ;;  %v4401_v3 = vshrl.u32 %v9458_v15, 16  ;;  %v10159_v50 = vld [vmem:[#allocation2 + $0x2c] ss:$0 sps:$4 sm:$0xee]  }
 0x20a   :  { %v3849_v7 = vshll.u32 %v9438_v16, 16  ;;  %v4478_v44 = vrot.slane %v10149_v18, 1  ;;  %v3847_v23 = vshrl.u32 %v9438_v16, 16  ;;  %v9440_v31 = vcombine.low %v11433_v36, %v11433_v36  ;;  %v11444_v12 = vld [vmem:[#allocation2 + $0x30] sm:$0x7]  ;;  %9922 = vmatpush3.bf16.msra.mxu0 %v10185_v56  ;;  %v10187_v18 = vld [vmem:[%s12607_s3 + $0x58] sm:$0xff]  }
 0x20b   :  { %4489 = vrot.lane.b32.xlu1 %v4475_v46, %s10325_s2  ;;  %v4399_v8 = vor.u32 %v4398_v17, %v4394_v40  ;;  %v4405_v51 = vrot.slane %v4403_v14, 1  ;;  %v3856_v29 = vshll.u32 %v9439_v4, 16  ;;  %v3924_v54 = vrot.slane %v10151_v53, 1  ;;  %v11461_v33 = vld [vmem:[#allocation2 + $0x24] sm:$0x7]  ;;  %9923 = vmatprep.subr.bf16.mxu0 %v10186_v6 }
 0x20c   :  { %3877 = vrot.lane.b32.xlu0 %v3838_v42, %s10326_s28  ;;  %v3851_v13 = vrot.slane %v3849_v7, 1  ;;  %v9459_v22 = vcombine.low %v11435_v60, %v11435_v60  ;;  %v3854_v46 = vshrl.u32 %v9439_v4, 16  ;;  %v11452_v42 = vld [vmem:[#allocation2 + $0x14] sm:$0x7]  ;;  %v3863_v48 = vshll.u32 %v9440_v31, 16 }
 0x20d   :  { %v4406_v2 = vor.u32 %v4405_v51, %v4401_v3  ;;  %v3858_v38 = vrot.slane %v3856_v29, 1  ;;  %v9460_v34 = vcombine.low %v11444_v12, %v11444_v12  ;;  %v3926_v21 = vrot.slane %v10154_v26, 1  ;;  %v11469_v17 = vld [vmem:[#allocation2 + $0x8] sm:$0x7]  ;;  %v11476_v4 = vld [vmem:[#allocation2 + $0x10] sm:$0x7] }
 0x20e   :  { %v3852_v20 = vor.u32 %v3851_v13, %v3847_v23  ;;  %v4410_v11 = vshll.u32 %v9459_v22, 16  ;;  %v9534_v24 = vcombine.low %v11448_v59, %v11448_v59  ;;  %v3865_v0 = vrot.slane %v3863_v48, 1  ;;  %9924 = vmatpush3.bf16.msra.mxu0 %v10186_v6 }
 0x20f   :  { %3937 = vrot.lane.b32.xlu1 %v3922_v49, %s10325_s2  ;;  %v10156_v49 = vld [vmem:[#allocation2 + $0x30] ss:$0 sps:$4 sm:$0xee]   ;;  %v9536_v9 = vcombine.low %v11452_v42, %v11452_v42  ;;  %v9538_v25 = vcombine.low %v11461_v33, %v11461_v33  ;;  %v4408_v14 = vshrl.u32 %v9459_v22, 16  ;;  %v9533_v1 = vcombine.low %v11469_v17, %v11469_v17  ;;  %9925 = vmatprep.subr.bf16.mxu0 %v10187_v18 }
 0x210   :  { %4431 = vrot.lane.b32.xlu0 %v4392_v47, %s10326_s28  ;;  %v3859_v47 = vor.u32 %v3858_v38, %v3854_v46  ;;  %v4480_v52 = vrot.slane %v10156_v49, 1  ;;  %v4412_v15 = vrot.slane %v4410_v11, 1  ;;  %v4415_v3 = vshrl.u32 %v9460_v34, 16  ;;  %v10164_v38 = vld [vmem:[#allocation2 + $0xc] ss:$0 sps:$4 sm:$0xee]  }
 0x211   :  { %v5540_v7 = vshll.u32 %v9538_v25, 16  ;;  %v5510_v53 = vshrl.u32 %v9534_v24, 16  ;;  %v5505_v23 = vshll.u32 %v9533_v1, 16  ;;  %v5524_v26 = vshrl.u32 %v9536_v9, 16 }
 0x212   :  { %9926 = vmatpush3.bf16.msra.mxu0 %v10187_v18  ;;  %v5503_v6 = vshrl.u32 %v9533_v1, 16  ;;  %v10169_v11 = vld [vmem:[#allocation2 + $0x14] ss:$0 sps:$4 sm:$0xee]  }
 0x213   :  { %4491 = vrot.lane.b32.xlu1 %v4476_v39, %s10325_s2  ;;  %v4479_v39 = vrot.slane %v10159_v50, 1  ;;  %v5542_v56 = vrot.slane %v5540_v7, 1  ;;  %v5507_v48 = vrot.slane %v5505_v23, 1  ;;  %v10172_v1 = vld [vmem:[#allocation2 + $0x18] ss:$0 sps:$4 sm:$0xee]  }
 0x214   :  { %3879 = vrot.lane.b32.xlu0 %v3845_v45, %s10326_s28  ;;  %v4417_v45 = vshll.u32 %v9460_v34, 16  ;;  %v11493_v34 = vld [vmem:[%s12607_s3] sm:$0xff]  }
 0x215   :  { %9935 = vmatprep.subr.bf16.mxu0 %v11493_v34 }
 0x216   :  { %v4419_v40 = vrot.slane %v4417_v45, 1 }
 0x217   :  { %3939 = vrot.lane.b32.xlu1 %v3923_v62, %s10325_s2  ;;  %v5512_v62 = vshll.u32 %v9534_v24, 16 }
 0x218   :  { %3943 = vrot.lane.b32.xlu0 %v3925_v10, %s10325_s2  ;;  %v3861_v10 = vshrl.u32 %v9440_v31, 16  ;;  %v4420_v13 = vor.u32 %v4419_v40, %v4415_v3  ;;  %v11484_v31 = vld [vmem:[#allocation2 + $0x18] sm:$0x7] }
 0x219   :  { %v5514_v51 = vrot.slane %v5512_v62, 1  ;;  %v9537_v50 = vcombine.low %v11484_v31, %v11484_v31 }
 0x21a   :  { %v3866_v16 = vor.u32 %v3865_v0, %v3861_v10  ;;  %v11498_v0 = vld [vmem:[#allocation2 + $0x28] sm:$0x7] }
 0x21b   :  { %4493 = vrot.lane.b32.xlu1 %v4477_v30, %s10325_s2  ;;  %v5526_v30 = vshll.u32 %v9536_v9, 16  ;;  %v5515_v29 = vor.u32 %v5514_v51, %v5510_v53  ;;  %v5533_v24 = vshll.u32 %v9537_v50, 16  ;;  %v10168_v9 = vld [vmem:[#allocation2 + $0x24] ss:$0 sps:$4 sm:$0xee]   ;;  %v9539_v62 = vcombine.low %v11498_v0, %v11498_v0 }
 0x21c   :  { %4433 = vrot.lane.b32.xlu0 %v4399_v8, %s10326_s28  ;;  %v4413_v8 = vor.u32 %v4412_v15, %v4408_v14  ;;  %v5531_v10 = vshrl.u32 %v9537_v50, 16  ;;  %v10170_v14 = vld [vmem:[#allocation2 + $0x8] ss:$0 sps:$4 sm:$0xee]   ;;  %v11510_v51 = vld [vmem:[#allocation2 + $0x30] sm:$0x7] }
 0x21d   :  { %v5535_v15 = vrot.slane %v5533_v24, 1  ;;  %v5622_v7 = vrot.slane %v10170_v14, 1  ;;  %v10180_v14 = vld [vmem:[#allocation2 + $0x34] ss:$0 sps:$4 sm:$0xee]  }
 0x21f   :  { %4495 = vrot.lane.b32.xlu1 %v4478_v44, %s10325_s2  ;;  %v5528_v44 = vrot.slane %v5526_v30, 1  ;;  %v5536_v40 = vor.u32 %v5535_v15, %v5531_v10  ;;  %v10173_v30 = vld [vmem:[#allocation2 + $0x10] ss:$0 sps:$4 sm:$0xee]  }
 0x220   :  { %4435 = vrot.lane.b32.xlu0 %v4406_v2, %s10326_s28  ;;  %v9535_v2 = vcombine.low %v11476_v4, %v11476_v4  ;;  %v5624_v3 = vrot.slane %v10173_v30, 1 }
 0x222   :  { %v5519_v46 = vshll.u32 %v9535_v2, 16 }
 0x223   :  { %3941 = vrot.lane.b32.xlu1 %v3924_v54, %s10325_s2  ;;  %v5538_v54 = vshrl.u32 %v9538_v25, 16  ;;  %v11504_v25 = vld [vmem:[#allocation2 + $0x2c] sm:$0x7] }
 0x224   :  { %3881 = vrot.lane.b32.xlu0 %v3852_v20, %s10326_s28  ;;  %v5529_v20 = vor.u32 %v5528_v44, %v5524_v26  ;;  %v5521_v49 = vrot.slane %v5519_v46, 1  ;;  %v9540_v18 = vcombine.low %v11504_v25, %v11504_v25 }
 0x225   :  { %v5543_v22 = vor.u32 %v5542_v56, %v5538_v54  ;;  %v5626_v56 = vrot.slane %v10172_v1, 1  ;;  %v10177_v54 = vld [vmem:[#allocation2 + $0x28] ss:$0 sps:$4 sm:$0xee]  }
 0x226   :  { %v5554_v53 = vshll.u32 %v9540_v18, 16  ;;  %v5628_v50 = vrot.slane %v10177_v54, 1 }
 0x227   :  { %3945 = vrot.lane.b32.xlu1 %v3926_v21, %s10325_s2  ;;  %v5623_v21 = vrot.slane %v10164_v38, 1 }
 0x228   :  { %3883 = vrot.lane.b32.xlu0 %v3859_v47, %s10326_s28  ;;  %v5508_v47 = vor.u32 %v5507_v48, %v5503_v6  ;;  %v5556_v23 = vrot.slane %v5554_v53, 1  ;;  %v10176_v48 = vld [vmem:[#allocation2 + $0x2c] ss:$0 sps:$4 sm:$0xee]   ;;  %v10292_v53 = vld [vmem:[#allocation2] sm:$0x7] }
 0x229   :  { %v5629_v24 = vrot.slane %v10176_v48, 1 }
 0x22b   :  { %4499 = vrot.lane.b32.xlu1 %v4480_v52, %s10325_s2  ;;  %v5625_v52 = vrot.slane %v10169_v11, 1 }
 0x22c   :  { %4497 = vrot.lane.b32.xlu0 %v4479_v39, %s10325_s2  ;;  %v5517_v39 = vshrl.u32 %v9535_v2, 16  ;;  %v9541_v2 = vcombine.low %v11510_v51, %v11510_v51 }
 0x22e   :  { %v5522_v45 = vor.u32 %v5521_v49, %v5517_v39  ;;  %v5561_v38 = vshll.u32 %v9541_v2, 16  ;;  %v5559_v11 = vshrl.u32 %v9541_v2, 16  ;;  %v10293_v2 = vld [vmem:[#allocation2 + $0x8] sm:$0x7] }
 0x22f   :  { %3885 = vrot.lane.b32.xlu1 %v3866_v16, %s10326_s28  ;;  %v5627_v16 = vrot.slane %v10168_v9, 1  ;;  %v10181_v9 = vld [vmem:[#allocation2 + $0x30] ss:$0 sps:$4 sm:$0xee]  }
 0x230   :  { %4437 = vrot.lane.b32.xlu0 %v4413_v8, %s10326_s28  ;;  %v5547_v8 = vshll.u32 %v9539_v62, 16  ;;  %v5563_v49 = vrot.slane %v5561_v38, 1 }
 0x232   :  { %v5549_v44 = vrot.slane %v5547_v8, 1 }
 0x233   :  { %4439 = vrot.lane.b32.xlu1 %v4420_v13, %s10326_s28  ;;  %v11516_v13 = vld [vmem:[#allocation2 + $0x34] sm:$0x7] }
 0x234   :  { %5574 = vrot.lane.b32.xlu0 %v5515_v29, %s10326_s28  ;;  %v5545_v29 = vshrl.u32 %v9539_v62, 16 }
 0x236   :  { %v5550_v26 = vor.u32 %v5549_v44, %v5545_v29 }
 0x237   :  { %5578 = vrot.lane.b32.xlu1 %v5529_v20, %s10326_s28  ;;  %v9542_v20 = vcombine.low %v11516_v13, %v11516_v13 }
 0x238   :  { %5582 = vrot.lane.b32.xlu0 %v5543_v22, %s10326_s28  ;;  %v5552_v22 = vshrl.u32 %v9540_v18, 16 }
 0x239   :  { %v5568_v6 = vshll.u32 %v9542_v20, 16 }
 0x23a   :  { %v5557_v46 = vor.u32 %v5556_v23, %v5552_v22  ;;  %v10295_v22 = vld [vmem:[#allocation2 + $0x4] sm:$0x7] }
 0x23b   :  { %5634 = vrot.lane.b32.xlu1 %v5623_v21, %s10325_s2  ;;  %v3928_v21 = vpop.permute.xlu1 %3927  ;;  %v5570_v39 = vrot.slane %v5568_v6, 1 }
 0x23c   :  { %5572 = vrot.lane.b32.xlu0 %v5508_v47, %s10326_s28  ;;  %v3868_v47 = vpop.permute.xlu0 %3867 }
 0x23d   :  { %v3949_v44 = vsel %vm1758_vm2, %v10292_v53, %v3868_v47 }
 0x23f   :  { %5576 = vrot.lane.b32.xlu1 %v5522_v45, %s10326_s28  ;;  %v5564_v45 = vor.u32 %v5563_v49, %v5559_v11  ;;  %v4482_v15 = vpop.permute.xlu1 %4481 }
 0x240   :  { %5638 = vrot.lane.b32.xlu0 %v5625_v52, %s10325_s2  ;;  %v5566_v52 = vshrl.u32 %v9542_v20, 16  ;;  %v4422_v62 = vpop.permute.xlu0 %4421 }
 0x242   :  { %v5571_v10 = vor.u32 %v5570_v39, %v5566_v52 }
 0x243   :  { %5642 = vrot.lane.b32.xlu1 %v5627_v16, %s10325_s2  ;;  %v5630_v16 = vrot.slane %v10181_v9, 1  ;;  %v3930_v30 = vpop.permute.xlu1 %3929 }
 0x244   :  { %5580 = vrot.lane.b32.xlu0 %v5536_v40, %s10326_s28  ;;  %v5631_v40 = vrot.slane %v10180_v14, 1  ;;  %v3870_v18 = vpop.permute.xlu0 %3869 }
 0x247   :  { %5632 = vrot.lane.b32.xlu1 %v5622_v7, %s10325_s2  ;;  %v4484_v8 = vpop.permute.xlu1 %4483 }
 0x248   :  { %5636 = vrot.lane.b32.xlu0 %v5624_v3, %s10325_s2  ;;  %v3932_v7 = vpop.permute.xlu0 %3931 }
 0x24b   :  { %5640 = vrot.lane.b32.xlu1 %v5626_v56, %s10325_s2  ;;  %v10294_v56 = vld [vmem:[#allocation2 + $0x4] sm:$0x7] }
 0x24c   :  { %5584 = vrot.lane.b32.xlu0 %v5550_v26, %s10326_s28  ;;  %v4503_v23 = vsel %vm1758_vm2, %v10294_v56, %v4422_v62  ;;  %v3979_v26 = vsel %vm3977_vm6, %v3949_v44, %v3928_v21 }
 0x24d   :  { %v4532_v38 = vsel %vm3977_vm6, %v4503_v23, %v4482_v15 }
 0x24e   :  { %v4567_v49 = vrot.slane %v4532_v38, %v10613_v32 }
 0x24f   :  { %5586 = vrot.lane.b32.xlu1 %v5557_v46, %s10326_s28  ;;  %v3952_v46 = vsel %vm1758_vm2, %v10295_v22, %v3870_v18 }
 0x250   :  { %5644 = vrot.lane.b32.xlu0 %v5628_v50, %s10325_s2  ;;  %v4014_v50 = vrot.slane %v3979_v26, %v10613_v32  ;;  %v3981_v11 = vsel %vm3977_vm6, %v3952_v46, %v3930_v30  ;;  %v4568_v39 = vcombine.high %v4567_v49, %v4567_v49 }
 0x252   :  { %v4582_v30 = vrot.slane %v4568_v39, %v10613_v32  ;;  %v4022_v44 = vrot.slane %v4014_v50, %v10613_v32 }
 0x253   :  { %5646 = vrot.lane.b32.xlu1 %v5629_v24, %s10325_s2  ;;  %v4015_v24 = vcombine.high %v4014_v50, %v4014_v50 }
 0x254   :  { %5588 = vrot.lane.b32.xlu0 %v5564_v45, %s10326_s28  ;;  %v4037_v45 = vrot.slane %v3981_v11, %v10613_v32 }
 0x256   :  { %v4038_v18 = vcombine.high %v4037_v45, %v4037_v45 }
 0x257   :  { %5590 = vrot.lane.b32.xlu1 %v5571_v10, %s10326_s28  ;;  %v4029_v10 = vrot.slane %v4015_v24, %v10613_v32 }
 0x258   :  { %5648 = vrot.lane.b32.xlu0 %v5630_v16, %s10325_s2  ;;  %v4052_v38 = vrot.slane %v4038_v18, %v10613_v32 }
 0x259   :  { %v5178_v23 = vcombine.low %v4022_v44, %v4029_v10 }
 0x25b   :  { %5650 = vrot.lane.b32.xlu1 %v5631_v40, %s10325_s2  ;;  %v4575_v40 = vrot.slane %v4567_v49, %v10613_v32 }
 0x261   :  { %v3872_v1 = vpop.permute.xlu1 %3871 }
 0x266   :  { %v4424_v3 = vpop.permute.xlu0 %4423 }
 0x267   :  { %v4506_v29 = vsel %vm1758_vm2, %v10293_v2, %v4424_v3 }
 0x268   :  { %v4534_v54 = vsel %vm3977_vm6, %v4506_v29, %v4484_v8  ;;  %v4045_v8 = vrot.slane %v4037_v45, %v10613_v32 }
 0x269   :  { %v4590_v6 = vrot.slane %v4534_v54, %v10613_v32  ;;  %v4583_v54 = vcombine.high %v4575_v40, %v4575_v40 }
 0x26a   :  { %v4486_v20 = vpop.permute.xlu0 %4485  ;;  %v4426_v48 = vpop.permute.xlu1 %4425  ;;  %v4244_v22 = vunpack.i.h.s16 %v4045_v8 }
 0x26b   :  { %v4591_v21 = vcombine.high %v4590_v6, %v4590_v6  ;;  %v4598_v15 = vrot.slane %v4590_v6, %v10613_v32  ;;  %v4509_v62 = vsel %vm1758_vm2, %v11318_v28, %v4426_v48  ;;  %v10296_v28 = vld [vmem:[#allocation2 + $0x8] sm:$0x7] }
 0x26c   :  { %v4536_v16 = vsel %vm3977_vm6, %v4509_v62, %v4486_v20  ;;  %v3955_v29 = vsel %vm1758_vm2, %v10296_v28, %v3872_v1  ;;  %v4879_v20 = vcombine.low %v4575_v40, %v4582_v30  ;;  %v4053_v28 = vcombine.high %v4045_v8, %v4045_v8 }
 0x26d   :  { %v4605_v14 = vrot.slane %v4591_v21, %v10613_v32  ;;  %v4797_v2 = vunpack.i.h.s16 %v4598_v15  ;;  %v4613_v56 = vrot.slane %v4536_v16, %v10613_v32  ;;  %v3983_v6 = vsel %vm3977_vm6, %v3955_v29, %v3932_v7 }
 0x26e   :  { %v3934_v47 = vpop.permute.xlu0 %3933  ;;  %v4606_v11 = vcombine.high %v4598_v15, %v4598_v15  ;;  %v9483_v24 = vpack.i.b16 %v4598_v15, %v4583_v54  ;;  %v4030_v7 = vcombine.high %v4022_v44, %v4022_v44  ;;  %v4060_v15 = vrot.slane %v3983_v6, %v10613_v32 }
 0x26f   :  { %v4799_v26 = vunpack.i.h.s16 %v4605_v14  ;;  %v9484_v49 = vpack.i.b16 %v4605_v14, %v4797_v2  ;;  %v4621_v21 = vrot.slane %v4613_v56, %v10613_v32  ;;  %v4614_v62 = vcombine.high %v4613_v56, %v4613_v56 }
 0x270   :  { %v11568_v14 = vrot.slane %v5178_v23, %v10613_v32  ;;  %v11578_v2 = vpack.i.b16 %v4052_v38, %v4244_v22  ;;  %v4061_v6 = vcombine.high %v4060_v15, %v4060_v15 }
 0x271   :  { %v3874_v9 = vpop.permute.xlu1 %3873  ;;  %v9485_v45 = vpack.i.b16 %v4606_v11, %v4799_v26  ;;  %v4880_v30 = vcombine.low %v9483_v24, %v9484_v49  ;;  %v4629_v18 = vcombine.high %v4621_v21, %v4621_v21  ;;  %v4628_v29 = vrot.slane %v4614_v62, %v10613_v32 }
 0x272   :  { %v4488_v52 = vpop.permute.xlu0 %4487  ;;  %v3958_v1 = vsel %vm1758_vm2, %v11342_v63, %v3874_v9 }
 0x273   :  { %v3985_v10 = vsel %vm3977_vm6, %v3958_v1, %v3934_v47  ;;  %v4246_v47 = vunpack.i.h.s16 %v4052_v38  ;;  %v4881_v56 = vcombine.low %v9485_v45, %v4621_v21  ;;  %v11588_v38 = vrot.slane %v4060_v15, %v10613_v32 }
 0x274   :  { %v4083_v44 = vrot.slane %v3985_v10, %v10613_v32  ;;  %v4896_v22 = vrot.slane %v4880_v30, %v10613_v32 }
 0x275   :  { %v11552_v3 = vpop.permute.xlu1 %3935  ;;  %v11591_v49 = vpack.i.b16 %v4053_v28, %v4246_v47  ;;  %v4903_v45 = vrot.slane %v4881_v56, %v10613_v32 }
 0x276   :  { %v3876_v53 = vpop.permute.xlu0 %3875  ;;  %v4084_v11 = vcombine.high %v4083_v44, %v4083_v44  ;;  %v4091_v1 = vrot.slane %v4083_v44, %v10613_v32 }
 0x277   :  { %v5180_v47 = vcombine.low %v11591_v49, %v11588_v38 }
 0x278   :  { %v4254_v44 = vunpack.i.h.s16 %v4091_v1 }
 0x279   :  { %v4428_v46 = vpop.permute.xlu1 %4427 }
 0x27a   :  { %v4430_v48 = vpop.permute.xlu0 %4429  ;;  %v4512_v50 = vsel %vm1758_vm2, %v11351_v57, %v4428_v46 }
 0x27b   :  { %v4538_v39 = vsel %vm3977_vm6, %v4512_v50, %v4488_v52  ;;  %v4515_v9 = vsel %vm1758_vm2, %v11368_v37, %v4430_v48  ;;  %v4889_v52 = vrot.slane %v4879_v20, %v10613_v32  ;;  %v11585_v48 = vpack.i.b16 %v4045_v8, %v4030_v7 }
 0x27c   :  { %v4636_v16 = vrot.slane %v4538_v39, %v10613_v32  ;;  %v11606_v7 = vrot.slane %v4061_v6, %v10613_v32 }
 0x27d   :  { %v4490_v40 = vpop.permute.xlu1 %4489  ;;  %v5179_v39 = vcombine.low %v11585_v48, %v11578_v2 }
 0x27e   :  { %v3878_v57 = vpop.permute.xlu0 %3877  ;;  %v11572_v63 = vrot.slane %v4636_v16, %v10613_v32  ;;  %v4637_v23 = vcombine.high %v4636_v16, %v4636_v16  ;;  %v4540_v46 = vsel %vm3977_vm6, %v4515_v9, %v4490_v40  ;;  %v4911_v40 = vcombine.low %v4889_v52, %v4896_v22 }
 0x27f   :  { %v3964_v37 = vsel %vm1758_vm2, %v11372_v5, %v3878_v57  ;;  %v3961_v5 = vsel %vm1758_vm2, %v11357_v27, %v3876_v53  ;;  %v4659_v8 = vrot.slane %v4540_v46, %v10613_v32  ;;  %v4076_v27 = vcombine.high %v11588_v38, %v11588_v38 }
 0x280   :  { %v9486_v26 = vpack.i.b16 %v11572_v63, %v4629_v18  ;;  %v4651_v62 = vrot.slane %v4637_v23, %v10613_v32  ;;  %v3987_v57 = vsel %vm3977_vm6, %v3961_v5, %v11552_v3  ;;  %v4098_v18 = vrot.slane %v4084_v11, %v10613_v32 }
 0x281   :  { %v3938_v54 = vpop.permute.xlu1 %3937  ;;  %v4660_v28 = vcombine.high %v4659_v8, %v4659_v8  ;;  %v4652_v46 = vcombine.high %v11572_v63, %v11572_v63  ;;  %v4807_v6 = vunpack.i.h.s16 %v11572_v63  ;;  %v4667_v22 = vrot.slane %v4659_v8, %v10613_v32 }
 0x282   :  { %v4432_v20 = vpop.permute.xlu0 %4431  ;;  %v4882_v50 = vcombine.low %v4628_v29, %v9486_v26  ;;  %v3989_v21 = vsel %vm3977_vm6, %v3964_v37, %v3938_v54  ;;  %v4809_v29 = vunpack.i.h.s16 %v4651_v62  ;;  %v9511_v54 = vpack.i.b16 %v4091_v1, %v4076_v27 }
 0x283   :  { %v4518_v24 = vsel %vm1758_vm2, %v11380_v35, %v4432_v20  ;;  %v4129_v15 = vrot.slane %v3989_v21, %v10613_v32  ;;  %v4106_v37 = vrot.slane %v3987_v57, %v10613_v32  ;;  %v4919_v20 = vrot.slane %v4911_v40, %v10613_v32 }
 0x284   :  { %v4910_v10 = vrot.slane %v4882_v50, %v10613_v32  ;;  %v11632_v27 = vpack.i.b16 %v4098_v18, %v4254_v44  ;;  %v5181_v63 = vcombine.low %v11606_v7, %v9511_v54 }
 0x285   :  { %v4492_v35 = vpop.permute.xlu1 %4491  ;;  %v4130_v11 = vcombine.high %v4129_v15, %v4129_v15  ;;  %v4107_v8 = vcombine.high %v4106_v37, %v4106_v37  ;;  %v4114_v54 = vrot.slane %v4106_v37, %v10613_v32 }
 0x286   :  { %v3880_v16 = vpop.permute.xlu0 %3879  ;;  %v4542_v53 = vsel %vm3977_vm6, %v4518_v24, %v4492_v35  ;;  %v4912_v9 = vcombine.low %v4903_v45, %v4910_v10  ;;  %v4674_v24 = vrot.slane %v4660_v28, %v10613_v32  ;;  %v4099_v10 = vcombine.high %v4091_v1, %v4091_v1 }
 0x287   :  { %v4682_v30 = vrot.slane %v4542_v53, %v10613_v32  ;;  %v3967_v50 = vsel %vm1758_vm2, %v11388_v19, %v3880_v16  ;;  %v4256_v35 = vunpack.i.h.s16 %v4098_v18  ;;  %v9488_v53 = vpack.i.b16 %v4652_v46, %v4809_v29 }
 0x288   :  { %v4926_v26 = vrot.slane %v4912_v9, %v10613_v32  ;;  %v4675_v9 = vcombine.high %v4667_v22, %v4667_v22  ;;  %v4137_v1 = vrot.slane %v4129_v15, %v10613_v32  ;;  %v4144_v18 = vrot.slane %v4130_v11, %v10613_v32 }
 0x289   :  { %v3940_v56 = vpop.permute.xlu1 %3939  ;;  %v4683_v23 = vcombine.high %v4682_v30, %v4682_v30  ;;  %v4690_v52 = vrot.slane %v4682_v30, %v10613_v32  ;;  %v9487_v30 = vpack.i.b16 %v4651_v62, %v4807_v6  ;;  %v4929_v44 = vcombine.low %v4667_v22, %v4674_v24 }
 0x28a   :  { %v11620_v3 = vpop.permute.xlu0 %3943  ;;  %v4927_v45 = vcombine.low %v4919_v20, %v4926_v26  ;;  %v3991_v19 = vsel %vm3977_vm6, %v3967_v50, %v3940_v56  ;;  %v9513_v7 = vpack.i.b16 %v4099_v10, %v4256_v35  ;;  %v4121_v22 = vrot.slane %v4107_v8, %v10613_v32 }
 0x28b   :  { %v4697_v5 = vrot.slane %v4683_v23, %v10613_v32  ;;  %v4817_v21 = vunpack.i.h.s16 %v4690_v52  ;;  %v4928_v26 = vcombine.low %v9487_v30, %v9488_v53  ;;  %v11644_v56 = vrot.slane %v3991_v19, %v10613_v32 }
 0x28c   :  { %9927 = vmatprep.mubr.msk.bf16.mxu0 %vm5076_vm7, %v4927_v45  ;;  %v4698_v62 = vcombine.high %v4690_v52, %v4690_v52  ;;  %v9489_v20 = vpack.i.b16 %v4690_v52, %v4675_v9  ;;  %v4264_v11 = vunpack.i.h.s16 %v4137_v1  ;;  %v4266_v50 = vunpack.i.h.s16 %v4144_v18 }
 0x28d   :  { %v4494_v40 = vpop.permute.xlu1 %4493  ;;  %v4819_v28 = vunpack.i.h.s16 %v4697_v5  ;;  %v9490_v29 = vpack.i.b16 %v4697_v5, %v4817_v21  ;;  %v4945_v37 = vrot.slane %v4929_v44, %v10613_v32  ;;  %v5209_v52 = vrot.slane %v5181_v63, %v10613_v32 }
 0x28e   :  { %v4434_v57 = vpop.permute.xlu0 %4433  ;;  %v4145_v10 = vcombine.high %v4137_v1, %v4137_v1  ;;  %v4938_v8 = vrot.slane %v4928_v26, %v10613_v32  ;;  %v4122_v19 = vcombine.high %v4114_v54, %v4114_v54  ;;  %v5228_v30 = vcombine.low %v4114_v54, %v4121_v22 }
 0x28f   :  { %v4521_v16 = vsel %vm1758_vm2, %v11401_v61, %v4434_v57  ;;  %v4930_v5 = vcombine.low %v9489_v20, %v9490_v29  ;;  %v9491_v21 = vpack.i.b16 %v4698_v62, %v4819_v28  ;;  %v5227_v57 = vcombine.low %v11632_v27, %v9513_v7 }
 0x290   :  { %v4544_v23 = vsel %vm3977_vm6, %v4521_v16, %v4494_v40  ;;  %v9515_v9 = vpack.i.b16 %v4144_v18, %v4264_v11  ;;  %v9516_v44 = vpack.i.b16 %v4145_v10, %v4266_v50  ;;  %v4960_v28 = vcombine.low %v4938_v8, %v4945_v37 }
 0x291   :  { %v4496_v46 = vpop.permute.xlu1 %4495  ;;  %v11647_v15 = vrot.slane %v4544_v23, %v10613_v32  ;;  %v4952_v29 = vrot.slane %v4930_v5, %v10613_v32  ;;  %v5202_v27 = vrot.slane %v5180_v47, %v10613_v32  ;;  %v9514_v7 = vpack.i.b16 %v4137_v1, %v4122_v19 }
 0x292   :  { %v4436_v61 = vpop.permute.xlu0 %4435  ;;  %v11687_v38 = vrot.slane %v5228_v30, %v10613_v32  ;;  %v11692_v22 = vrot.slane %v5227_v57, %v10613_v32  ;;  %v4968_v11 = vrot.slane %v4960_v28, %v10613_v32  ;;  %v4153_v57 = vcombine.high %v11644_v56, %v11644_v56 }
 0x293   :  { %v4524_v6 = vsel %vm1758_vm2, %v11410_v43, %v4436_v61  ;;  %v11656_v45 = vrot.slane %v11647_v15, %v10613_v32  ;;  %v11661_v43 = vrot.slane %v11644_v56, %v10613_v32  ;;  %v5229_v49 = vcombine.low %v9514_v7, %v9515_v9 }
 0x294   :  { %v4546_v24 = vsel %vm3977_vm6, %v4524_v6, %v4496_v46  ;;  %v11684_v6 = vrot.slane %v5179_v39, %v10613_v32  ;;  %v5211_v1 = vcombine.low %v5202_v27, %v5209_v52  ;;  %v10189_v52 = vld [vmem:[%s12607_s3 + $0x8] sm:$0xff]   ;;  %v5259_v10 = vcombine.low %v11692_v22, %v11687_v38 }
 0x295   :  { %v3942_v35 = vpop.permute.xlu1 %3941  ;;  %v4728_v53 = vrot.slane %v4546_v24, %v10613_v32  ;;  %v4931_v16 = vcombine.low %v9491_v21, %v11656_v45  ;;  %v5230_v26 = vcombine.low %v9516_v44, %v11661_v43  ;;  %v4168_v8 = vcombine.high %v11661_v43, %v11661_v43 }
 0x296   :  { %v3882_v40 = vpop.permute.xlu0 %3881  ;;  %v4706_v9 = vcombine.high %v11647_v15, %v11647_v15  ;;  %v4721_v43 = vcombine.high %v11656_v45, %v11656_v45  ;;  %v10190_v15 = vld [vmem:[%s12607_s3 + $0x10] sm:$0xff]  }
 0x297   :  { %v3970_v63 = vsel %vm1758_vm2, %v11416_v41, %v3882_v40  ;;  %v4959_v23 = vrot.slane %v4931_v16, %v10613_v32  ;;  %v4729_v54 = vcombine.high %v4728_v53, %v4728_v53  ;;  %v11697_v2 = vrot.slane %v5230_v26, %v10613_v32 }
 0x298   :  { %v3993_v46 = vsel %vm3977_vm6, %v3970_v63, %v3942_v35  ;;  %v4736_v48 = vrot.slane %v4728_v53, %v10613_v32  ;;  %v11711_v35 = vrot.slane %v5229_v49, %v10613_v32  ;;  %v5210_v40 = vcombine.low %v11568_v14, %v11684_v6 }
 0x299   :  { %v3946_v18 = vpop.permute.xlu1 %3945  ;;  %v4961_v62 = vcombine.low %v4952_v29, %v4959_v23  ;;  %v4175_v41 = vrot.slane %v3993_v46, %v10613_v32  ;;  %v4743_v39 = vrot.slane %v4729_v54, %v10613_v32  ;;  %v11726_v16 = vrot.slane %v5211_v1, %v10613_v32 }
 0x29a   :  { %v3884_v61 = vpop.permute.xlu0 %3883  ;;  %v5260_v30 = vcombine.low %v11711_v35, %v11697_v2  ;;  %v4827_v44 = vunpack.i.h.s16 %v4736_v48  ;;  %v4744_v27 = vcombine.high %v4736_v48, %v4736_v48 }
 0x29b   :  { %v3973_v20 = vsel %vm1758_vm2, %v11422_v58, %v3884_v61  ;;  %v4975_v58 = vrot.slane %v4961_v62, %v10613_v32  ;;  %v4176_v50 = vcombine.high %v4175_v41, %v4175_v41  ;;  %v4183_v53 = vrot.slane %v4175_v41, %v10613_v32 }
 0x29c   :  { %v3995_v47 = vsel %vm3977_vm6, %v3973_v20, %v11620_v3  ;;  %v4829_v56 = vunpack.i.h.s16 %v4743_v39  ;;  %v9493_v62 = vpack.i.b16 %v4743_v39, %v4827_v44  ;;  %v4167_v44 = vrot.slane %v4153_v57, %v10613_v32 }
 0x29d   :  { %v4500_v24 = vpop.permute.xlu1 %4499  ;;  %v11702_v37 = vrot.slane %v3995_v47, %v10613_v32  ;;  %v4976_v5 = vcombine.low %v4968_v11, %v4975_v58  ;;  %v4190_v21 = vrot.slane %v4176_v50, %v10613_v32  ;;  %v4191_v7 = vcombine.high %v4183_v53, %v4183_v53  ;;  %v10191_v50 = vld [vmem:[%s12607_s3 + $0x18] sm:$0xff]  }
 0x29e   :  { %v4498_v3 = vpop.permute.xlu0 %4497  ;;  %v4274_v54 = vunpack.i.h.s16 %v4183_v53  ;;  %v9494_v41 = vpack.i.b16 %v4744_v27, %v4829_v56  ;;  %v9517_v2 = vpack.i.b16 %v4183_v53, %v4168_v8 }
 0x29f   :  { %v11722_v19 = vrot.slane %v11702_v37, %v10613_v32  ;;  %9928 = vmatmul.mubr.msk.bf16.vlgmr.msra.gmra.mrb[24].mxu0 %vm5076_vm7, %v4976_v5  ;;  %v4276_v29 = vunpack.i.h.s16 %v4190_v21  ;;  %v4199_v20 = vcombine.high %v11702_v37, %v11702_v37 }
 0x2a0   :  { %9936 = vmatpush3.bf16.msra.mxu0 %v11493_v34  ;;  %v4978_v53 = vcombine.low %v9493_v62, %v9494_v41 }
 0x2a1   :  { %v3886_v63 = vpop.permute.xlu1 %3885  ;;  %9937 = vmatprep.subr.bf16.mxu0 %v10189_v52 }
 0x2a2   :  { %v4438_v28 = vpop.permute.xlu0 %4437  ;;  %v3976_v23 = vsel %vm1758_vm2, %v11433_v36, %v3886_v63  ;;  %v4214_v36 = vcombine.high %v11722_v19, %v11722_v19 }
 0x2a3   :  { %v4527_v46 = vsel %vm1758_vm2, %v11435_v60, %v4438_v28  ;;  %v3997_v26 = vsel %vm3977_vm6, %v3976_v23, %v3946_v18  ;;  %v9492_v60 = vpack.i.b16 %v4736_v48, %v4721_v43  ;;  %v9519_v18 = vpack.i.b16 %v4191_v7, %v4276_v29 }
 0x2a4   :  { %v4548_v34 = vsel %vm3977_vm6, %v4527_v46, %v4498_v3  ;;  %v4221_v45 = vrot.slane %v3997_v26, %v10613_v32  ;;  %9938 = vmatpush3.bf16.msra.mxu0 %v10189_v52  ;;  %v9518_v3 = vpack.i.b16 %v4190_v21, %v4274_v54  ;;  %v4213_v29 = vrot.slane %v4199_v20, %v10613_v32  ;;  %v10192_v21 = vld [vmem:[%s12607_s3 + $0x20] sm:$0xff]  }
 0x2a5   :  { %v4751_v61 = vrot.slane %v4548_v34, %v10613_v32  ;;  %v4440_v49 = vpop.permute.xlu1 %4439  ;;  %9939 = vmatprep.subr.bf16.mxu0 %v10190_v15  ;;  %v5276_v7 = vcombine.low %v4167_v44, %v9517_v2 }
 0x2a6   :  { %v5575_v47 = vpop.permute.xlu0 %5574  ;;  %v4222_v1 = vcombine.high %v4221_v45, %v4221_v45  ;;  %v4229_v11 = vrot.slane %v4221_v45, %v10613_v32  ;;  %v4530_v58 = vsel %vm1758_vm2, %v11444_v12, %v4440_v49  ;;  %v4720_v12 = vrot.slane %v4706_v9, %v10613_v32 }
 0x2a7   :  { %v4550_v48 = vsel %vm3977_vm6, %v4530_v58, %v4500_v24  ;;  %v4752_v39 = vcombine.high %v4751_v61, %v4751_v61  ;;  %v4759_v37 = vrot.slane %v4751_v61, %v10613_v32  ;;  %v5277_v24 = vcombine.low %v9518_v3, %v9519_v18 }
 0x2a8   :  { %v4236_v5 = vrot.slane %v4222_v1, %v10613_v32  ;;  %v4284_v52 = vunpack.i.h.s16 %v4229_v11  ;;  %v9520_v35 = vpack.i.b16 %v4229_v11, %v4214_v36  ;;  %v4774_v56 = vrot.slane %v4550_v48, %v10613_v32  ;;  %9940 = vmatpush3.bf16.msra.mxu0 %v10190_v15 }
 0x2a9   :  { %v5579_v63 = vpop.permute.xlu1 %5578  ;;  %v4767_v28 = vcombine.high %v4759_v37, %v4759_v37  ;;  %9941 = vmatprep.subr.bf16.mxu0 %v10191_v50  ;;  %v4766_v9 = vrot.slane %v4752_v39, %v10613_v32  ;;  %v5657_v46 = vsel %vm1758_vm2, %v11448_v59, %v5575_v47  ;;  %v11771_v15 = vrot.slane %v5260_v30, %v10613_v32  ;;  %v10193_v30 = vld [vmem:[%s12607_s3 + $0x28] sm:$0xff]  }
 0x2aa   :  { %v5583_v43 = vpop.permute.xlu0 %5582  ;;  %v9521_v8 = vpack.i.b16 %v4236_v5, %v4284_v52  ;;  %v4775_v23 = vcombine.high %v4774_v56, %v4774_v56  ;;  %v4782_v57 = vrot.slane %v4774_v56, %v10613_v32  ;;  %v4977_v27 = vcombine.low %v4720_v12, %v9492_v60  ;;  %v11792_v12 = vld [vmem:[%s12607_s3 + $0x60] sm:$0xff]  }
 0x2ab   :  { %v4286_v34 = vunpack.i.h.s16 %v4236_v5  ;;  %v5278_v41 = vcombine.low %v11722_v19, %v4213_v29  ;;  %v4994_v59 = vrot.slane %v4978_v53, %v10613_v32  ;;  %v5293_v60 = vrot.slane %v5277_v24, %v10613_v32 }
 0x2ac   :  { %v5279_v26 = vcombine.low %v9520_v35, %v9521_v8  ;;  %v4789_v54 = vrot.slane %v4775_v23, %v10613_v32  ;;  %v4837_v45 = vunpack.i.h.s16 %v4782_v57  ;;  %v9495_v36 = vpack.i.b16 %v4782_v57, %v4767_v28  ;;  %9942 = vmatpush3.bf16.msra.mxu0 %v10191_v50 }
 0x2ad   :  { %v5635_v61 = vpop.permute.xlu1 %5634  ;;  %9943 = vmatprep.subr.bf16.mxu0 %v10192_v21  ;;  %v4237_v49 = vcombine.high %v4229_v11, %v4229_v11  ;;  %v4979_v1 = vcombine.low %v4759_v37, %v4766_v9  ;;  %v4987_v50 = vrot.slane %v4977_v27, %v10613_v32  ;;  %v5286_v19 = vrot.slane %v5276_v7, %v10613_v32 }
 0x2ae   :  { %v5573_v62 = vpop.permute.xlu0 %5572  ;;  %v5685_v20 = vsel %vm3977_vm6, %v5657_v46, %v5635_v61  ;;  %v4839_v47 = vunpack.i.h.s16 %v4789_v54  ;;  %v9496_v18 = vpack.i.b16 %v4789_v54, %v4837_v45  ;;  %v5307_v2 = vrot.slane %v5279_v26, %v10613_v32 }
 0x2af   :  { %v5741_v58 = vrot.slane %v5685_v20, %v10613_v32  ;;  %v4790_v48 = vcombine.high %v4782_v57, %v4782_v57  ;;  %v5663_v39 = vsel %vm1758_vm2, %v11452_v42, %v5579_v63  ;;  %v9522_v11 = vpack.i.b16 %v4237_v49, %v4286_v34 }
 0x2b0   :  { %v4980_v3 = vcombine.low %v9495_v36, %v9496_v18  ;;  %9944 = vmatpush3.bf16.msra.mxu0 %v10192_v21  ;;  %v5300_v35 = vrot.slane %v5278_v41, %v10613_v32  ;;  %v5009_v44 = vcombine.low %v4987_v50, %v4994_v59  ;;  %v5308_v56 = vcombine.low %v5286_v19, %v5293_v60 }
 0x2b1   :  { %v5577_v5 = vpop.permute.xlu1 %5576  ;;  %9945 = vmatprep.subr.bf16.mxu0 %v10193_v30  ;;  %v5001_v28 = vrot.slane %v4979_v1, %v10613_v32  ;;  %v9497_v53 = vpack.i.b16 %v4790_v48, %v4839_v47  ;;  %v11801_v24 = vrot.slane %v5259_v10, %v10613_v32  ;;  %v5742_v8 = vcombine.high %v5741_v58, %v5741_v58 }
 0x2b2   :  { %v5639_v52 = vpop.permute.xlu0 %5638  ;;  %v5008_v63 = vrot.slane %v4980_v3, %v10613_v32  ;;  %v5218_v29 = vrot.slane %v5210_v40, %v10613_v32  ;;  %v5309_v21 = vcombine.low %v5300_v35, %v5307_v2  ;;  %v5669_v23 = vsel %vm1758_vm2, %v11461_v33, %v5583_v43 }
 0x2b3   :  { %v5689_v37 = vsel %vm3977_vm6, %v5663_v39, %v5639_v52  ;;  %v5331_v7 = vrot.slane %v9522_v11, %v10613_v32  ;;  %v5275_v38 = vcombine.low %v11801_v24, %v11771_v15  ;;  %v5749_v22 = vrot.slane %v5741_v58, %v10613_v32 }
 0x2b4   :  { %v5787_v42 = vrot.slane %v5689_v37, %v10613_v32  ;;  %v5010_v27 = vcombine.low %v5001_v28, %v5008_v63  ;;  %9946 = vmatpush3.bf16.msra.mxu0 %v10193_v30  ;;  %v5226_v14 = vcombine.low %v5218_v29, %v11726_v16  ;;  %v5654_v33 = vsel %vm1758_vm2, %v11469_v17, %v5573_v62 }
 0x2b5   :  { %v5643_v57 = vpop.permute.xlu1 %5642  ;;  %9955 = vmatprep.subr.bf16.mxu0 %v11792_v12  ;;  %v5017_v6 = vrot.slane %v5009_v44, %v10613_v32  ;;  %v5032_v40 = vrot.slane %v9497_v53, %v10613_v32  ;;  %v11821_v43 = vrot.slane %v5308_v56, %v10613_v32  ;;  %v5756_v26 = vrot.slane %v5742_v8, %v10613_v32 }
 0x2b6   :  { %v5788_v9 = vcombine.high %v5787_v42, %v5787_v42  ;;  %v5581_v46 = vpop.permute.xlu0 %5580  ;;  %v5693_v10 = vsel %vm3977_vm6, %v5669_v23, %v5643_v57  ;;  %v5024_v54 = vrot.slane %v5010_v27, %v10613_v32  ;;  %v11827_v16 = vrot.slane %v5309_v21, %v10613_v32 }
 0x2b7   :  { %v5833_v34 = vrot.slane %v5693_v10, %v10613_v32  ;;  %v5660_v45 = vsel %vm1758_vm2, %v11476_v4, %v5577_v5  ;;  %v5795_v36 = vrot.slane %v5787_v42, %v10613_v32  ;;  %v11834_v41 = vrot.slane %v5331_v7, %v10613_v32 }
 0x2b8   :  { %v5802_v61 = vrot.slane %v5788_v9, %v10613_v32  ;;  %v5948_v20 = vunpack.i.h.s16 %v5749_v22  ;;  %v5025_v30 = vcombine.low %v5017_v6, %v5024_v54  ;;  %v5666_v4 = vsel %vm1758_vm2, %v11484_v31, %v5581_v46 }
 0x2b9   :  { %v5633_v17 = vpop.permute.xlu1 %5632  ;;  %v5039_v47 = vrot.slane %v5032_v40, %v10613_v32  ;;  %v5757_v18 = vcombine.high %v5749_v22, %v5749_v22  ;;  %v5834_v1 = vcombine.high %v5833_v34, %v5833_v34  ;;  %v5950_v58 = vunpack.i.h.s16 %v5756_v26 }
 0x2ba   :  { %v5637_v62 = vpop.permute.xlu0 %5636  ;;  %v5683_v59 = vsel %vm3977_vm6, %v5654_v33, %v5633_v17  ;;  %9931 = vmatprep.mubr.msk.bf16.mxu0 %vm5076_vm7, %v5025_v30  ;;  %v5324_v19 = vcombine.low %v11821_v43, %v11827_v16  ;;  %v5958_v39 = vunpack.i.h.s16 %v5795_v36  ;;  %v5960_v3 = vunpack.i.h.s16 %v5802_v61 }
 0x2bb   :  { %v5687_v60 = vsel %vm3977_vm6, %v5660_v45, %v5637_v62  ;;  %v5718_v49 = vrot.slane %v5683_v59, %v10613_v32  ;;  %9932 = vmatmul.mubr.msk.bf16.gmra.mrb[28].mxu0 %vm5076_vm7, %v5039_v47  ;;  %v5841_v52 = vrot.slane %v5833_v34, %v10613_v32  ;;  %v9566_v44 = vpack.i.b16 %v5756_v26, %v5948_v20  ;;  %v10195_v26 = vld [vmem:[%s12607_s3 + $0x68] sm:$0xff]  }
 0x2bc   :  { %v5764_v50 = vrot.slane %v5687_v60, %v10613_v32  ;;  %9947 = vmatprep.mubr.msk.bf16.mxu0 %vm5076_vm7, %v5226_v14  ;;  %v5803_v28 = vcombine.high %v5795_v36, %v5795_v36  ;;  %v5848_v63 = vrot.slane %v5834_v1, %v10613_v32  ;;  %v9567_v8 = vpack.i.b16 %v5757_v18, %v5950_v58 }
 0x2bd   :  { %v5719_v2 = vcombine.high %v5718_v49, %v5718_v49  ;;  %v5726_v48 = vrot.slane %v5718_v49, %v10613_v32  ;;  %v5641_v5 = vpop.permute.xlu1 %5640  ;;  %v9569_v23 = vpack.i.b16 %v5802_v61, %v5958_v39  ;;  %v5968_v7 = vunpack.i.h.s16 %v5841_v52 }
 0x2be   :  { %v5585_v31 = vpop.permute.xlu0 %5584  ;;  %v5691_v11 = vsel %vm3977_vm6, %v5666_v4, %v5641_v5  ;;  %v5765_v35 = vcombine.high %v5764_v50, %v5764_v50  ;;  %v5772_v37 = vrot.slane %v5764_v50, %v10613_v32  ;;  %v9570_v57 = vpack.i.b16 %v5803_v28, %v5960_v3 }
 0x2bf   :  { %v5734_v56 = vcombine.high %v5726_v48, %v5726_v48  ;;  %v5810_v42 = vrot.slane %v5691_v11, %v10613_v32  ;;  %v5733_v53 = vrot.slane %v5719_v2, %v10613_v32  ;;  %v5672_v33 = vsel %vm1758_vm2, %v11498_v0, %v5585_v31 }
 0x2c0   :  { %v5780_v29 = vcombine.high %v5772_v37, %v5772_v37  ;;  %v5779_v10 = vrot.slane %v5765_v35, %v10613_v32  ;;  %v5970_v34 = vunpack.i.h.s16 %v5848_v63  ;;  %v5849_v17 = vcombine.high %v5841_v52, %v5841_v52 }
 0x2c1   :  { %v9565_v21 = vpack.i.b16 %v5749_v22, %v5734_v56  ;;  %v11856_v9 = vrot.slane %v5810_v42, %v10613_v32  ;;  %v5587_v46 = vpop.permute.xlu1 %5586  ;;  %v5811_v40 = vcombine.high %v5810_v42, %v5810_v42  ;;  %v6032_v22 = vcombine.low %v9567_v8, %v5772_v37 }
 0x2c2   :  { %v5645_v27 = vpop.permute.xlu0 %5644  ;;  %v9568_v14 = vpack.i.b16 %v5795_v36, %v5780_v29  ;;  %v6030_v54 = vcombine.low %v5726_v48, %v5733_v53  ;;  %v6079_v36 = vcombine.low %v9569_v23, %v9570_v57  ;;  %v5675_v0 = vsel %vm1758_vm2, %v11504_v25, %v5587_v46 }
 0x2c3   :  { %v6031_v6 = vcombine.low %v9565_v21, %v9566_v44  ;;  %v5826_v43 = vcombine.high %v11856_v9, %v11856_v9  ;;  %v5695_v45 = vsel %vm3977_vm6, %v5672_v33, %v5645_v27  ;;  %9948 = vmatmul.mubr.msk.bf16.vlgmr.msra.gmra.mrb[24].mxu0 %vm5076_vm7, %v5275_v38  ;;  %v5825_v25 = vrot.slane %v5811_v40, %v10613_v32  ;;  %v10196_v38 = vld [vmem:[%s12607_s3 + $0x70] sm:$0xff]   ;;  %v10197_v44 = vld [vmem:[%s12607_s3 + $0x78] sm:$0xff]  }
 0x2c4   :  { %v6033_v16 = vcombine.low %v5779_v10, %v9568_v14  ;;  %v5856_v62 = vrot.slane %v5695_v45, %v10613_v32  ;;  %9956 = vmatpush3.bf16.msra.mxu0 %v11792_v12  ;;  %9951 = vmatprep.mubr.msk.bf16.mxu0 %vm5076_vm7, %v5324_v19  ;;  %v6054_v15 = vrot.slane %v6032_v22, %v10613_v32 }
 0x2c5   :  { %v5647_v61 = vpop.permute.xlu1 %5646  ;;  %v6047_v59 = vrot.slane %v6031_v6, %v10613_v32  ;;  %v9571_v49 = vpack.i.b16 %v5841_v52, %v5826_v43  ;;  %9957 = vmatprep.subr.bf16.mxu0 %v10195_v26  ;;  %v9572_v4 = vpack.i.b16 %v5848_v63, %v5968_v7  ;;  %v6040_v47 = vrot.slane %v6030_v54, %v10613_v32 }
 0x2c6   :  { %v5589_v20 = vpop.permute.xlu0 %5588  ;;  %v6061_v30 = vrot.slane %v6033_v16, %v10613_v32  ;;  %v5697_v60 = vsel %vm3977_vm6, %v5675_v0, %v5647_v61  ;;  %v9573_v18 = vpack.i.b16 %v5849_v17, %v5970_v34  ;;  %v5864_v12 = vrot.slane %v5856_v62, %v10613_v32  ;;  %v10199_v0 = vld [vmem:[%s12607_s3 + $0x88] sm:$0xff]  }
 0x2c7   :  { %v5879_v24 = vrot.slane %v5697_v60, %v10613_v32  ;;  %v11888_v1 = vrot.slane %v6079_v36, %v10613_v32  ;;  %v6062_v39 = vcombine.low %v6040_v47, %v6047_v59  ;;  %v5857_v3 = vcombine.high %v5856_v62, %v5856_v62 }
 0x2c8   :  { %v6063_v58 = vcombine.low %v6054_v15, %v6061_v30  ;;  %v5872_v5 = vcombine.high %v5864_v12, %v5864_v12  ;;  %v6082_v31 = vcombine.low %v9573_v18, %v5864_v12  ;;  %9958 = vmatpush3.bf16.msra.mxu0 %v10195_v26  ;;  %v6080_v52 = vcombine.low %v11856_v9, %v5825_v25 }
 0x2c9   :  { %v5880_v50 = vcombine.high %v5879_v24, %v5879_v24  ;;  %v5887_v19 = vrot.slane %v5879_v24, %v10613_v32  ;;  %v5591_v2 = vpop.permute.xlu1 %5590  ;;  %v6081_v11 = vcombine.low %v9571_v49, %v9572_v4  ;;  %v5678_v37 = vsel %vm1758_vm2, %v11510_v51, %v5589_v20  ;;  %9959 = vmatprep.subr.bf16.mxu0 %v10196_v38 }
 0x2ca   :  { %v5649_v48 = vpop.permute.xlu0 %5648  ;;  %v5681_v42 = vsel %vm1758_vm2, %v11516_v13, %v5591_v2  ;;  %v6077_v21 = vrot.slane %v6063_v58, %v10613_v32  ;;  %v5871_v23 = vrot.slane %v5857_v3, %v10613_v32  ;;  %v6110_v57 = vrot.slane %v6082_v31, %v10613_v32 }
 0x2cb   :  { %v5894_v35 = vrot.slane %v5880_v50, %v10613_v32  ;;  %v5895_v56 = vcombine.high %v5887_v19, %v5887_v19  ;;  %v5978_v28 = vunpack.i.h.s16 %v5887_v19  ;;  %v5699_v63 = vsel %vm3977_vm6, %v5678_v37, %v5649_v48  ;;  %9952 = vmatmul.mubr.msk.bf16.gmra.mrb[32].mxu0 %vm5076_vm7, %v11834_v41  ;;  %v10198_v41 = vld [vmem:[%s12607_s3 + $0x80] sm:$0xff]   ;;  %s10327_s3 = smov [#allocation4]  }
 0x2cc   :  { %v9574_v8 = vpack.i.b16 %v5887_v19, %v5872_v5  ;;  %v5902_v51 = vrot.slane %v5699_v63, %v10613_v32  ;;  %9960 = vmatpush3.bf16.msra.mxu0 %v10196_v38  ;;  %v6070_v13 = vrot.slane %v6062_v39, %v10613_v32  ;;  %v6096_v14 = vrot.slane %v6080_v52, %v10613_v32  ;;  %v11949_v63 = vld [vmem:[%s12608_s4] ss:$0 sm:$0xff] }
 0x2cd   :  { %v5980_v53 = vunpack.i.h.s16 %v5894_v35  ;;  %v5651_v29 = vpop.permute.xlu1 %5650  ;;  %9961 = vmatprep.subr.bf16.mxu0 %v10197_v44  ;;  %v9575_v33 = vpack.i.b16 %v5894_v35, %v5978_v28  ;;  %v6103_v6 = vrot.slane %v6081_v11, %v10613_v32 }
 0x2ce   :  { %v5701_v9 = vsel %vm3977_vm6, %v5681_v42, %v5651_v29  ;;  %v5903_v7 = vcombine.high %v5902_v51, %v5902_v51  ;;  %v5910_v10 = vrot.slane %v5902_v51, %v10613_v32  ;;  %v6078_v40 = vcombine.low %v6070_v13, %v6077_v21 }
 0x2cf   :  { %v9576_v46 = vpack.i.b16 %v5895_v56, %v5980_v53  ;;  %v5925_v27 = vrot.slane %v5701_v9, %v10613_v32  ;;  %v6128_v43 = vcombine.low %v5871_v23, %v9574_v8  ;;  %v6112_v45 = vcombine.low %v6103_v6, %v6110_v57  ;;  %v10236_v53 = vld [vmem:[%s12609_s5 + $0x30] sm:$0xff]   ;;  %v10237_v8 = vld [vmem:[%s12609_s5 + $0x38] sm:$0xff]  }
 0x2d0   :  { %v5917_v34 = vrot.slane %v5903_v7, %v10613_v32  ;;  %v5918_v54 = vcombine.high %v5910_v10, %v5910_v10  ;;  %9962 = vmatpush3.bf16.msra.mxu0 %v10197_v44  ;;  %9967 = vmatprep.mubr.msk.bf16.mxu0 %vm5076_vm7, %v6078_v40  ;;  %v6111_v61 = vcombine.low %v11888_v1, %v6096_v14 }
 0x2d1   :  { %v5926_v22 = vcombine.high %v5925_v27, %v5925_v27  ;;  %v5933_v26 = vrot.slane %v5925_v27, %v10613_v32  ;;  %v6129_v16 = vcombine.low %v9575_v33, %v9576_v46  ;;  %9963 = vmatprep.subr.bf16.mxu0 %v10198_v41  ;;  %v6138_v20 = vrot.slane %v6128_v43, %v10613_v32 }
 0x2d2   :  { %v6130_v30 = vcombine.low %v5910_v10, %v5917_v34  ;;  %v6126_v25 = vrot.slane %v6112_v45, %v10613_v32  ;;  %v6119_v24 = vrot.slane %v6111_v61, %v10613_v32  ;;  %9975 = vmatprep.subr.bf16.mxu1 %v10236_v53 }
 0x2d3   :  { %v5940_v17 = vrot.slane %v5926_v22, %v10613_v32  ;;  %v5988_v36 = vunpack.i.h.s16 %v5933_v26  ;;  %v9577_v62 = vpack.i.b16 %v5933_v26, %v5918_v54  ;;  %v6145_v60 = vrot.slane %v6129_v16, %v10613_v32  ;;  %9976 = vmatpush3.bf16.msra.mxu1 %v10236_v53 }
 0x2d4   :  { %9964 = vmatpush3.bf16.msra.mxu0 %v10198_v41  ;;  %v5941_v38 = vcombine.high %v5933_v26, %v5933_v26  ;;  %v6152_v4 = vrot.slane %v6130_v30, %v10613_v32  ;;  %v6127_v12 = vcombine.low %v6119_v24, %v6126_v25  ;;  %9977 = vmatprep.subr.bf16.mxu1 %v10237_v8 }
 0x2d5   :  { %v9578_v59 = vpack.i.b16 %v5940_v17, %v5988_v36  ;;  %v5990_v49 = vunpack.i.h.s16 %v5940_v17  ;;  %9965 = vmatprep.subr.bf16.mxu0 %v10199_v0  ;;  %v6160_v18 = vcombine.low %v6138_v20, %v6145_v60 }
 0x2d7   :  { %v6131_v15 = vcombine.low %v9577_v62, %v9578_v59  ;;  %v9579_v1 = vpack.i.b16 %v5941_v38, %v5990_v49  ;;  %v6168_v50 = vrot.slane %v6160_v18, %v10613_v32  ;;  %9978 = vmatpush3.bf16.msra.mxu1 %v10237_v8 }
 0x2d8   :  { %9966 = vmatpush3.bf16.msra.mxu0 %v10199_v0 }
 0x2d9   :  { %v6159_v47 = vrot.slane %v6131_v15, %v10613_v32  ;;  %10023 = vmatprep.subr.bf16.mxu0 %v10322_v55  ;;  %v6183_v48 = vrot.slane %v9579_v1, %v10613_v32 }
 0x2db   :  { %v6161_v58 = vcombine.low %v6152_v4, %v6159_v47  ;;  %9968 = vmatmul.mubr.msk.bf16.vlgmr.msra.gmra.mrb[24].mxu0 %vm5076_vm7, %v6127_v12  ;;  %v6190_v39 = vrot.slane %v6183_v48, %v10613_v32 }
 0x2dd   :  { %v6175_v19 = vrot.slane %v6161_v58, %v10613_v32 }
 0x2df   :  { %v6176_v2 = vcombine.low %v6168_v50, %v6175_v19 }
 0x2e1   :  { %9971 = vmatprep.mubr.msk.bf16.mxu0 %vm5076_vm7, %v6176_v2 }
 0x2e3   :  { %9972 = vmatmul.mubr.msk.bf16.gmra.mrb[36].mxu0 %vm5076_vm7, %v6190_v39 }
 0x2e4   :  { %10035 = vmatprep.mubr.msk.bf16.mxu0 %vm10323_vm0, %v10322_v55 }
 0x38e   :  { %v9933_v3 = vpop.f32.mrb[28].mxu0 }
 0x38f   :  { %v5139_v5 = vpop.f32.mrb[29].mxu0 }
 0x390   :  { %v9934_v31 = vpop.f32.mrb[30].mxu0 }
 0x391   :  { %v5142_v52 = vpop.f32.mrb[31].mxu0 }
 0x39e   :  { %v9953_v11 = vpop.f32.mrb[32].mxu0 }
 0x39f   :  { %v11940_v35 = vadd.f32 %v9953_v11, %v9933_v3  ;;  %v5437_v37 = vpop.f32.mrb[33].mxu0 }
 0x3a0   :  { %v11942_v44 = vadd.f32 %v5437_v37, %v5139_v5  ;;  %v9954_v56 = vpop.f32.mrb[34].mxu0 }
 0x3a1   :  { %v5440_v28 = vpop.f32.mrb[35].mxu0 }
 0x3a2   :  { %v11944_v42 = vadd.f32 %v5440_v28, %v5142_v52 }
 0x3ae   :  { %v9969_v29 = vpop.f32.mrb[24].mxu0 }
 0x3af   :  { %v6319_v51 = vadd.f32 %v9969_v29, %v11949_v63  ;;  %v6273_v21 = vpop.f32.mrb[25].mxu0 }
 0x3b0   :  { %v6317_v23 = vadd.f32 %v11949_v63, %v6273_v21  ;;  %v9970_v57 = vpop.f32.mrb[26].mxu0 }
 0x3b1   :  { %v6326_v9 = vmax.f32 %v6319_v51, 0.0  ;;  %v6320_v13 = vadd.f32 %v9970_v57, %v11949_v63  ;;  %v6276_v46 = vpop.f32.mrb[27].mxu0 }
 0x3b2   :  { %v6324_v27 = vmax.f32 %v6317_v23, 0.0  ;;  %v6318_v16 = vadd.f32 %v11949_v63, %v6276_v46 }
 0x3b3   :  { %v6436_v7 = vcombine.high %v6326_v9, %v6326_v9  ;;  %v6443_v10 = vrot.slane %v6326_v9, %v10613_v32  ;;  %v6327_v41 = vmax.f32 %v6320_v13, 0.0 }
 0x3b4   :  { %v6338_v14 = vcombine.high %v6324_v27, %v6324_v27  ;;  %v6345_v33 = vrot.slane %v6324_v27, %v10613_v32  ;;  %v6325_v3 = vmax.f32 %v6318_v16, 0.0 }
 0x3b5   :  { %v6450_v6 = vrot.slane %v6436_v7, %v10613_v32  ;;  %v6451_v40 = vcombine.high %v6443_v10, %v6443_v10  ;;  %v11964_v43 = vrot.slane %v6443_v10, %v10613_v32  ;;  %v6485_v22 = vcombine.high %v6327_v41, %v6327_v41 }
 0x3b6   :  { %v6352_v26 = vrot.slane %v6338_v14, %v10613_v32  ;;  %v6353_v34 = vcombine.high %v6345_v33, %v6345_v33  ;;  %v6361_v54 = vrot.slane %v6345_v33, %v10613_v32  ;;  %v11969_v45 = vpop.f32.mrb[36].mxu0  ;;  %v6492_v61 = vrot.slane %v6327_v41, %v10613_v32 }
 0x3b7   :  { %v6452_v17 = vcombine.high %v6450_v6, %v6450_v6  ;;  %v6473_v36 = vrot.slane %v6451_v40, %v10613_v32  ;;  %v6481_v0 = vcombine.high %v11964_v43, %v11964_v43  ;;  %v11975_v62 = vpop.f32.mrb[37].mxu0  ;;  %v6466_v20 = vrot.slane %v6450_v6, %v10613_v32 }
 0x3b8   :  { %v6354_v59 = vcombine.high %v6352_v26, %v6352_v26  ;;  %v6368_v30 = vrot.slane %v6352_v26, %v10613_v32  ;;  %v6375_v60 = vrot.slane %v6353_v34, %v10613_v32  ;;  %v9974_v25 = vpop.f32.mrb[38].mxu0  ;;  %v6499_v38 = vrot.slane %v6485_v22, %v10613_v32  ;;  %v7067_v22 = vld [vmem:[#allocation3] sm:$0x7] }
 0x3b9   :  { %v6480_v49 = vrot.slane %v6452_v17, %v10613_v32  ;;  %v6483_v15 = vcombine.high %v6473_v36, %v6473_v36  ;;  %v11981_v24 = vcombine.low %v6473_v36, %v6481_v0  ;;  %v11984_v4 = vpop.f32.mrb[39].mxu0  ;;  %v6500_v19 = vcombine.high %v6492_v61, %v6492_v61 }
 0x3ba   :  { %v6382_v47 = vrot.slane %v6354_v59, %v10613_v32  ;;  %v6384_v18 = vcombine.high %v6368_v30, %v6368_v30  ;;  %v6654_v12 = vcombine.low %v6361_v54, %v6375_v60  ;;  %v9591_v1 = vcombine.high %v6361_v54, %v6375_v60  ;;  %v7079_v59 = vld [vmem:[#allocation3 + $0x10] sm:$0x7] }
 0x3bb   :  { %v6810_v58 = vcombine.low %v6466_v20, %v6480_v49  ;;  %v9593_v50 = vcombine.high %v6466_v20, %v6480_v49  ;;  %v6676_v39 = vrot.slane %v6368_v30, %v10613_v32  ;;  %v6786_v5 = vrot.slane %v11981_v24, %v10613_v32 }
 0x3bc   :  { %v6662_v2 = vrot.slane %v6654_v12, %v10613_v32  ;;  %v6669_v48 = vrot.slane %v9591_v1, %v10613_v32  ;;  %v6501_v11 = vcombine.high %v6499_v38, %v6499_v38  ;;  %v11995_v37 = vrot.slane %v6483_v15, %v10613_v32 }
 0x3bd   :  { %v6818_v31 = vrot.slane %v6810_v58, %v10613_v32  ;;  %v6825_v52 = vrot.slane %v9593_v50, %v10613_v32  ;;  %v6693_v28 = vcombine.low %v6382_v47, %v6384_v18  ;;  %v6508_v53 = vrot.slane %v6492_v61, %v10613_v32 }
 0x3be   :  { %v6677_v56 = vcombine.low %v6662_v2, %v6669_v48  ;;  %v6691_v29 = vrot.slane %v6676_v39, %v10613_v32  ;;  %v6522_v51 = vrot.slane %v6500_v19, %v10613_v32  ;;  %v12001_v21 = vrot.slane %v6501_v11, %v10613_v32 }
 0x3bf   :  { %v6833_v8 = vcombine.low %v6818_v31, %v6825_v52  ;;  %v6530_v57 = vcombine.high %v6508_v53, %v6508_v53  ;;  %v6832_v9 = vrot.slane %v6508_v53, %v10613_v32  ;;  %v6387_v13 = vcombine.high %v6325_v3, %v6325_v3 }
 0x3c0   :  { %v6684_v23 = vrot.slane %v6677_v56, %v10613_v32  ;;  %v12006_v46 = vrot.slane %v6499_v38, %v10613_v32  ;;  %v6532_v27 = vcombine.high %v6522_v51, %v6522_v51  ;;  %v6871_v10 = vrot.slane %v12001_v21, %v10613_v32 }
 0x3c1   :  { %v6840_v7 = vrot.slane %v6833_v8, %v10613_v32  ;;  %v6847_v14 = vrot.slane %v6832_v9, %v10613_v32  ;;  %v6849_v33 = vcombine.low %v6522_v51, %v6530_v57  ;;  %v6394_v6 = vrot.slane %v6325_v3, %v10613_v32  ;;  %v7082_v51 = vld [vmem:[#allocation3 + $0x14] sm:$0x7] }
 0x3c2   :  { %v6692_v41 = vcombine.low %v6684_v23, %v6691_v29  ;;  %v6850_v26 = vcombine.low %v6532_v27, %v12006_v46  ;;  %v6886_v34 = vrot.slane %v6871_v10, %v10613_v32  ;;  %v6386_v54 = vcombine.high %v6382_v47, %v6382_v47 }
 0x3c3   :  { %v6401_v16 = vrot.slane %v6387_v13, %v10613_v32  ;;  %v6848_v36 = vcombine.low %v6840_v7, %v6847_v14  ;;  %v6857_v0 = vrot.slane %v6849_v33, %v10613_v32  ;;  %v6402_v61 = vcombine.high %v6394_v6, %v6394_v6 }
 0x3c4   :  { %v7054_v17 = vpack.c.bf16 %v6692_v41, %v6692_v41  ;;  %v6864_v20 = vrot.slane %v6850_v26, %v10613_v32  ;;  %v6410_v60 = vrot.slane %v6394_v6, %v10613_v32  ;;  %v6701_v47 = vrot.slane %v6693_v28, %v10613_v32  ;;  %v7070_v6 = vld [vmem:[#allocation3 + $0x4] sm:$0x7] }
 0x3c5   :  { %v6403_v30 = vcombine.high %v6401_v16, %v6401_v16  ;;  %v6417_v25 = vrot.slane %v6401_v16, %v10613_v32  ;;  %v7058_v15 = vpack.c.bf16 %v6848_v36, %v6848_v36  ;;  %v6424_v38 = vrot.slane %v6402_v61, %v10613_v32 }
 0x3c6   :  { %v7068_v49 = vsel %vm12015_vm10, %v7054_v17, %v7067_v22  ;;  %v6872_v18 = vcombine.low %v6857_v0, %v6864_v20  ;;  %v6694_v58 = vcombine.low %v6386_v54, %v6410_v60  ;;  %v6309_v48 = vadd.f32 %v11969_v45, %v11940_v35  ;;  %v7073_v17 = vld [vmem:[#allocation3 + $0x8] sm:$0x7] }
 0x3c7   :  { %7069 = vst [vmem:[#allocation3] sm:$0x7] %v7068_v49  ;;  %v6431_v12 = vrot.slane %v6403_v30, %v10613_v32  ;;  %v6433_v1 = vcombine.high %v6417_v25, %v6417_v25  ;;  %v7080_v50 = vsel %vm12015_vm10, %v7058_v15, %v7079_v59  ;;  %v6715_v19 = vrot.slane %v6424_v38, %v10613_v32  ;;  %v7076_v30 = vld [vmem:[#allocation3 + $0xc] sm:$0x7] }
 0x3c8   :  { %v9592_v2 = vcombine.high %v6410_v60, %v6424_v38  ;;  %v6879_v39 = vrot.slane %v6872_v18, %v10613_v32  ;;  %7081 = vst [vmem:[#allocation3 + $0x10] sm:$0x7] %v7080_v50  ;;  %v6708_v31 = vrot.slane %v6694_v58, %v10613_v32  ;;  %v9594_v11 = vcombine.high %v12006_v46, %v12001_v21  ;;  %v10238_v38 = vld [vmem:[%s12609_s5 + $0x40] sm:$0xff]  }
 0x3c9   :  { %v6435_v3 = vcombine.high %v6431_v12, %v6431_v12  ;;  %v6733_v52 = vcombine.low %v6417_v25, %v6431_v12  ;;  %v6754_v28 = vrot.slane %v6433_v1, %v10613_v32  ;;  %v6323_v53 = vadd.f32 %v11949_v63, %v6309_v48  ;;  %9979 = vmatprep.subr.bf16.mxu1 %v10238_v38 }
 0x3ca   :  { %v6740_v56 = vrot.slane %v9592_v2, %v10613_v32  ;;  %v6887_v8 = vcombine.low %v6879_v39, %v6886_v34  ;;  %v6716_v29 = vcombine.low %v6701_v47, %v6708_v31  ;;  %v6730_v23 = vrot.slane %v6715_v19, %v10613_v32  ;;  %9980 = vmatpush3.bf16.msra.mxu1 %v10238_v38 }
 0x3cb   :  { %v6747_v35 = vrot.slane %v6733_v52, %v10613_v32  ;;  %v6771_v45 = vcombine.low %v6435_v3, %v11964_v43  ;;  %v6330_v57 = vmax.f32 %v6323_v53, 0.0  ;;  %v6307_v9 = vadd.f32 %v11975_v62, %v11942_v44 }
 0x3cc   :  { %v6308_v21 = vadd.f32 %v11984_v4, %v11944_v42  ;;  %v7059_v13 = vpack.c.bf16 %v6887_v8, %v6887_v8  ;;  %v6723_v46 = vrot.slane %v6716_v29, %v10613_v32  ;;  %v6769_v10 = vrot.slane %v6754_v28, %v10613_v32 }
 0x3cd   :  { %v6755_v27 = vcombine.low %v6740_v56, %v6747_v35  ;;  %v6779_v7 = vrot.slane %v6771_v45, %v10613_v32  ;;  %v12054_v43 = vrot.slane %v6330_v57, %v10613_v32  ;;  %v6321_v41 = vadd.f32 %v11949_v63, %v6307_v9 }
 0x3ce   :  { %v6322_v14 = vadd.f32 %v11949_v63, %v6308_v21  ;;  %v7083_v44 = vsel %vm12015_vm10, %v7059_v13, %v7082_v51  ;;  %v6731_v62 = vcombine.low %v6723_v46, %v6730_v23  ;;  %v6808_v33 = vrot.slane %v11995_v37, %v10613_v32 }
 0x3cf   :  { %v6762_v42 = vrot.slane %v6755_v27, %v10613_v32  ;;  %v6794_v4 = vcombine.low %v6779_v7, %v6786_v5  ;;  %7084 = vst [vmem:[#allocation3 + $0x14] sm:$0x7] %v7083_v44  ;;  %v6328_v22 = vmax.f32 %v6321_v41, 0.0  ;;  %v12067_v34 = vrot.slane %v9594_v11, %v10613_v32 }
 0x3d0   :  { %v6329_v26 = vmax.f32 %v6322_v14, 0.0  ;;  %v7055_v16 = vpack.c.bf16 %v6731_v62, %v6731_v62  ;;  %v6639_v36 = vcombine.high %v12054_v43, %v12054_v43  ;;  %v6646_v60 = vrot.slane %v12054_v43, %v10613_v32 }
 0x3d1   :  { %v6770_v63 = vcombine.low %v6762_v42, %v6769_v10  ;;  %v6801_v54 = vrot.slane %v6794_v4, %v10613_v32  ;;  %v6534_v24 = vcombine.high %v6328_v22, %v6328_v22  ;;  %v6541_v5 = vrot.slane %v6328_v22, %v10613_v32 }
 0x3d2   :  { %v6583_v0 = vcombine.high %v6329_v26, %v6329_v26  ;;  %v7071_v20 = vsel %vm12015_vm10, %v7055_v16, %v7070_v6  ;;  %v6590_v59 = vrot.slane %v6329_v26, %v10613_v32  ;;  %v6653_v58 = vrot.slane %v6639_v36, %v10613_v32 }
 0x3d3   :  { %v6809_v37 = vcombine.low %v6801_v54, %v6808_v33  ;;  %v7056_v61 = vpack.c.bf16 %v6770_v63, %v6770_v63  ;;  %7072 = vst [vmem:[#allocation3 + $0x4] sm:$0x7] %v7071_v20  ;;  %v6548_v25 = vrot.slane %v6534_v24, %v10613_v32  ;;  %v6549_v49 = vcombine.high %v6541_v5, %v6541_v5 }
 0x3d4   :  { %v6557_v15 = vrot.slane %v6541_v5, %v10613_v32  ;;  %v6597_v12 = vrot.slane %v6583_v0, %v10613_v32  ;;  %v6598_v1 = vcombine.high %v6590_v59, %v6590_v59  ;;  %v6606_v31 = vrot.slane %v6590_v59, %v10613_v32 }
 0x3d5   :  { %v7057_v47 = vpack.c.bf16 %v6809_v37, %v6809_v37  ;;  %v7074_v18 = vsel %vm12015_vm10, %v7056_v61, %v7073_v17  ;;  %v6550_v50 = vcombine.high %v6548_v25, %v6548_v25  ;;  %v6564_v19 = vrot.slane %v6548_v25, %v10613_v32 }
 0x3d6   :  { %7075 = vst [vmem:[#allocation3 + $0x8] sm:$0x7] %v7074_v18  ;;  %v6571_v2 = vrot.slane %v6549_v49, %v10613_v32  ;;  %v6579_v39 = vcombine.high %v6557_v15, %v6557_v15  ;;  %v6599_v3 = vcombine.high %v6597_v12, %v6597_v12  ;;  %v6613_v8 = vrot.slane %v6597_v12, %v10613_v32  ;;  %v7088_v12 = vld [vmem:[#allocation3 + $0x1c] sm:$0x7] }
 0x3d7   :  { %v7077_v48 = vsel %vm12015_vm10, %v7057_v47, %v7076_v30  ;;  %v6578_v52 = vrot.slane %v6550_v50, %v10613_v32  ;;  %v6580_v11 = vcombine.high %v6564_v19, %v6564_v19  ;;  %v6620_v29 = vrot.slane %v6598_v1, %v10613_v32  ;;  %v7085_v30 = vld [vmem:[#allocation3 + $0x18] sm:$0x7] }
 0x3d8   :  { %7078 = vst [vmem:[#allocation3 + $0xc] sm:$0x7] %v7077_v48  ;;  %v6581_v56 = vcombine.high %v6571_v2, %v6571_v2  ;;  %v6889_v28 = vcombine.low %v6557_v15, %v6571_v2  ;;  %v6910_v53 = vrot.slane %v6579_v39, %v10613_v32  ;;  %v6627_v35 = vrot.slane %v6599_v3, %v10613_v32 }
 0x3d9   :  { %v6582_v45 = vcombine.high %v6578_v52, %v6578_v52  ;;  %v6928_v57 = vcombine.low %v6578_v52, %v6580_v11  ;;  %v7027_v9 = vrot.slane %v6653_v58, %v10613_v32  ;;  %v6629_v21 = vcombine.high %v6613_v8, %v6613_v8 }
 0x3da   :  { %v6903_v51 = vrot.slane %v6889_v28, %v10613_v32  ;;  %v6927_v23 = vcombine.low %v6581_v56, %v6564_v19  ;;  %v6631_v13 = vcombine.high %v6627_v35, %v6627_v35  ;;  %v6966_v46 = vcombine.low %v6606_v31, %v6620_v29  ;;  %v10200_v27 = vld [vmem:[#allocation3 + $0x4] ss:$0 sps:$4 sm:$0x66]  }
 0x3db   :  { %v6942_v43 = vrot.slane %v6928_v57, %v10613_v32  ;;  %v6949_v41 = vrot.slane %v6582_v45, %v10613_v32  ;;  %v6925_v14 = vrot.slane %v6910_v53, %v10613_v32  ;;  %v9595_v44 = vcombine.high %v6606_v31, %v6620_v29 }
 0x3dc   :  { %v6911_v7 = vcombine.low %v12067_v34, %v6903_v51  ;;  %v6935_v10 = vrot.slane %v6927_v23, %v10613_v32  ;;  %v6974_v62 = vrot.slane %v6966_v46, %v10613_v32  ;;  %v7005_v42 = vcombine.low %v6627_v35, %v6629_v21  ;;  %v12107_v34 = vld [vmem:[#allocation3 + $0x4] sm:$0x3] }
 0x3dd   :  { %v10201_v4 = vld [vmem:[#allocation3 + $0x8] ss:$0 sps:$4 sm:$0x66]   ;;  %v6988_v22 = vrot.slane %v6613_v8, %v10613_v32  ;;  %v7006_v26 = vcombine.low %v6631_v13, %v6646_v60  ;;  %v6964_v54 = vrot.slane %v6949_v41, %v10613_v32  ;;  %v6981_v16 = vrot.slane %v9595_v44, %v10613_v32  ;;  %v7091_v8 = vld [vmem:[#allocation3 + $0x20] sm:$0x7] }
 0x3de   :  { %v6918_v33 = vrot.slane %v6911_v7, %v10613_v32  ;;  %v6950_v6 = vcombine.low %v6935_v10, %v6942_v43  ;;  %v12109_v63 = vld [vmem:[#allocation3 + $0x8] sm:$0x3]  ;;  %v7013_v17 = vrot.slane %v7005_v42, %v10613_v32  ;;  %v7518_v36 = vrot.slane %v10200_v27, 1  ;;  %v7094_v51 = vld [vmem:[#allocation3 + $0x24] sm:$0x7]  ;;  %v10239_v27 = vld [vmem:[%s12609_s5 + $0x48] sm:$0xff]  }
 0x3df   :  { %v10203_v24 = vld [vmem:[#allocation3 + $0xc] ss:$0 sps:$4 sm:$0x66]   ;;  %v7020_v37 = vrot.slane %v7006_v26, %v10613_v32  ;;  %v7519_v61 = vrot.slane %v10201_v4, 1  ;;  %v7042_v59 = vrot.slane %v7027_v9, %v10613_v32  ;;  %v6989_v60 = vcombine.low %v6974_v62, %v6981_v16  ;;  %v12144_v43 = vld [vmem:[#allocation3 + $0x4] sm:$0x3]  ;;  %9981 = vmatprep.subr.bf16.mxu1 %v10239_v27 }
 0x3e0   :  { %v6926_v5 = vcombine.low %v6918_v33, %v6925_v14  ;;  %v6957_v0 = vrot.slane %v6950_v6, %v10613_v32  ;;  %v12116_v20 = vld [vmem:[#allocation3 + $0xc] sm:$0x3]  ;;  %7524 = vrot.lane.b32.xlu1 %v7518_v36, %s10325_s2  ;;  %v9608_v25 = vcombine.low %v12107_v34, %v12107_v34  ;;  %v9609_v49 = vcombine.low %v12109_v63, %v12109_v63  ;;  %v12149_v44 = vld [vmem:[#allocation3] sm:$0x3] }
 0x3e1   :  { %v7028_v47 = vcombine.low %v7013_v17, %v7020_v37  ;;  %7526 = vrot.lane.b32.xlu0 %v7519_v61, %s10325_s2  ;;  %v9610_v18 = vcombine.low %v12116_v20, %v12116_v20  ;;  %v6996_v1 = vrot.slane %v6989_v60, %v10613_v32  ;;  %v7003_v58 = vrot.slane %v6988_v22, %v10613_v32  ;;  %v12169_v61 = vld [vmem:[#allocation3 + $0x8] sm:$0x3] }
 0x3e2   :  { %v6965_v15 = vcombine.low %v6957_v0, %v6964_v54  ;;  %v7060_v38 = vpack.c.bf16 %v6926_v5, %v6926_v5  ;;  %v7449_v50 = vshll.u32 %v9608_v25, 16  ;;  %v7520_v19 = vrot.slane %v10203_v24, 1  ;;  %9982 = vmatpush3.bf16.msra.mxu1 %v10239_v27  ;;  %v12160_v54 = vld [vmem:[#allocation3 + $0x14] sm:$0x3] }
 0x3e3   :  { %v7035_v39 = vrot.slane %v7028_v47, %v10613_v32  ;;  %v7456_v3 = vshll.u32 %v9609_v49, 16  ;;  %v7004_v31 = vcombine.low %v6996_v1, %v7003_v58  ;;  %v7447_v52 = vshrl.u32 %v9608_v25, 16 }
 0x3e4   :  { %v7061_v2 = vpack.c.bf16 %v6965_v15, %v6965_v15  ;;  %v7086_v48 = vsel %vm12015_vm10, %v7060_v38, %v7085_v30  ;;  %v7451_v11 = vrot.slane %v7449_v50, 1  ;;  %7528 = vrot.lane.b32.xlu1 %v7520_v19, %s10325_s2  ;;  %v7463_v56 = vshll.u32 %v9610_v18, 16 }
 0x3e5   :  { %7087 = vst [vmem:[#allocation3 + $0x18] sm:$0x7] %v7086_v48  ;;  %v7043_v53 = vcombine.low %v7035_v39, %v7042_v59  ;;  %v7454_v29 = vshrl.u32 %v9609_v49, 16  ;;  %v7458_v35 = vrot.slane %v7456_v3, 1  ;;  %v7062_v45 = vpack.c.bf16 %v7004_v31, %v7004_v31 }
 0x3e6   :  { %v7089_v28 = vsel %vm12015_vm10, %v7061_v2, %v7088_v12  ;;  %v7452_v23 = vor.u32 %v7451_v11, %v7447_v52  ;;  %v7465_v57 = vrot.slane %v7463_v56, 1  ;;  %v7461_v46 = vshrl.u32 %v9610_v18, 16 }
 0x3e7   :  { %7090 = vst [vmem:[#allocation3 + $0x1c] sm:$0x7] %v7089_v28  ;;  %v7063_v9 = vpack.c.bf16 %v7043_v53, %v7043_v53  ;;  %v7459_v21 = vor.u32 %v7458_v35, %v7454_v29  ;;  %v7092_v13 = vsel %vm12015_vm10, %v7062_v45, %v7091_v8  ;;  %v9597_v33 = vcombine.low %v12144_v43, %v12144_v43  ;;  %v10240_v53 = vld [vmem:[%s12609_s5 + $0x50] sm:$0xff]   ;;  %v10241_v8 = vld [vmem:[%s12609_s5 + $0x58] sm:$0xff]  }
 0x3e8   :  { %7488 = vrot.lane.b32.xlu0 %v7452_v23, %s10326_s28  ;;  %7093 = vst [vmem:[#allocation3 + $0x20] sm:$0x7] %v7092_v13  ;;  %v7466_v10 = vor.u32 %v7465_v57, %v7461_v46  ;;  %v9596_v5 = vcombine.low %v12149_v44, %v12149_v44  ;;  %v9599_v49 = vcombine.low %v12160_v54, %v12160_v54 }
 0x3e9   :  { %v7095_v7 = vsel %vm12015_vm10, %v7063_v9, %v7094_v51  ;;  %7490 = vrot.lane.b32.xlu1 %v7459_v21, %s10326_s28  ;;  %v7137_v37 = vshll.u32 %v9597_v33, 16  ;;  %v9598_v18 = vcombine.low %v12169_v61, %v12169_v61  ;;  %v7135_v48 = vshrl.u32 %v9597_v33, 16  ;;  %9983 = vmatprep.subr.bf16.mxu1 %v10240_v53  ;;  %v10216_v9 = vld [vmem:[#allocation3] ss:$0 sps:$4 sm:$0x66]  }
 0x3ea   :  { %7096 = vst [vmem:[#allocation3 + $0x24] sm:$0x7] %v7095_v7  ;;  %v7130_v47 = vshll.u32 %v9596_v5, 16  ;;  %v7151_v2 = vshll.u32 %v9599_v49, 16  ;;  %v7128_v56 = vshrl.u32 %v9596_v5, 16  ;;  %v7149_v35 = vshrl.u32 %v9599_v49, 16  ;;  %9984 = vmatpush3.bf16.msra.mxu1 %v10240_v53 }
 0x3eb   :  { %v7139_v19 = vrot.slane %v7137_v37, 1  ;;  %v7144_v31 = vshll.u32 %v9598_v18, 16  ;;  %v7142_v57 = vshrl.u32 %v9598_v18, 16  ;;  %9985 = vmatprep.subr.bf16.mxu1 %v10241_v8  ;;  %v7199_v27 = vrot.slane %v10216_v9, 1  ;;  %v12200_v33 = vld [vmem:[#allocation3 + $0x8] sm:$0x3] }
 0x3ec   :  { %v10206_v41 = vld [vmem:[#allocation3 + $0x18] ss:$0 sps:$4 sm:$0x66]   ;;  %7492 = vrot.lane.b32.xlu0 %v7466_v10, %s10326_s28  ;;  %v7132_v3 = vrot.slane %v7130_v47, 1  ;;  %v7153_v28 = vrot.slane %v7151_v2, 1  ;;  %v9660_v5 = vcombine.low %v12200_v33, %v12200_v33 }
 0x3ed   :  { %v12147_v14 = vld [vmem:[#allocation3 + $0x18] sm:$0x3]  ;;  %v7521_v42 = vrot.slane %v10206_v41, 1  ;;  %v7140_v11 = vor.u32 %v7139_v19, %v7135_v48  ;;  %v7146_v45 = vrot.slane %v7144_v31, 1  ;;  %v12195_v41 = vld [vmem:[#allocation3 + $0xc] sm:$0x3] }
 0x3ee   :  { %v10207_v62 = vld [vmem:[#allocation3 + $0x1c] ss:$0 sps:$4 sm:$0x66]   ;;  %v9611_v40 = vcombine.low %v12147_v14, %v12147_v14  ;;  %v12176_v1 = vld [vmem:[#allocation3 + $0x18] sm:$0x3]  ;;  %v7133_v29 = vor.u32 %v7132_v3, %v7128_v56  ;;  %v7154_v23 = vor.u32 %v7153_v28, %v7149_v35  ;;  %9986 = vmatpush3.bf16.msra.mxu1 %v10241_v8 }
 0x3ef   :  { %v12153_v4 = vld [vmem:[#allocation3 + $0x1c] sm:$0x3]  ;;  %v7522_v6 = vrot.slane %v10207_v62, 1  ;;  %v12163_v24 = vld [vmem:[#allocation3 + $0x20] sm:$0x3]  ;;  %v9600_v52 = vcombine.low %v12176_v1, %v12176_v1  ;;  %v7147_v21 = vor.u32 %v7146_v45, %v7142_v57 }
 0x3f0   :  { %v7470_v22 = vshll.u32 %v9611_v40, 16  ;;  %v9612_v26 = vcombine.low %v12153_v4, %v12153_v4  ;;  %7530 = vrot.lane.b32.xlu0 %v7521_v42, %s10325_s2  ;;  %v7468_v16 = vshrl.u32 %v9611_v40, 16  ;;  %v9613_v0 = vcombine.low %v12163_v24, %v12163_v24  ;;  %v10210_v25 = vld [vmem:[#allocation3 + $0x20] ss:$0 sps:$4 sm:$0x66]  }
 0x3f1   :  { %7532 = vrot.lane.b32.xlu1 %v7522_v6, %s10325_s2  ;;  %v7523_v58 = vrot.slane %v10210_v25, 1  ;;  %v7158_v51 = vshll.u32 %v9600_v52, 16  ;;  %v12192_v46 = vld [vmem:[#allocation3 + $0x1c] sm:$0x3]  ;;  %v7156_v7 = vshrl.u32 %v9600_v52, 16 }
 0x3f2   :  { %v7472_v17 = vrot.slane %v7470_v22, 1  ;;  %v7477_v36 = vshll.u32 %v9612_v26, 16  ;;  %v7475_v30 = vshrl.u32 %v9612_v26, 16  ;;  %v7484_v15 = vshll.u32 %v9613_v0, 16  ;;  %v12213_v37 = vld [vmem:[#allocation3 + $0x10] sm:$0x3] }
 0x3f3   :  { %v7482_v50 = vshrl.u32 %v9613_v0, 16  ;;  %v7160_v13 = vrot.slane %v7158_v51, 1  ;;  %v10218_v10 = vld [vmem:[#allocation3 + $0x8] ss:$0 sps:$4 sm:$0x66]   ;;  %v9601_v42 = vcombine.low %v12192_v46, %v12192_v46  ;;  %v9661_v26 = vcombine.low %v12195_v41, %v12195_v41 }
 0x3f4   :  { %v7473_v59 = vor.u32 %v7472_v17, %v7468_v16  ;;  %v7479_v60 = vrot.slane %v7477_v36, 1  ;;  %v7486_v12 = vrot.slane %v7484_v15, 1  ;;  %v10219_v40 = vld [vmem:[#allocation3 + $0x4] ss:$0 sps:$4 sm:$0x66]   ;;  %v7201_v6 = vrot.slane %v10218_v10, 1 }
 0x3f5   :  { %v7161_v62 = vor.u32 %v7160_v13, %v7156_v7  ;;  %v10220_v22 = vld [vmem:[#allocation3 + $0x18] ss:$0 sps:$4 sm:$0x66]   ;;  %v7200_v16 = vrot.slane %v10219_v40, 1  ;;  %v7165_v36 = vshll.u32 %v9601_v42, 16  ;;  %v12211_v0 = vld [vmem:[%s12609_s5] sm:$0xff]  }
 0x3f6   :  { %7494 = vrot.lane.b32.xlu1 %v7473_v59, %s10326_s28  ;;  %v7480_v38 = vor.u32 %v7479_v60, %v7475_v30  ;;  %v7487_v39 = vor.u32 %v7486_v12, %v7482_v50  ;;  %v10221_v17 = vld [vmem:[#allocation3 + $0x14] ss:$0 sps:$4 sm:$0x66]   ;;  %v7203_v59 = vrot.slane %v10220_v22, 1  ;;  %v8100_v60 = vshll.u32 %v9661_v26, 16  ;;  %9991 = vmatprep.subr.bf16.mxu1 %v12211_v0 }
 0x3f7   :  { %v10222_v30 = vld [vmem:[#allocation3 + $0x1c] ss:$0 sps:$4 sm:$0x66]   ;;  %v7202_v25 = vrot.slane %v10221_v17, 1  ;;  %v7167_v49 = vrot.slane %v7165_v36, 1  ;;  %v8093_v15 = vshll.u32 %v9660_v5, 16 }
 0x3f8   :  { %7496 = vrot.lane.b32.xlu0 %v7480_v38, %s10326_s28  ;;  %v9662_v38 = vcombine.low %v12213_v37, %v12213_v37  ;;  %v7204_v47 = vrot.slane %v10222_v30, 1  ;;  %v7163_v18 = vshrl.u32 %v9601_v42, 16  ;;  %v8102_v12 = vrot.slane %v8100_v60, 1  ;;  %v10226_v3 = vld [vmem:[#allocation3 + $0x8] ss:$0 sps:$4 sm:$0x66]  }
 0x3f9   :  { %v8098_v50 = vshrl.u32 %v9661_v26, 16  ;;  %v8095_v19 = vrot.slane %v8093_v15, 1  ;;  %v12223_v31 = vld [vmem:[#allocation3 + $0x1c] sm:$0x3]  ;;  %v12226_v56 = vld [vmem:[#allocation3 + $0x20] sm:$0x3] }
 0x3fa   :  { %7534 = vrot.lane.b32.xlu1 %v7523_v58, %s10325_s2  ;;  %v7168_v58 = vor.u32 %v7167_v49, %v7163_v18  ;;  %v8107_v2 = vshll.u32 %v9662_v38, 16  ;;  %v8162_v28 = vrot.slane %v10226_v3, 1  ;;  %v8105_v53 = vshrl.u32 %v9662_v38, 16  ;;  %v10228_v8 = vld [vmem:[#allocation3 + $0x10] ss:$0 sps:$4 sm:$0x66]  }
 0x3fb   :  { %v8103_v48 = vor.u32 %v8102_v12, %v8098_v50  ;;  %v10229_v45 = vld [vmem:[#allocation3 + $0xc] ss:$0 sps:$4 sm:$0x66]   ;;  %v9664_v51 = vcombine.low %v12226_v56, %v12226_v56  ;;  %v8164_v57 = vrot.slane %v10228_v8, 1 }
 0x3fc   :  { %7498 = vrot.lane.b32.xlu0 %v7487_v39, %s10326_s28  ;;  %v8091_v39 = vshrl.u32 %v9660_v5, 16  ;;  %v10230_v9 = vld [vmem:[#allocation3 + $0x20] ss:$0 sps:$4 sm:$0x66]   ;;  %v8163_v13 = vrot.slane %v10229_v45, 1 }
 0x3fd   :  { %v8121_v7 = vshll.u32 %v9664_v51, 16  ;;  %v8119_v17 = vshrl.u32 %v9664_v51, 16  ;;  %v10234_v36 = vld [vmem:[#allocation3 + $0x24] ss:$0 sps:$4 sm:$0x66]  }
 0x3fe   :  { %7171 = vrot.lane.b32.xlu1 %v7140_v11, %s10326_s28  ;;  %v8096_v52 = vor.u32 %v8095_v19, %v8091_v39  ;;  %v8109_v11 = vrot.slane %v8107_v2, 1  ;;  %v8167_v30 = vrot.slane %v10234_v36, 1 }
 0x3ff   :  { %v8123_v22 = vrot.slane %v8121_v7, 1 }
 0x400   :  { %7169 = vrot.lane.b32.xlu0 %v7133_v29, %s10326_s28  ;;  %v9663_v29 = vcombine.low %v12223_v31, %v12223_v31  ;;  %v8110_v35 = vor.u32 %v8109_v11, %v8105_v53 }
 0x401   :  { %v8124_v5 = vor.u32 %v8123_v22, %v8119_v17 }
 0x402   :  { %7175 = vrot.lane.b32.xlu1 %v7154_v23, %s10326_s28  ;;  %v12234_v23 = vld [vmem:[#allocation3 + $0x24] sm:$0x3] }
 0x403   :  { %v9665_v10 = vcombine.low %v12234_v23, %v12234_v23 }
 0x404   :  { %7173 = vrot.lane.b32.xlu0 %v7147_v21, %s10326_s28  ;;  %v8114_v21 = vshll.u32 %v9663_v29, 16 }
 0x405   :  { %v8128_v26 = vshll.u32 %v9665_v10, 16  ;;  %v8126_v60 = vshrl.u32 %v9665_v10, 16 }
 0x406   :  { %7205 = vrot.lane.b32.xlu1 %v7199_v27, %s10325_s2  ;;  %v10231_v27 = vld [vmem:[#allocation3 + $0x1c] ss:$0 sps:$4 sm:$0x66]   ;;  %v8116_v40 = vrot.slane %v8114_v21, 1 }
 0x407   :  { %v8165_v42 = vrot.slane %v10231_v27, 1 }
 0x408   :  { %7177 = vrot.lane.b32.xlu0 %v7161_v62, %s10326_s28  ;;  %v8166_v62 = vrot.slane %v10230_v9, 1 }
 0x40a   :  { %7209 = vrot.lane.b32.xlu1 %v7201_v6, %s10325_s2  ;;  %v8112_v6 = vshrl.u32 %v9663_v29, 16 }
 0x40c   :  { %7207 = vrot.lane.b32.xlu0 %v7200_v16, %s10325_s2  ;;  %v8117_v16 = vor.u32 %v8116_v40, %v8112_v6 }
 0x40e   :  { %7213 = vrot.lane.b32.xlu1 %v7203_v59, %s10325_s2  ;;  %v8130_v59 = vrot.slane %v8128_v26, 1 }
 0x410   :  { %7211 = vrot.lane.b32.xlu0 %v7202_v25, %s10325_s2  ;;  %v8131_v25 = vor.u32 %v8130_v59, %v8126_v60 }
 0x412   :  { %7215 = vrot.lane.b32.xlu1 %v7204_v47, %s10325_s2 }
 0x414   :  { %7179 = vrot.lane.b32.xlu0 %v7168_v58, %s10326_s28 }
 0x416   :  { %8134 = vrot.lane.b32.xlu1 %v8103_v48, %s10326_s28 }
 0x418   :  { %8132 = vrot.lane.b32.xlu0 %v8096_v52, %s10326_s28 }
 0x41a   :  { %8168 = vrot.lane.b32.xlu1 %v8162_v28, %s10325_s2 }
 0x41c   :  { %8136 = vrot.lane.b32.xlu0 %v8110_v35, %s10326_s28 }
 0x41e   :  { %8172 = vrot.lane.b32.xlu1 %v8164_v57, %s10325_s2 }
 0x420   :  { %8170 = vrot.lane.b32.xlu0 %v8163_v13, %s10325_s2 }
 0x422   :  { %8176 = vrot.lane.b32.xlu1 %v8166_v62, %s10325_s2 }
 0x424   :  { %8174 = vrot.lane.b32.xlu0 %v8165_v42, %s10325_s2 }
 0x426   :  { %8138 = vrot.lane.b32.xlu1 %v8117_v16, %s10326_s28 }
 0x428   :  { %8140 = vrot.lane.b32.xlu0 %v8124_v5, %s10326_s28 }
 0x42a   :  { %8178 = vrot.lane.b32.xlu1 %v8167_v30, %s10325_s2 }
 0x42c   :  { %8142 = vrot.lane.b32.xlu0 %v8131_v25, %s10326_s28 }
 0x452   :  { %v7525_v49 = vpop.permute.xlu1 %7524 }
 0x453   :  { %v7527_v15 = vpop.permute.xlu0 %7526 }
 0x456   :  { %v7529_v38 = vpop.permute.xlu1 %7528 }
 0x45a   :  { %v7489_v47 = vpop.permute.xlu0 %7488 }
 0x45b   :  { %v7491_v18 = vpop.permute.xlu1 %7490  ;;  %v7538_v12 = vsel %vm1758_vm2, %v12107_v34, %v7489_v47 }
 0x45c   :  { %v7541_v58 = vsel %vm1758_vm2, %v12109_v63, %v7491_v18  ;;  %v7555_v2 = vsel %vm3977_vm6, %v7538_v12, %v7525_v49 }
 0x45d   :  { %v7557_v50 = vsel %vm3977_vm6, %v7541_v58, %v7527_v15  ;;  %v7578_v39 = vrot.slane %v7555_v2, %v10613_v32 }
 0x45e   :  { %v7493_v19 = vpop.permute.xlu0 %7492  ;;  %v7600_v48 = vrot.slane %v7557_v50, %v10613_v32 }
 0x45f   :  { %v7544_v3 = vsel %vm1758_vm2, %v12116_v20, %v7493_v19  ;;  %v7579_v53 = vcombine.high %v7578_v39, %v7578_v39  ;;  %v7586_v59 = vrot.slane %v7578_v39, %v10613_v32 }
 0x460   :  { %v7601_v28 = vcombine.high %v7600_v48, %v7600_v48  ;;  %v7608_v34 = vrot.slane %v7600_v48, %v10613_v32  ;;  %v7559_v63 = vsel %vm3977_vm6, %v7544_v3, %v7529_v38 }
 0x461   :  { %v7622_v51 = vrot.slane %v7559_v63, %v10613_v32  ;;  %v7593_v9 = vrot.slane %v7579_v53, %v10613_v32 }
 0x462   :  { %v7531_v11 = vpop.permute.xlu0 %7530  ;;  %v7615_v29 = vrot.slane %v7601_v28, %v10613_v32  ;;  %v7708_v35 = vunpack.i.h.s16 %v7608_v34 }
 0x463   :  { %v7533_v52 = vpop.permute.xlu1 %7532  ;;  %v7623_v42 = vcombine.high %v7622_v51, %v7622_v51  ;;  %v9632_v22 = vpack.i.b16 %v7608_v34, %v7593_v9  ;;  %v7630_v26 = vrot.slane %v7622_v51, %v10613_v32 }
 0x464   :  { %v9633_v10 = vpack.i.b16 %v7615_v29, %v7708_v35 }
 0x465   :  { %v7637_v25 = vrot.slane %v7623_v42, %v10613_v32  ;;  %v7744_v47 = vcombine.low %v7586_v59, %v9632_v22 }
 0x466   :  { %v7745_v30 = vcombine.low %v9633_v10, %v7630_v26 }
 0x467   :  { %v7754_v28 = vrot.slane %v7744_v47, %v10613_v32 }
 0x468   :  { %v7495_v8 = vpop.permute.xlu1 %7494  ;;  %v7761_v19 = vrot.slane %v7745_v30, %v10613_v32 }
 0x469   :  { %v7547_v45 = vsel %vm1758_vm2, %v12147_v14, %v7495_v8 }
 0x46a   :  { %v7561_v57 = vsel %vm3977_vm6, %v7547_v45, %v7531_v11  ;;  %v7497_v20 = vpop.permute.xlu0 %7496 }
 0x46b   :  { %v7644_v21 = vrot.slane %v7561_v57, %v10613_v32  ;;  %v7550_v13 = vsel %vm1758_vm2, %v12153_v4, %v7497_v20  ;;  %v7776_v57 = vcombine.low %v7754_v28, %v7761_v19 }
 0x46c   :  { %v7563_v27 = vsel %vm3977_vm6, %v7550_v13, %v7533_v52  ;;  %v7535_v7 = vpop.permute.xlu1 %7534 }
 0x46d   :  { %v7645_v62 = vcombine.high %v7644_v21, %v7644_v21  ;;  %v7652_v40 = vrot.slane %v7644_v21, %v10613_v32  ;;  %v7666_v14 = vrot.slane %v7563_v27, %v10613_v32 }
 0x46e   :  { %v7499_v6 = vpop.permute.xlu0 %7498 }
 0x46f   :  { %v7659_v16 = vrot.slane %v7645_v62, %v10613_v32  ;;  %v7714_v17 = vunpack.i.h.s16 %v7652_v40  ;;  %v7667_v36 = vcombine.high %v7666_v14, %v7666_v14  ;;  %v7553_v4 = vsel %vm1758_vm2, %v12163_v24, %v7499_v6 }
 0x470   :  { %v7172_v5 = vpop.permute.xlu1 %7171  ;;  %v7565_v60 = vsel %vm3977_vm6, %v7553_v4, %v7535_v7  ;;  %v9634_v18 = vpack.i.b16 %v7652_v40, %v7637_v25  ;;  %v7674_v2 = vrot.slane %v7666_v14, %v10613_v32  ;;  %v7784_v62 = vrot.slane %v7776_v57, %v10613_v32 }
 0x471   :  { %v9635_v49 = vpack.i.b16 %v7659_v16, %v7714_v17  ;;  %v7688_v15 = vrot.slane %v7565_v60, %v10613_v32  ;;  %v7681_v12 = vrot.slane %v7667_v36, %v10613_v32  ;;  %v10243_v36 = vld [vmem:[%s12609_s5 + $0x8] sm:$0xff]  }
 0x472   :  { %v7170_v38 = vpop.permute.xlu0 %7169 }
 0x473   :  { %v7689_v58 = vcombine.high %v7688_v15, %v7688_v15  ;;  %v7696_v50 = vrot.slane %v7688_v15, %v10613_v32  ;;  %v7746_v48 = vcombine.low %v9634_v18, %v9635_v49  ;;  %v7219_v53 = vsel %vm1758_vm2, %v12149_v44, %v7170_v38  ;;  %v10244_v18 = vld [vmem:[%s12609_s5 + $0x10] sm:$0xff]  }
 0x474   :  { %v7176_v24 = vpop.permute.xlu1 %7175  ;;  %v7222_v44 = vsel %vm1758_vm2, %v12144_v43, %v7172_v5 }
 0x475   :  { %v7703_v39 = vrot.slane %v7689_v58, %v10613_v32  ;;  %v7720_v3 = vunpack.i.h.s16 %v7696_v50  ;;  %v9636_v52 = vpack.i.b16 %v7696_v50, %v7681_v12  ;;  %v7768_v35 = vrot.slane %v7746_v48, %v10613_v32 }
 0x476   :  { %v7174_v11 = vpop.permute.xlu0 %7173  ;;  %v7228_v4 = vsel %vm1758_vm2, %v12160_v54, %v7176_v24 }
 0x477   :  { %v7747_v34 = vcombine.low %v7674_v2, %v9636_v52  ;;  %v9637_v8 = vpack.i.b16 %v7703_v39, %v7720_v3  ;;  %v7225_v27 = vsel %vm1758_vm2, %v12169_v61, %v7174_v11 }
 0x478   :  { %v7206_v63 = vpop.permute.xlu1 %7205 }
 0x479   :  { %v7236_v29 = vsel %vm3977_vm6, %v7219_v53, %v7206_v63  ;;  %v7775_v45 = vrot.slane %v7747_v34, %v10613_v32  ;;  %v7799_v13 = vrot.slane %v9637_v8, %v10613_v32  ;;  %v10245_v8 = vld [vmem:[%s12609_s5 + $0x18] sm:$0xff]  }
 0x47a   :  { %v7178_v51 = vpop.permute.xlu0 %7177  ;;  %v7259_v20 = vrot.slane %v7236_v29, %v10613_v32 }
 0x47b   :  { %v7777_v21 = vcombine.low %v7768_v35, %v7775_v45  ;;  %v7231_v6 = vsel %vm1758_vm2, %v12176_v1, %v7178_v51  ;;  %v7806_v16 = vrot.slane %v7799_v13, %v10613_v32 }
 0x47c   :  { %v7210_v9 = vpop.permute.xlu1 %7209  ;;  %v7260_v42 = vcombine.high %v7259_v20, %v7259_v20  ;;  %v7267_v39 = vrot.slane %v7259_v20, %v10613_v32 }
 0x47d   :  { %v7240_v7 = vsel %vm3977_vm6, %v7225_v27, %v7210_v9  ;;  %v7791_v40 = vrot.slane %v7777_v21, %v10613_v32 }
 0x47e   :  { %v7208_v10 = vpop.permute.xlu0 %7207  ;;  %v7303_v43 = vrot.slane %v7240_v7, %v10613_v32  ;;  %v7274_v25 = vrot.slane %v7260_v42, %v10613_v32 }
 0x47f   :  { %v7238_v14 = vsel %vm3977_vm6, %v7222_v44, %v7208_v10  ;;  %v7792_v26 = vcombine.low %v7784_v62, %v7791_v40  ;;  %v10246_v62 = vld [vmem:[%s12609_s5 + $0x20] sm:$0xff]  }
 0x480   :  { %v7281_v22 = vrot.slane %v7238_v14, %v10613_v32  ;;  %v7214_v61 = vpop.permute.xlu1 %7213  ;;  %v7304_v38 = vcombine.high %v7303_v43, %v7303_v43  ;;  %v7311_v12 = vrot.slane %v7303_v43, %v10613_v32 }
 0x481   :  { %v7244_v17 = vsel %vm3977_vm6, %v7231_v6, %v7214_v61  ;;  %9987 = vmatprep.mubr.msk.bf16.mxu1 %vm5076_vm7, %v7792_v26 }
 0x482   :  { %v7282_v5 = vcombine.high %v7281_v22, %v7281_v22  ;;  %v7289_v1 = vrot.slane %v7281_v22, %v10613_v32  ;;  %v7347_v59 = vrot.slane %v7244_v17, %v10613_v32  ;;  %v7212_v30 = vpop.permute.xlu0 %7211  ;;  %9988 = vmatmul.mubr.msk.bf16.vlgmr.msra.gmra.mrb[32].mxu1 %vm5076_vm7, %v7806_v16  ;;  %v7318_v28 = vrot.slane %v7304_v38, %v10613_v32 }
 0x483   :  { %v7242_v60 = vsel %vm3977_vm6, %v7228_v4, %v7212_v30  ;;  %9992 = vmatpush3.bf16.msra.mxu1 %v12211_v0 }
 0x484   :  { %v7296_v49 = vrot.slane %v7282_v5, %v10613_v32  ;;  %v7389_v15 = vunpack.i.h.s16 %v7289_v1  ;;  %v7216_v54 = vpop.permute.xlu1 %7215  ;;  %v7325_v47 = vrot.slane %v7242_v60, %v10613_v32  ;;  %9993 = vmatprep.subr.bf16.mxu1 %v10243_v36  ;;  %v9646_v58 = vpack.i.b16 %v7289_v1, %v7274_v25 }
 0x485   :  { %v7348_v24 = vcombine.high %v7347_v59, %v7347_v59  ;;  %v7355_v21 = vrot.slane %v7347_v59, %v10613_v32 }
 0x486   :  { %v9647_v50 = vpack.i.b16 %v7296_v49, %v7389_v15  ;;  %v7180_v19 = vpop.permute.xlu0 %7179  ;;  %v7326_v2 = vcombine.high %v7325_v47, %v7325_v47  ;;  %v7333_v48 = vrot.slane %v7325_v47, %v10613_v32 }
 0x487   :  { %v7234_v0 = vsel %vm1758_vm2, %v12192_v46, %v7180_v19  ;;  %9994 = vmatpush3.bf16.msra.mxu1 %v10243_v36  ;;  %v7906_v46 = vcombine.low %v7267_v39, %v9646_v58  ;;  %v7362_v29 = vrot.slane %v7348_v24, %v10613_v32  ;;  %v10247_v36 = vld [vmem:[%s12609_s5 + $0x28] sm:$0xff]  }
 0x488   :  { %v7907_v3 = vcombine.low %v9647_v50, %v7311_v12  ;;  %v7246_v52 = vsel %vm3977_vm6, %v7234_v0, %v7216_v54  ;;  %v8135_v11 = vpop.permute.xlu1 %8134  ;;  %v7340_v34 = vrot.slane %v7326_v2, %v10613_v32  ;;  %v7395_v53 = vunpack.i.h.s16 %v7333_v48  ;;  %9995 = vmatprep.subr.bf16.mxu1 %v10244_v18  ;;  %v10249_v0 = vld [vmem:[%s12609_s5 + $0x68] sm:$0xff]  }
 0x489   :  { %v7369_v63 = vrot.slane %v7246_v52, %v10613_v32  ;;  %v9648_v45 = vpack.i.b16 %v7333_v48, %v7318_v28  ;;  %v7916_v40 = vrot.slane %v7906_v46, %v10613_v32  ;;  %v8185_v4 = vsel %vm1758_vm2, %v12195_v41, %v8135_v11  ;;  %v10248_v41 = vld [vmem:[%s12609_s5 + $0x60] sm:$0xff]  }
 0x48a   :  { %v8133_v35 = vpop.permute.xlu0 %8132  ;;  %v9649_v51 = vpack.i.b16 %v7340_v34, %v7395_v53  ;;  %v7923_v9 = vrot.slane %v7907_v3, %v10613_v32 }
 0x48b   :  { %v7370_v57 = vcombine.high %v7369_v63, %v7369_v63  ;;  %v7377_v20 = vrot.slane %v7369_v63, %v10613_v32  ;;  %9996 = vmatpush3.bf16.msra.mxu1 %v10244_v18  ;;  %v8182_v6 = vsel %vm1758_vm2, %v12200_v33, %v8133_v35 }
 0x48c   :  { %v8169_v13 = vpop.permute.xlu1 %8168  ;;  %v7908_v27 = vcombine.low %v9648_v45, %v9649_v51  ;;  %9997 = vmatprep.subr.bf16.mxu1 %v10245_v8  ;;  %v7938_v26 = vcombine.low %v7916_v40, %v7923_v9 }
 0x48d   :  { %v7384_v44 = vrot.slane %v7370_v57, %v10613_v32  ;;  %v7401_v7 = vunpack.i.h.s16 %v7377_v20  ;;  %v9650_v10 = vpack.i.b16 %v7377_v20, %v7362_v29  ;;  %v8199_v17 = vsel %vm3977_vm6, %v8182_v6, %v8169_v13  ;;  %v10250_v29 = vld [vmem:[%s12609_s5 + $0x70] sm:$0xff]  }
 0x48e   :  { %v8137_v14 = vpop.permute.xlu0 %8136  ;;  %v7930_v61 = vrot.slane %v7908_v27, %v10613_v32  ;;  %v8222_v59 = vrot.slane %v8199_v17, %v10613_v32  ;;  %v7946_v49 = vrot.slane %v7938_v26, %v10613_v32 }
 0x48f   :  { %v7909_v42 = vcombine.low %v7355_v21, %v9650_v10  ;;  %9998 = vmatpush3.bf16.msra.mxu1 %v10245_v8  ;;  %v9651_v16 = vpack.i.b16 %v7384_v44, %v7401_v7  ;;  %v8188_v54 = vsel %vm1758_vm2, %v12213_v37, %v8137_v14  ;;  %v10251_v10 = vld [vmem:[%s12609_s5 + $0x78] sm:$0xff]  }
 0x490   :  { %v8173_v22 = vpop.permute.xlu1 %8172  ;;  %9999 = vmatprep.subr.bf16.mxu1 %v10246_v62  ;;  %v8223_v50 = vcombine.high %v8222_v59, %v8222_v59  ;;  %v8230_v27 = vrot.slane %v8222_v59, %v10613_v32 }
 0x491   :  { %v7937_v43 = vrot.slane %v7909_v42, %v10613_v32  ;;  %v7961_v25 = vrot.slane %v9651_v16, %v10613_v32  ;;  %v8203_v12 = vsel %vm3977_vm6, %v8188_v54, %v8173_v22 }
 0x492   :  { %v8171_v5 = vpop.permute.xlu0 %8170  ;;  %v8266_v39 = vrot.slane %v8203_v12, %v10613_v32  ;;  %v10266_v12 = vld [vmem:[%s12611_s7 + $0x30] sm:$0xff]  }
 0x493   :  { %v8201_v33 = vsel %vm3977_vm6, %v8185_v4, %v8171_v5  ;;  %v7939_v1 = vcombine.low %v7930_v61, %v7937_v43  ;;  %10000 = vmatpush3.bf16.msra.mxu1 %v10246_v62  ;;  %v7968_v37 = vrot.slane %v7961_v25, %v10613_v32  ;;  %v10252_v43 = vld [vmem:[%s12609_s5 + $0x80] sm:$0xff]   ;;  %10024 = vmatpush3.bf16.msra.mxu0 %v10266_v12 }
 0x494   :  { %v8244_v30 = vrot.slane %v8201_v33, %v10613_v32  ;;  %v8177_v60 = vpop.permute.xlu1 %8176  ;;  %10001 = vmatprep.subr.bf16.mxu1 %v10247_v36  ;;  %v8267_v35 = vcombine.high %v8266_v39, %v8266_v39  ;;  %10025 = vmatprep.subr.bf16.mxu0 %v10322_v55 }
 0x495   :  { %v7953_v15 = vrot.slane %v7939_v1, %v10613_v32 }
 0x496   :  { %v8245_v38 = vcombine.high %v8244_v30, %v8244_v30  ;;  %v8252_v47 = vrot.slane %v8244_v30, %v10613_v32  ;;  %v8175_v18 = vpop.permute.xlu0 %8174  ;;  %v8281_v62 = vrot.slane %v8267_v35, %v10613_v32  ;;  %v10253_v30 = vld [vmem:[%s12609_s5 + $0x88] sm:$0xff]  }
 0x497   :  { %v7954_v58 = vcombine.low %v7946_v49, %v7953_v15  ;;  %10002 = vmatpush3.bf16.msra.mxu1 %v10247_v36 }
 0x498   :  { %v8139_v24 = vpop.permute.xlu1 %8138  ;;  %v8259_v19 = vrot.slane %v8245_v38, %v10613_v32  ;;  %v8352_v2 = vunpack.i.h.s16 %v8252_v47  ;;  %10007 = vmatprep.subr.bf16.mxu1 %v10248_v41 }
 0x499   :  { %10003 = vmatprep.mubr.msk.bf16.mxu1 %vm5076_vm7, %v7954_v58  ;;  %v8191_v48 = vsel %vm1758_vm2, %v12223_v31, %v8139_v24  ;;  %v8237_v31 = vrot.slane %v8223_v50, %v10613_v32  ;;  %v10270_v58 = vld [vmem:[%s12611_s7] sm:$0xff]   ;;  %v10267_v50 = vld [vmem:[%s12611_s7 + $0x38] sm:$0xff]  }
 0x49a   :  { %v8205_v3 = vsel %vm3977_vm6, %v8191_v48, %v8175_v18  ;;  %v8141_v52 = vpop.permute.xlu0 %8140  ;;  %10004 = vmatmul.mubr.msk.bf16.vlgmr.msra.gmra.mrb[36].mxu1 %vm5076_vm7, %v7968_v37  ;;  %v9685_v53 = vpack.i.b16 %v8259_v19, %v8352_v2  ;;  %10026 = vmatpush3.bf16.msra.mxu0 %v10267_v50  ;;  %v10268_v24 = vld [vmem:[%s12611_s7 + $0x40] sm:$0xff]   ;;  %v10269_v19 = vld [vmem:[%s12611_s7 + $0x48] sm:$0xff]  }
 0x49b   :  { %v8288_v11 = vrot.slane %v8205_v3, %v10613_v32  ;;  %v8194_v28 = vsel %vm1758_vm2, %v12226_v56, %v8141_v52  ;;  %10008 = vmatpush3.bf16.msra.mxu1 %v10248_v41  ;;  %v8274_v56 = vrot.slane %v8266_v39, %v10613_v32  ;;  %v9684_v51 = vpack.i.b16 %v8252_v47, %v8237_v31 }
 0x49c   :  { %v8207_v34 = vsel %vm3977_vm6, %v8194_v28, %v8177_v60  ;;  %10009 = vmatprep.subr.bf16.mxu1 %v10249_v0  ;;  %v8179_v21 = vpop.permute.xlu1 %8178  ;;  %10027 = vmatprep.subr.bf16.mxu0 %v10322_v55 }
 0x49d   :  { %v8289_v63 = vcombine.high %v8288_v11, %v8288_v11  ;;  %v8296_v8 = vrot.slane %v8288_v11, %v10613_v32  ;;  %v8310_v46 = vrot.slane %v8207_v34, %v10613_v32  ;;  %v8389_v44 = vcombine.low %v9685_v53, %v8274_v56 }
 0x49e   :  { %v8143_v45 = vpop.permute.xlu0 %8142  ;;  %v8388_v42 = vcombine.low %v8230_v27, %v9684_v51  ;;  %10028 = vmatpush3.bf16.msra.mxu0 %v10268_v24 }
 0x49f   :  { %v8303_v57 = vrot.slane %v8289_v63, %v10613_v32  ;;  %v8358_v20 = vunpack.i.h.s16 %v8296_v8  ;;  %v8311_v9 = vcombine.high %v8310_v46, %v8310_v46  ;;  %v8197_v13 = vsel %vm1758_vm2, %v12234_v23, %v8143_v45  ;;  %10010 = vmatpush3.bf16.msra.mxu1 %v10249_v0  ;;  %10029 = vmatprep.subr.bf16.mxu0 %v10322_v55  ;;  %v9698_v63 = vld [vmem:[%s12610_s6] ss:$0 sm:$0xff]  ;;  %s9292_s6 = sshll.u32 %s10327_s3, 4  ;;  %s9293_s6 = int_to_ptr.vmem [resolvable:$true] %s9292_s6 }
 0x4a0   :  { %v8209_v7 = vsel %vm3977_vm6, %v8197_v13, %v8179_v21  ;;  %10011 = vmatprep.subr.bf16.mxu1 %v10250_v29  ;;  %v9686_v6 = vpack.i.b16 %v8296_v8, %v8281_v62  ;;  %v8405_v61 = vrot.slane %v8389_v44, %v10613_v32  ;;  %v8318_v16 = vrot.slane %v8310_v46, %v10613_v32  ;;  %s10297_s21 = scalar_lea.vmem %s9293_s6, 32  ;;  %p10302_p1 = scmp.lt.s32.totalorder %s9293_s6, %s9293_s6 }
 0x4a1   :  { %v9687_v40 = vpack.i.b16 %v8303_v57, %v8358_v20  ;;  %v8332_v14 = vrot.slane %v8209_v7, %v10613_v32  ;;  %v8325_v23 = vrot.slane %v8311_v9, %v10613_v32  ;;  %v8398_v33 = vrot.slane %v8388_v42, %v10613_v32  ;;  %p10298_p0 = scmp.ne.s32.totalorder %s9293_s6, %s10297_s21  ;;  %p10303_p2 = scmp.lt.s32.totalorder %s10297_s21, %s10297_s21 }
 0x4a2   :  { %10030 = vmatpush3.bf16.msra.mxu0 %v10269_v19 }
 0x4a3   :  { %v8333_v22 = vcombine.high %v8332_v14, %v8332_v14  ;;  %v8340_v26 = vrot.slane %v8332_v14, %v10613_v32  ;;  %10012 = vmatpush3.bf16.msra.mxu1 %v10250_v29  ;;  %v8390_v17 = vcombine.low %v9686_v6, %v9687_v40  ;;  %v8420_v49 = vcombine.low %v8398_v33, %v8405_v61  ;;  %p10304_p3 = por %p10303_p2, %p10302_p1 }
 0x4a4   :  { %10013 = vmatprep.subr.bf16.mxu1 %v10251_v10  ;;  %10031 = vmatprep.subr.bf16.mxu0 %v10322_v55 }
 0x4a5   :  { %v8347_v36 = vrot.slane %v8333_v22, %v10613_v32  ;;  %v8364_v4 = vunpack.i.h.s16 %v8340_v26  ;;  %v9688_v5 = vpack.i.b16 %v8340_v26, %v8325_v23  ;;  %v8412_v60 = vrot.slane %v8390_v17, %v10613_v32  ;;  %p10305_p4 = pnand %p10304_p3, %p10298_p0 }
 0x4a6   :  { %v8428_v54 = vrot.slane %v8420_v49, %v10613_v32 }
 0x4a7   :  { %v8391_v1 = vcombine.low %v8318_v16, %v9688_v5  ;;  %10014 = vmatpush3.bf16.msra.mxu1 %v10251_v10  ;;  %v9689_v59 = vpack.i.b16 %v8347_v36, %v8364_v4 }
 0x4a8   :  { %10015 = vmatprep.subr.bf16.mxu1 %v10252_v43 }
 0x4a9   :  { %v8419_v25 = vrot.slane %v8391_v1, %v10613_v32  ;;  %v8443_v41 = vrot.slane %v9689_v59, %v10613_v32 }
 0x4ab   :  { %10016 = vmatpush3.bf16.msra.mxu1 %v10252_v43  ;;  %v8421_v15 = vcombine.low %v8412_v60, %v8419_v25  ;;  %v8450_v18 = vrot.slane %v8443_v41, %v10613_v32 }
 0x4ac   :  { %10017 = vmatprep.subr.bf16.mxu1 %v10253_v30 }
 0x4ad   :  { %v8435_v38 = vrot.slane %v8421_v15, %v10613_v32 }
 0x4af   :  { %10018 = vmatpush3.bf16.msra.mxu1 %v10253_v30  ;;  %v8436_v47 = vcombine.low %v8428_v54, %v8435_v38 }
 0x4b0   :  { %10039 = vmatprep.subr.bf16.mxu1 %v10322_v55 }
 0x4b1   :  { %10019 = vmatprep.mubr.msk.bf16.mxu1 %vm5076_vm7, %v8436_v47 }
 0x4b2   :  { %10020 = vmatmul.mubr.msk.bf16.vlgmr.msra.gmra.mrb[40].mxu1 %vm5076_vm7, %v8450_v18 }
 0x4b3   :  { %10051 = vmatprep.mubr.msk.bf16.mxu1 %vm10323_vm0, %v10322_v55  ;;  %10040 = vmatpush3.bf16.msra.mxu1 %v10270_v58 }
 0x4b4   :  { %10041 = vmatprep.subr.bf16.mxu1 %v10322_v55 }
 0x555   :  { %v9989_v2 = vpop.f32.mrb[32].mxu1 }
 0x556   :  { %v7883_v48 = vpop.f32.mrb[33].mxu1 }
 0x557   :  { %v9990_v37 = vpop.f32.mrb[34].mxu1 }
 0x558   :  { %v7886_v0 = vpop.f32.mrb[35].mxu1 }
 0x56d   :  { %v10005_v39 = vpop.f32.mrb[36].mxu1 }
 0x56e   :  { %v8054_v3 = vadd.f32 %v10005_v39, %v9989_v2  ;;  %v8045_v52 = vpop.f32.mrb[37].mxu1 }
 0x56f   :  { %v8046_v11 = vadd.f32 %v8045_v52, %v7883_v48  ;;  %v10006_v28 = vpop.f32.mrb[38].mxu1 }
 0x570   :  { %v8048_v31 = vpop.f32.mrb[39].mxu1 }
 0x571   :  { %v8049_v34 = vadd.f32 %v8048_v31, %v7886_v0 }
 0x585   :  { %v10021_v53 = vpop.f32.mrb[40].mxu1 }
 0x586   :  { %v8543_v8 = vadd.f32 %v10021_v53, %v8054_v3  ;;  %v8527_v46 = vpop.f32.mrb[41].mxu1 }
 0x587   :  { %v8541_v29 = vadd.f32 %v8527_v46, %v8046_v11  ;;  %v10022_v35 = vpop.f32.mrb[42].mxu1 }
 0x588   :  { %v8553_v45 = vadd.f32 %v9698_v63, %v8543_v8  ;;  %v8530_v56 = vpop.f32.mrb[43].mxu1 }
 0x589   :  { %v8551_v51 = vadd.f32 %v9698_v63, %v8541_v29  ;;  %v8542_v57 = vadd.f32 %v8530_v56, %v8049_v34 }
 0x58a   :  { %v8556_v20 = vmax.f32 %v8553_v45, 0.0  ;;  %v8833_v45 = vld [vmem:[#allocation2] sm:$0x3] }
 0x58b   :  { %v8554_v9 = vmax.f32 %v8551_v51, 0.0  ;;  %v8552_v21 = vadd.f32 %v9698_v63, %v8542_v57 }
 0x58c   :  { %v8664_v13 = vrot.slane %v8556_v20, %v10613_v32 }
 0x58d   :  { %v8560_v27 = vcombine.high %v8554_v9, %v8554_v9  ;;  %v8567_v44 = vrot.slane %v8554_v9, %v10613_v32  ;;  %v8555_v7 = vmax.f32 %v8552_v21, 0.0 }
 0x58e   :  { %v8665_v42 = vcombine.high %v8664_v13, %v8664_v13  ;;  %v8672_v23 = vrot.slane %v8664_v13, %v10613_v32  ;;  %v8836_v13 = vld [vmem:[#allocation2 + $0x4] sm:$0x3] }
 0x58f   :  { %v8574_v10 = vrot.slane %v8560_v27, %v10613_v32  ;;  %v8575_v62 = vcombine.high %v8567_v44, %v8567_v44  ;;  %v8583_v40 = vrot.slane %v8567_v44, %v10613_v32  ;;  %v8609_v14 = vcombine.high %v8555_v7, %v8555_v7 }
 0x590   :  { %v8616_v6 = vrot.slane %v8555_v7, %v10613_v32  ;;  %v8679_v2 = vrot.slane %v8665_v42, %v10613_v32  ;;  %v8839_v7 = vld [vmem:[#allocation2 + $0x8] sm:$0x3] }
 0x591   :  { %v8576_v22 = vcombine.high %v8574_v10, %v8574_v10  ;;  %v8597_v26 = vrot.slane %v8575_v62, %v10613_v32  ;;  %v8605_v61 = vcombine.high %v8583_v40, %v8583_v40  ;;  %v8590_v16 = vrot.slane %v8574_v10, %v10613_v32 }
 0x592   :  { %v8623_v43 = vrot.slane %v8609_v14, %v10613_v32  ;;  %v8624_v17 = vcombine.high %v8616_v6, %v8616_v6  ;;  %v8632_v36 = vrot.slane %v8616_v6, %v10613_v32  ;;  %v8809_v35 = vrot.slane %v8679_v2, %v10613_v32  ;;  %v8842_v6 = vld [vmem:[#allocation2 + $0x1c] sm:$0x3] }
 0x593   :  { %v8604_v4 = vrot.slane %v8576_v22, %v10613_v32  ;;  %v8607_v5 = vcombine.high %v8597_v26, %v8597_v26  ;;  %v8680_v33 = vcombine.low %v8583_v40, %v8597_v26  ;;  %v8694_v1 = vrot.slane %v8605_v61, %v10613_v32  ;;  %v8845_v22 = vld [vmem:[#allocation2 + $0x20] sm:$0x3] }
 0x594   :  { %v8625_v59 = vcombine.high %v8623_v43, %v8623_v43  ;;  %v8639_v30 = vrot.slane %v8623_v43, %v10613_v32  ;;  %v8646_v60 = vrot.slane %v8624_v17, %v10613_v32  ;;  %v8654_v25 = vcombine.high %v8632_v36, %v8632_v36 }
 0x595   :  { %v8687_v49 = vrot.slane %v8680_v33, %v10613_v32  ;;  %v8703_v15 = vcombine.low %v8607_v5, %v8590_v16  ;;  %v8717_v41 = vrot.slane %v8604_v4, %v10613_v32  ;;  %v9699_v54 = vcombine.high %v8590_v16, %v8604_v4  ;;  %v8848_v16 = vld [vmem:[#allocation2 + $0x24] sm:$0x3] }
 0x596   :  { %v8653_v38 = vrot.slane %v8625_v59, %v10613_v32  ;;  %v8655_v47 = vcombine.high %v8639_v30, %v8639_v30  ;;  %v8656_v18 = vcombine.high %v8646_v60, %v8646_v60  ;;  %v8740_v12 = vrot.slane %v8632_v36, %v10613_v32  ;;  %v10272_v36 = vld [vmem:[%s12611_s7 + $0x8] sm:$0xff]  }
 0x597   :  { %v8695_v58 = vcombine.low %v8687_v49, %v8694_v1  ;;  %v8710_v50 = vrot.slane %v8703_v15, %v10613_v32  ;;  %v8733_v24 = vrot.slane %v9699_v54, %v10613_v32  ;;  %v8749_v19 = vcombine.low %v8646_v60, %v8654_v25  ;;  %10042 = vmatpush3.bf16.msra.mxu1 %v10272_v36  ;;  %v10273_v25 = vld [vmem:[%s12611_s7 + $0x58] sm:$0xff]   ;;  %v10274_v15 = vld [vmem:[%s12611_s7 + $0x10] sm:$0xff]  }
 0x598   :  { %v8657_v48 = vcombine.high %v8653_v38, %v8653_v38  ;;  %v8763_v37 = vrot.slane %v8656_v18, %v10613_v32  ;;  %v8772_v0 = vcombine.low %v8639_v30, %v8653_v38  ;;  %v8786_v34 = vrot.slane %v8655_v47, %v10613_v32  ;;  %10043 = vmatprep.subr.bf16.mxu1 %v10322_v55  ;;  %v10275_v47 = vld [vmem:[%s12611_s7 + $0x18] sm:$0xff]  }
 0x599   :  { %v8702_v39 = vrot.slane %v8695_v58, %v10613_v32  ;;  %v8718_v3 = vcombine.low %v8710_v50, %v8717_v41  ;;  %v8741_v52 = vcombine.low %v8733_v24, %v8740_v12  ;;  %v8756_v11 = vrot.slane %v8749_v19, %v10613_v32  ;;  %v10277_v19 = vld [vmem:[%s12611_s7 + $0x20] sm:$0xff]  }
 0x59a   :  { %v8779_v31 = vrot.slane %v8772_v0, %v10613_v32  ;;  %v8795_v53 = vcombine.low %v8657_v48, %v8672_v23 }
 0x59b   :  { %v8725_v63 = vrot.slane %v8718_v3, %v10613_v32  ;;  %v8824_v8 = vpack.c.bf16 %v8702_v39, %v8702_v39  ;;  %v8748_v46 = vrot.slane %v8741_v52, %v10613_v32  ;;  %v8764_v29 = vcombine.low %v8756_v11, %v8763_v37  ;;  %10044 = vmatpush3.bf16.msra.mxu1 %v10274_v15  ;;  %v10279_v39 = vld [vmem:[%s12611_s7 + $0x28] sm:$0xff]  }
 0x59c   :  { %v8787_v56 = vcombine.low %v8779_v31, %v8786_v34  ;;  %v8802_v51 = vrot.slane %v8795_v53, %v10613_v32  ;;  %10045 = vmatprep.subr.bf16.mxu1 %v10322_v55 }
 0x59d   :  { %v8825_v57 = vpack.c.bf16 %v8725_v63, %v8725_v63  ;;  %v8834_v20 = vsel %vm12471_vm13, %v8824_v8, %v8833_v45  ;;  %v8771_v9 = vrot.slane %v8764_v29, %v10613_v32  ;;  %v8826_v21 = vpack.c.bf16 %v8748_v46, %v8748_v46 }
 0x59e   :  { %8835 = vst [vmem:[#allocation2] sm:$0x3] %v8834_v20  ;;  %v8794_v27 = vrot.slane %v8787_v56, %v10613_v32  ;;  %v8810_v44 = vcombine.low %v8802_v51, %v8809_v35 }
 0x59f   :  { %v8837_v10 = vsel %vm12471_vm13, %v8825_v57, %v8836_v13  ;;  %v8827_v62 = vpack.c.bf16 %v8771_v9, %v8771_v9  ;;  %v8840_v40 = vsel %vm12471_vm13, %v8826_v21, %v8839_v7  ;;  %10046 = vmatpush3.bf16.msra.mxu1 %v10275_v47  ;;  %v10283_v47 = vld [vmem:[%s12611_s7 + $0x88] sm:$0xff]  }
 0x5a0   :  { %8838 = vst [vmem:[#allocation2 + $0x4] sm:$0x3] %v8837_v10  ;;  %v8817_v14 = vrot.slane %v8810_v44, %v10613_v32  ;;  %v8828_v42 = vpack.c.bf16 %v8794_v27, %v8794_v27  ;;  %8841 = vst [vmem:[#allocation2 + $0x8] sm:$0x3] %v8840_v40  ;;  %v10271_v32 = vld [vmem:[%s12611_s7 + $0x50] sm:$0xff]   ;;  %10047 = vmatprep.subr.bf16.mxu1 %v10322_v55 }
 0x5a1   :  { %v8843_v23 = vsel %vm12471_vm13, %v8827_v62, %v8842_v6  ;;  %10032 = vmatpush3.bf16.msra.mxu0 %v10271_v32  ;;  %v10276_v62 = vld [vmem:[%s12611_s7 + $0x60] sm:$0xff]   ;;  %v10280_v32 = vld [vmem:[%s12611_s7 + $0x70] sm:$0xff]  }
 0x5a2   :  { %v8829_v26 = vpack.c.bf16 %v8817_v14, %v8817_v14  ;;  %8844 = vst [vmem:[#allocation2 + $0x1c] sm:$0x3] %v8843_v23  ;;  %v8846_v61 = vsel %vm12471_vm13, %v8828_v42, %v8845_v22  ;;  %10033 = vmatprep.subr.bf16.mxu0 %v10322_v55  ;;  %v10278_v23 = vld [vmem:[%s12611_s7 + $0x68] sm:$0xff]  }
 0x5a3   :  { %8847 = vst [vmem:[#allocation2 + $0x20] sm:$0x3] %v8846_v61  ;;  %10048 = vmatpush3.bf16.msra.mxu1 %v10277_v19 }
 0x5a4   :  { %v8849_v43 = vsel %vm12471_vm13, %v8829_v26, %v8848_v16  ;;  %10049 = vmatprep.subr.bf16.mxu1 %v10322_v55 }
 0x5a5   :  { %8850 = vst [vmem:[#allocation2 + $0x24] sm:$0x3] %v8849_v43  ;;  %10034 = vmatpush3.bf16.msra.mxu0 %v10273_v25  ;;  %v8851_v58 = vld [vmem:[#allocation2] sm:$0x1] }
 0x5a6   :  { %10055 = vmatprep.subr.bf16.mxu0 %v10322_v55  ;;  %v9700_v48 = vcombine.low %v8851_v58, %v8851_v58  ;;  %v10262_v52 = vld [vmem:[#allocation2] ss:$0 sps:$4 sm:$0x22]  }
 0x5a7   :  { %v12503_v5 = vld [vmem:[#allocation2 + $0x4] sm:$0x1]  ;;  %v9133_v11 = vld [vmem:[#allocation2 + $0x8] sm:$0x1]  ;;  %10050 = vmatpush3.bf16.msra.mxu1 %v10279_v39  ;;  %v8877_v34 = vrot.slane %v10262_v52, 1 }
 0x5a8   :  { %v10256_v59 = vld [vmem:[#allocation2 + $0x4] ss:$0 sps:$4 sm:$0x22]   ;;  %v9704_v60 = vcombine.low %v12503_v5, %v12503_v5  ;;  %v8862_v3 = vshrl.u32 %v9700_v48, 16  ;;  %v9734_v53 = vcombine.low %v9133_v11, %v9133_v11 }
 0x5a9   :  { %v8852_v49 = vld [vmem:[#allocation2 + $0x1c] sm:$0x1]  ;;  %v8931_v41 = vrot.slane %v10256_v59, 1  ;;  %v10265_v31 = vld [vmem:[#allocation2 + $0x8] ss:$0 sps:$4 sm:$0x22]  }
 0x5aa   :  { %v10254_v17 = vld [vmem:[#allocation2 + $0x20] ss:$0 sps:$4 sm:$0x22]   ;;  %v10258_v54 = vld [vmem:[#allocation2 + $0x1c] ss:$0 sps:$4 sm:$0x22]   ;;  %v9701_v12 = vcombine.low %v8852_v49, %v8852_v49 }
 0x5ab   :  { %v8906_v4 = vld [vmem:[#allocation2 + $0x20] sm:$0x1]  ;;  %v8932_v33 = vrot.slane %v10254_v17, 1  ;;  %v8916_v18 = vshrl.u32 %v9704_v60, 16  ;;  %v8878_v50 = vrot.slane %v10258_v54, 1  ;;  %v9159_v63 = vrot.slane %v10265_v31, 1 }
 0x5ac   :  { %v9705_v1 = vcombine.low %v8906_v4, %v8906_v4  ;;  %v12516_v38 = vld [vmem:[#allocation2 + $0x24] sm:$0x1]  ;;  %v8865_v2 = vshrl.u32 %v9701_v12, 16  ;;  %v9144_v8 = vshrl.u32 %v9734_v53, 16 }
 0x5ad   :  { %8935 = vrot.lane.b32.xlu1 %v8932_v33, %s10325_s2  ;;  %v9735_v24 = vcombine.low %v12516_v38, %v12516_v38  ;;  %v10263_v0 = vld [vmem:[#allocation2 + $0x24] ss:$0 sps:$4 sm:$0x22]  }
 0x5ae   :  { %v8919_v30 = vshrl.u32 %v9705_v1, 16  ;;  %v9160_v28 = vrot.slane %v10263_v0, 1 }
 0x5af   :  { %v9147_v37 = vshrl.u32 %v9735_v24, 16 }
 0x5b0   :  { %8923 = vrot.lane.b32.xlu0 %v8919_v30, %s10326_s28  ;;  %v10281_v30 = vld [vmem:[%s12611_s7 + $0x78] sm:$0xff]  }
 0x5b1   :  { %8933 = vrot.lane.b32.xlu1 %v8931_v41, %s10325_s2  ;;  %v10282_v41 = vld [vmem:[%s12611_s7 + $0x80] sm:$0xff]  }
 0x5b4   :  { %8921 = vrot.lane.b32.xlu0 %v8916_v18, %s10326_s28 }
 0x5b5   :  { %8881 = vrot.lane.b32.xlu1 %v8878_v50, %s10325_s2 }
 0x5b8   :  { %8869 = vrot.lane.b32.xlu0 %v8865_v2, %s10326_s28 }
 0x5b9   :  { %9151 = vrot.lane.b32.xlu1 %v9147_v37, %s10326_s28 }
 0x5bc   :  { %8867 = vrot.lane.b32.xlu0 %v8862_v3, %s10326_s28 }
 0x5bd   :  { %9163 = vrot.lane.b32.xlu1 %v9160_v28, %s10325_s2 }
 0x5c0   :  { %8879 = vrot.lane.b32.xlu0 %v8877_v34, %s10325_s2 }
 0x5c1   :  { %9161 = vrot.lane.b32.xlu1 %v9159_v63, %s10325_s2 }
 0x5c4   :  { %9149 = vrot.lane.b32.xlu0 %v9144_v8, %s10326_s28 }
 0x61f   :  { %v8936_v46 = vpop.permute.xlu1 %8935 }
 0x622   :  { %v8924_v29 = vpop.permute.xlu0 %8923 }
 0x623   :  { %v8942_v35 = vsel %vm1758_vm2, %v8906_v4, %v8924_v29  ;;  %v8934_v56 = vpop.permute.xlu1 %8933 }
 0x624   :  { %v8946_v45 = vsel %vm3977_vm6, %v8942_v35, %v8936_v46 }
 0x625   :  { %v8963_v51 = vunpack.c.l.b16 %v8946_v45 }
 0x626   :  { %v8922_v57 = vpop.permute.xlu0 %8921 }
 0x627   :  { %v8939_v20 = vsel %vm1758_vm2, %v12503_v5, %v8922_v57  ;;  %v8882_v21 = vpop.permute.xlu1 %8881  ;;  %v8964_v13 = vrot.slane %v8963_v51, 7 }
 0x628   :  { %v8944_v9 = vsel %vm3977_vm6, %v8939_v20, %v8934_v56 }
 0x629   :  { %v8962_v27 = vunpack.c.l.b16 %v8944_v9 }
 0x62a   :  { %v8870_v44 = vpop.permute.xlu0 %8869 }
 0x62b   :  { %v8966_v7 = vsel %vm8965_vm14, %v8964_v13, %v8962_v27  ;;  %v8888_v10 = vsel %vm1758_vm2, %v8852_v49, %v8870_v44  ;;  %v9152_v42 = vpop.permute.xlu1 %9151 }
 0x62c   :  { %v8967_v40 = vpack.c.b16 %v8966_v7, %v8966_v7  ;;  %v8892_v14 = vsel %vm3977_vm6, %v8888_v10, %v8882_v21  ;;  %v9170_v33 = vsel %vm1758_vm2, %v12516_v38, %v9152_v42 }
 0x62d   :  { %v9050_v22 = vunpack.c.l.b16 %v8892_v14 }
 0x62e   :  { %10036 = vmatmul.mubr.msk.bf16.vlgmr.msra.gmra.mrb[40].mxu0 %vm5076_vm7, %v8967_v40  ;;  %v8868_v6 = vpop.permute.xlu0 %8867 }
 0x62f   :  { %10056 = vmatpush3.bf16.msra.mxu0 %v10276_v62  ;;  %10067 = vmatprep.mubr.msk.bf16.mxu0 %vm10323_vm0, %v10322_v55  ;;  %v8885_v26 = vsel %vm1758_vm2, %v8851_v58, %v8868_v6  ;;  %v9164_v43 = vpop.permute.xlu1 %9163  ;;  %v9051_v17 = vrot.slane %v9050_v22, 7 }
 0x630   :  { %10057 = vmatprep.subr.bf16.mxu0 %v10322_v55  ;;  %v9174_v60 = vsel %vm3977_vm6, %v9170_v33, %v9164_v43 }
 0x631   :  { %v9191_v15 = vunpack.c.l.b16 %v9174_v60 }
 0x632   :  { %v8880_v61 = vpop.permute.xlu0 %8879 }
 0x633   :  { %10058 = vmatpush3.bf16.msra.mxu0 %v10278_v23  ;;  %v8890_v16 = vsel %vm3977_vm6, %v8885_v26, %v8880_v61  ;;  %v9162_v25 = vpop.permute.xlu1 %9161  ;;  %v9192_v38 = vrot.slane %v9191_v15, 7 }
 0x634   :  { %v9049_v36 = vunpack.c.l.b16 %v8890_v16  ;;  %10059 = vmatprep.subr.bf16.mxu0 %v10322_v55 }
 0x636   :  { %v9052_v4 = vsel %vm8965_vm14, %v9051_v17, %v9049_v36  ;;  %v9150_v5 = vpop.permute.xlu0 %9149 }
 0x637   :  { %v9053_v1 = vpack.c.b16 %v9052_v4, %v9052_v4  ;;  %10060 = vmatpush3.bf16.msra.mxu0 %v10280_v32  ;;  %v9167_v59 = vsel %vm1758_vm2, %v9133_v11, %v9150_v5 }
 0x638   :  { %10061 = vmatprep.subr.bf16.mxu0 %v10322_v55  ;;  %v9172_v49 = vsel %vm3977_vm6, %v9167_v59, %v9162_v25 }
 0x639   :  { %10052 = vmatmul.mubr.msk.bf16.vlgmr.msra.gmra.mrb[44].mxu1 %vm5076_vm7, %v9053_v1  ;;  %v9190_v54 = vunpack.c.l.b16 %v9172_v49 }
 0x63b   :  { %10062 = vmatpush3.bf16.msra.mxu0 %v10281_v30  ;;  %v9193_v18 = vsel %vm8965_vm14, %v9192_v38, %v9190_v54 }
 0x63c   :  { %10063 = vmatprep.subr.bf16.mxu0 %v10322_v55  ;;  %v9194_v12 = vpack.c.b16 %v9193_v18, %v9193_v18 }
 0x63f   :  { %10064 = vmatpush3.bf16.msra.mxu0 %v10282_v41 }
 0x640   :  { %10065 = vmatprep.subr.bf16.mxu0 %v10322_v55  ;;  %v9757_v55 = vld [vmem:[%s12612_s8] ss:$0 sm:$0xff] }
 0x643   :  { %10066 = vmatpush3.bf16.msra.mxu0 %v10283_v47 }
 0x646   :  { %10068 = vmatmul.mubr.msk.bf16.vlgmr.msra.gmra.mrb[44].mxu0 %vm5076_vm7, %v9194_v12 }
 0x701   :  { %v9041_v58 = vpop.f32.mrb[40].mxu0 }
 0x702   :  { %v10037_v50 = vpop.f32.mrb[41].mxu0 }
 0x703   :  { %v9044_v24 = vpop.f32.mrb[42].mxu0 }
 0x704   :  { %v10038_v19 = vpop.f32.mrb[43].mxu0 }
 0x70c   :  { %v9127_v2 = vpop.f32.mrb[44].mxu1 }
 0x70d   :  { %v9128_v48 = vadd.f32 %v9127_v2, %v9041_v58  ;;  %v10053_v37 = vpop.f32.mrb[45].mxu1 }
 0x70e   :  { %v9130_v0 = vpop.f32.mrb[46].mxu1 }
 0x70f   :  { %v10054_v39 = vpop.f32.mrb[47].mxu1 }
 0x719   :  { %v9268_v3 = vpop.f32.mrb[44].mxu0 }
 0x71a   :  { %v9274_v52 = vadd.f32 %v9268_v3, %v9128_v48  ;;  %v10069_v11 = vpop.f32.mrb[45].mxu0 }
 0x71b   :  { %v9271_v28 = vpop.f32.mrb[46].mxu0 }
 0x71c   :  { %v9282_v31 = vadd.f32 %v9757_v55, %v9274_v52  ;;  %v10070_v34 = vpop.f32.mrb[47].mxu0 }
 0x71e   :  { %v9283_v53 = vmax.f32 %v9282_v31, 0.0 }
 0x720   :  { %9285 = vst.msk [vmem:[#allocation4] sm:$0x3] %vm8830_vm11, %v9283_v53 }
 0x721   :  { %10308 = shalt.err (!%p10305_p4)
}
 0x722   :  { %s10309_s23 = scalar_lea.hbm %s12613_s9, 32 }
 0x723   :  { %p10310_p5 = scmp.ne.s32.totalorder %s12613_s9, %s10309_s23  ;;  %p10313_p6 = scmp.lt.u32.totalorder %s10309_s23, %s12613_s9 }
 0x725   :  { %p10315_p7 = pnand %p10313_p6, %p10310_p5 }
 0x727   :  { %10318 = shalt.err (!%p10315_p7)
}
 0x728   :  { %9295 = dma.vmem_to_hbm [thread:$0]  %s9293_s6, 32, %s12613_s9, [#allocation5]  }
 0x729   :  { %10319 = dma.done.wait [#allocation5], 32  }
 0x72a   :  { %10320 = vsyncadd [#allocation5], 4294967264 }
 0x72b   :  { %9299 = vsyncpa [#allocation5], 1 }

</bundles_post_ra>
